<compile_context>
chip_gen: v7x
topology: tpu7x:2x2x1
jax: 0.10.0
libtpu: 0.0.40
codegen_flags: <defaults>
</compile_context>

<pallas_src>
import functools

import jax
import jax.numpy as jnp
from jax import lax
from jax.experimental import pallas as pl
from jax.experimental.pallas import tpu as pltpu

# TODO(synk): torch.nn.BCELoss clamps log at -100; we clamp p to [1e-7, 1-1e-7]
# instead (max per-element contribution ~16.1 vs 100 in torch).
_EPS = 1e-7

_GROUP_ROWS = 256        # rows per inner fori_loop group (multiple of 32)
_LANES = 128


def _loss_sums_kernel(n_ref, p_ref, l_ref, out_ref, *, gr):
    # Grid: (n_par, steps).  out_ref is a (1, 2, 8, 128) VMEM block resident
    # across the "arbitrary" axis -> it is the accumulator for this core.
    k = pl.program_id(1)

    @pl.when(k == 0)
    def _():
        out_ref[...] = jnp.zeros_like(out_ref)

    tm = p_ref.shape[0]
    n_groups = tm // gr
    n = n_ref[0]

    # Global tile index.  Fictitious tiles past the end (odd tile count with a
    # 2-way split) are clamped to the last real tile by the index_map and are
    # fully masked out here because tile_base >= n.
    b = pl.program_id(0) * pl.num_programs(1) + k
    tile_base = b * (tm * _LANES)               # int32; host asserts headroom
    needs_mask = tile_base + tm * _LANES > n

    def make_body(masked):
        def body(g, carry):
            mse_acc, bce_acc = carry
            r0 = pl.multiple_of(g * gr, gr)

            # .to(torch.float32) in CriterionWithWeight.forward
            p = p_ref[pl.ds(r0, gr), :].astype(jnp.float32)
            l = l_ref[pl.ds(r0, gr), :].astype(jnp.float32)

            d = p - l
            mse = d * d

            pc = jnp.clip(p, _EPS, 1.0 - _EPS)
            log_p = jnp.log(pc)
            log_1mp = jnp.log1p(-pc)
            # -(l*log p + (1-l)*log(1-p)) == -(log(1-p) + l*(log p - log(1-p)))
            bce = -(log_1mp + l * (log_p - log_1mp))

            if masked:
                # Only boundary tiles pay for this; garbage rows of a partial
                # boundary block (and any lane padding) contribute exactly 0
                # (select discards NaN/Inf; clip keeps the logs finite).
                row = lax.broadcasted_iota(jnp.int32, (gr, _LANES), 0)
                col = lax.broadcasted_iota(jnp.int32, (gr, _LANES), 1)
                idx = tile_base + (r0 + row) * _LANES + col
                valid = idx < n
                mse = jnp.where(valid, mse, 0.0)
                bce = jnp.where(valid, bce, 0.0)

            # Fold (gr, 128) -> (8, 128) with pure VPU adds; keep the running
            # accumulators in vregs (loop carry), not VMEM.
            mse_acc = mse_acc + mse.reshape(gr // 8, 8, _LANES).sum(axis=0)
            bce_acc = bce_acc + bce.reshape(gr // 8, 8, _LANES).sum(axis=0)
            return mse_acc, bce_acc
        return body

    zeros = (jnp.zeros((8, _LANES), jnp.float32),
             jnp.zeros((8, _LANES), jnp.float32))
    unroll = 2 if n_groups % 2 == 0 else 1

    @pl.when(needs_mask)
    def _():
        mse_acc, bce_acc = lax.fori_loop(0, n_groups, make_body(True), zeros,
                                         unroll=unroll)
        out_ref[0, 0] += mse_acc
        out_ref[0, 1] += bce_acc

    @pl.when(jnp.logical_not(needs_mask))
    def _():
        mse_acc, bce_acc = lax.fori_loop(0, n_groups, make_body(False), zeros,
                                         unroll=unroll)
        out_ref[0, 0] += mse_acc
        out_ref[0, 1] += bce_acc


@functools.partial(jax.jit, static_argnames=("tile_rows",))
def _criterion_losses(probas, labels, tile_rows=4096):
    """Returns (mse_loss_weighted, bce_loss_weighted, total) as f32 scalars."""
    lanes = _LANES
    gr = _GROUP_ROWS
    assert tile_rows % gr == 0

    n = probas.size                                   # static under jit
    assert n > 0
    # int32 flat-index math inside the kernel; keep comfortable headroom.
    assert n < 2**31 - 2 * tile_rows * lanes, "input too large for int32 index math"

    rem = n % lanes
    m = -(-n // lanes)                                # rows of 128 lanes

    # Row tile: multiple of the group size (covers f32/bf16/int8 packing),
    # capped by what the input actually needs.  4096 rows = 2 MiB f32 block,
    # double-buffered it stays well inside the 32 MiB VMEM limit below.
    tm = min(tile_rows, -(-m // gr) * gr)

    total_tiles = -(-m // tm)
    n_par = 2 if total_tiles >= 2 else 1
    steps = -(-total_tiles // n_par)
    last_tile = total_tiles - 1

    def _prep(x):
        xf = x.reshape(-1)
        if rem:
            # Rare fallback (n % 128 != 0): pad only the last partial row so
            # the (m, 128) reshape is legal; the mask excludes the pad lanes.
            xf = jnp.pad(xf, (0, lanes - rem))
        return xf.reshape(m, lanes)

    p2 = _prep(probas)
    l2 = _prep(labels)
    n_arr = jnp.array([n], dtype=jnp.int32)

    if n_par * steps > total_tiles:
        # Odd tile count with a 2-way split: clamp the fictitious tile's DMA
        # to the last real tile; the in-kernel mask zeroes its contribution.
        in_idx = lambda i, k, nn: (jnp.minimum(i * steps + k, last_tile), 0)
    else:
        in_idx = lambda i, k, nn: (i * steps + k, 0)

    # Megacore split: only v7x has 2 TensorCores per chip; CORE_PARALLEL makes
    # the split explicit there.  Plain PARALLEL elsewhere (safe everywhere).
    device_kind = jax.devices()[0].device_kind.lower()
    par_sem = (pltpu.CORE_PARALLEL
               if (n_par == 2 and "7" in device_kind) else pltpu.PARALLEL)

    partials = pl.pallas_call(
        functools.partial(_loss_sums_kernel, gr=gr),
        out_shape=jax.ShapeDtypeStruct((n_par, 2, 8, lanes), jnp.float32),
        grid_spec=pltpu.PrefetchScalarGridSpec(
            num_scalar_prefetch=1,
            grid=(n_par, steps),
            in_specs=[
                pl.BlockSpec((tm, lanes), in_idx),
                pl.BlockSpec((tm, lanes), in_idx),
            ],
            out_specs=pl.BlockSpec((1, 2, 8, lanes),
                                   lambda i, k, nn: (i, 0, 0, 0)),
        ),
        compiler_params=pltpu.CompilerParams(
            dimension_semantics=(par_sem, pltpu.ARBITRARY),
            vmem_limit_bytes=32 * 1024 * 1024),
    )(n_arr, p2, l2)

    sums = jnp.sum(partials, axis=(0, 2, 3))          # (2,) tiny final reduce

    inv_n = jnp.float32(1.0 / n)
    w_mse = jnp.float32(1.0)
    w_bce = jnp.float32(0.5)
    mse = sums[0] * inv_n * w_mse
    bce = sums[1] * inv_n * w_bce
    total = mse + bce
    return mse, bce, total


class CriterionPallas:
    """Mirrors Criterion.forward(probas, labels, prefix) -> (loss, logs)."""

    # criterion names mimic CriterionWithWeight(name.split('.')[-1])
    _names = ("MSE", "BCE")

    def forward(self, probas, labels, prefix, materialize=False):
        mse, bce, total = _criterion_losses(probas, labels)
        if materialize:
            # torch's .item() semantics (forces a device->host sync per value).
            mse, bce, total_v = (float(x) for x in
                                 jax.block_until_ready((mse, bce, total)))
        else:
            # Deferred host round-trip: log values stay as device f32 scalars.
            total_v = total
        logs = [
            {"name": f"{prefix}.{self._names[0]}", "value": mse},
            {"name": f"{prefix}.{self._names[1]}", "value": bce},
            {"name": f"{prefix}.TotalLoss", "value": total_v},
        ]
        return total, logs

    __call__ = forward


if __name__ == "__main__":
    key = jax.random.PRNGKey(0)
    k1, k2 = jax.random.split(key)

    B, C, H, W = 2, 4, 16, 16
    probas = jax.nn.sigmoid(jax.random.normal(k1, (B, C, H, W), dtype=jnp.float32))
    # Hard 0/1 labels stored as int8 (exact) -> 4x fewer HBM bytes for labels.
    labels = (jax.random.uniform(k2, (B, C, H, W)) > 0.5).astype(jnp.int8)

    crit = CriterionPallas()
    loss, logs = crit(probas, labels, prefix="val")
    loss = jax.block_until_ready(loss)

    # cross-check against a pure-JAX reference (torch-like formulas)
    p32 = probas.astype(jnp.float32)
    l32 = labels.astype(jnp.float32)
    ref_mse = jnp.mean((p32 - l32) ** 2) * 1.0
    pc = jnp.clip(p32, _EPS, 1.0 - _EPS)
    ref_bce = jnp.mean(-(l32 * jnp.log(pc) + (1.0 - l32) * jnp.log(1.0 - pc))) * 0.5
    ref_total = float(ref_mse + ref_bce)
    assert abs(float(loss) - ref_total) < 1e-4, (float(loss), ref_total)

    # sanity on the log entries (MSE + BCE == TotalLoss)
    vals = [float(e["value"]) for e in logs]
    assert abs(vals[0] + vals[1] - vals[2]) < 1e-5

    print("KERNEL_OK")
</pallas_src>

<mosaic_0001>
module attributes {stable_mosaic.version = 11 : i64} {
  func.func @_loss_sums_kernel(%arg0: i32, %arg1: i32, %arg2: memref<1xi32, #tpu.memory_space<smem>>, %arg3: memref<256x128xf32, #tpu.memory_space<vmem>>, %arg4: memref<256x128xi8, #tpu.memory_space<vmem>>, %arg5: memref<1x2x8x128xf32, #tpu.memory_space<vmem>>) attributes {dimension_semantics = [#tpu.dimension_semantics<parallel>, #tpu.dimension_semantics<arbitrary>], iteration_bounds = array<i64: 1, 1>, scalar_prefetch = 1 : i64, scratch_operands = 0 : i64, tpu.core_type = #tpu.core_type<tc>, window_params = [{transform_indices = @transform_0, window_bounds = array<i64: 256, 128>}, {transform_indices = @transform_1, window_bounds = array<i64: 256, 128>}, {transform_indices = @transform_2, window_bounds = array<i64: 1, 2, 8, 128>}]} {
    %c0_i32 = arith.constant 0 : i32
    %0 = arith.cmpi eq, %arg1, %c0_i32 : i32
    %1 = arith.extui %0 : i1 to i32
    %c0_i32_0 = arith.constant 0 : i32
    %2 = arith.cmpi ne, %1, %c0_i32_0 : i32
    scf.if %2 {
      %cst_5 = arith.constant 0.000000e+00 : f32
      %16 = vector.broadcast %cst_5 : f32 to vector<1x2x8x128xf32>
      %c0_6 = arith.constant 0 : index
      %c0_7 = arith.constant 0 : index
      %c0_8 = arith.constant 0 : index
      %c0_9 = arith.constant 0 : index
      %17 = vector.load %arg5[%c0_6, %c0_7, %c0_8, %c0_9] : memref<1x2x8x128xf32, #tpu.memory_space<vmem>>, vector<1x2x8x128xf32>
      tpu.vector_store %arg5[%c0_6, %c0_7, %c0_8, %c0_9], %16 {strides = array<i32>} : memref<1x2x8x128xf32, #tpu.memory_space<vmem>>, vector<1x2x8x128xf32>,
    } else {
    }
    %c0 = arith.constant 0 : index
    %3 = memref.load %arg2[%c0] : memref<1xi32, #tpu.memory_space<smem>>
    %c1_i32 = arith.constant 1 : i32
    %4 = arith.muli %arg0, %c1_i32 : i32
    %5 = arith.addi %4, %arg1 : i32
    %c32768_i32 = arith.constant 32768 : i32
    %6 = arith.muli %5, %c32768_i32 : i32
    %c32768_i32_1 = arith.constant 32768 : i32
    %7 = arith.addi %6, %c32768_i32_1 : i32
    %8 = arith.cmpi sgt, %7, %3 : i32
    %cst = arith.constant 0.000000e+00 : f32
    %9 = vector.broadcast %cst : f32 to vector<8x128xf32>
    %cst_2 = arith.constant 0.000000e+00 : f32
    %10 = vector.broadcast %cst_2 : f32 to vector<8x128xf32>
    %11 = arith.extui %8 : i1 to i32
    %c0_i32_3 = arith.constant 0 : i32
    %12 = arith.cmpi ne, %11, %c0_i32_3 : i32
    scf.if %12 {
      %c0_i32_5 = arith.constant 0 : i32
      %c256_i32 = arith.constant 256 : i32
      %16 = arith.muli %c0_i32_5, %c256_i32 : i32
      %17 = tpu.assume_multiple %16, 256 : i32
      %18 = arith.index_cast %17 : i32 to index
      %c0_6 = arith.constant 0 : index
      %19 = vector.load %arg3[%18, %c0_6] : memref<256x128xf32, #tpu.memory_space<vmem>>, vector<256x128xf32>
      %20 = arith.index_cast %17 : i32 to index
      %c0_7 = arith.constant 0 : index
      %21 = vector.load %arg4[%20, %c0_7] : memref<256x128xi8, #tpu.memory_space<vmem>>, vector<256x128xi8>
      %22 = arith.sitofp %21 : vector<256x128xi8> to vector<256x128xf32>
      %23 = arith.subf %19, %22 : vector<256x128xf32>
      %24 = arith.mulf %23, %23 : vector<256x128xf32>
      %cst_8 = arith.constant 1.000000e-07 : f32
      %cst_9 = arith.constant 0.99999988 : f32
      %25 = vector.broadcast %cst_8 : f32 to vector<256x128xf32>
      %26 = arith.maximumf %25, %19 : vector<256x128xf32>
      %27 = vector.broadcast %cst_9 : f32 to vector<256x128xf32>
      %28 = arith.minimumf %27, %26 : vector<256x128xf32>
      %29 = math.log %28 : vector<256x128xf32>
      %cst_10 = arith.constant 0.000000e+00 : f32
      %30 = vector.broadcast %cst_10 : f32 to vector<256x128xf32>
      %31 = arith.subf %30, %28 : vector<256x128xf32>
      %32 = math.log1p %31 : vector<256x128xf32>
      %33 = arith.subf %29, %32 : vector<256x128xf32>
      %34 = arith.mulf %22, %33 : vector<256x128xf32>
      %35 = arith.addf %32, %34 : vector<256x128xf32>
      %cst_11 = arith.constant 0.000000e+00 : f32
      %36 = vector.broadcast %cst_11 : f32 to vector<256x128xf32>
      %37 = arith.subf %36, %35 : vector<256x128xf32>
      %38 = tpu.iota {dimensions = array<i32: 0>} : vector<256x128xi32>
      %39 = tpu.iota {dimensions = array<i32: 1>} : vector<256x128xi32>
      %40 = vector.broadcast %17 : i32 to vector<256x128xi32>
      %41 = arith.addi %40, %38 : vector<256x128xi32>
      %c128_i32 = arith.constant 128 : i32
      %42 = vector.broadcast %c128_i32 : i32 to vector<256x128xi32>
      %43 = arith.muli %41, %42 : vector<256x128xi32>
      %44 = vector.broadcast %6 : i32 to vector<256x128xi32>
      %45 = arith.addi %44, %43 : vector<256x128xi32>
      %46 = arith.addi %45, %39 : vector<256x128xi32>
      %47 = vector.broadcast %3 : i32 to vector<256x128xi32>
      %48 = arith.cmpi slt, %46, %47 : vector<256x128xi32>
      %cst_12 = arith.constant 0.000000e+00 : f32
      %49 = vector.broadcast %cst_12 : f32 to vector<256x128xf32>
      %50 = arith.select %48, %24, %49 : vector<256x128xi1>, vector<256x128xf32>
      %cst_13 = arith.constant 0.000000e+00 : f32
      %51 = vector.broadcast %cst_13 : f32 to vector<256x128xf32>
      %52 = arith.select %48, %37, %51 : vector<256x128xi1>, vector<256x128xf32>
      %53 = vector.shape_cast %50 : vector<256x128xf32> to vector<32x8x128xf32>
      %cst_14 = arith.constant dense<0.000000e+00> : vector<8x128xf32>
      %54 = vector.multi_reduction <add>, %53, %cst_14 [0] : vector<32x8x128xf32> to vector<8x128xf32>
      %55 = arith.addf %9, %54 : vector<8x128xf32>
      %56 = vector.shape_cast %52 : vector<256x128xf32> to vector<32x8x128xf32>
      %cst_15 = arith.constant dense<0.000000e+00> : vector<8x128xf32>
      %57 = vector.multi_reduction <add>, %56, %cst_15 [0] : vector<32x8x128xf32> to vector<8x128xf32>
      %58 = arith.addf %10, %57 : vector<8x128xf32>
      %c1_i32_16 = arith.constant 1 : i32
      %c0_17 = arith.constant 0 : index
      %c0_18 = arith.constant 0 : index
      %c0_19 = arith.constant 0 : index
      %c0_20 = arith.constant 0 : index
      %59 = vector.load %arg5[%c0_17, %c0_18, %c0_19, %c0_20] : memref<1x2x8x128xf32, #tpu.memory_space<vmem>>, vector<1x1x8x128xf32>
      %60 = vector.shape_cast %59 : vector<1x1x8x128xf32> to vector<8x128xf32>
      %61 = arith.addf %60, %55 : vector<8x128xf32>
      %c0_21 = arith.constant 0 : index
      %c0_22 = arith.constant 0 : index
      %c0_23 = arith.constant 0 : index
      %c0_24 = arith.constant 0 : index
      %62 = vector.load %arg5[%c0_21, %c0_22, %c0_23, %c0_24] : memref<1x2x8x128xf32, #tpu.memory_space<vmem>>, vector<1x1x8x128xf32>
      %63 = vector.shape_cast %62 : vector<1x1x8x128xf32> to vector<8x128xf32>
      %64 = vector.shape_cast %61 : vector<8x128xf32> to vector<1x1x8x128xf32>
      tpu.vector_store %arg5[%c0_21, %c0_22, %c0_23, %c0_24], %64 {strides = array<i32>} : memref<1x2x8x128xf32, #tpu.memory_space<vmem>>, vector<1x1x8x128xf32>,
      %c0_25 = arith.constant 0 : index
      %c1 = arith.constant 1 : index
      %c0_26 = arith.constant 0 : index
      %c0_27 = arith.constant 0 : index
      %65 = vector.load %arg5[%c0_25, %c1, %c0_26, %c0_27] : memref<1x2x8x128xf32, #tpu.memory_space<vmem>>, vector<1x1x8x128xf32>
      %66 = vector.shape_cast %65 : vector<1x1x8x128xf32> to vector<8x128xf32>
      %67 = arith.addf %66, %58 : vector<8x128xf32>
      %c0_28 = arith.constant 0 : index
      %c1_29 = arith.constant 1 : index
      %c0_30 = arith.constant 0 : index
      %c0_31 = arith.constant 0 : index
      %68 = vector.load %arg5[%c0_28, %c1_29, %c0_30, %c0_31] : memref<1x2x8x128xf32, #tpu.memory_space<vmem>>, vector<1x1x8x128xf32>
      %69 = vector.shape_cast %68 : vector<1x1x8x128xf32> to vector<8x128xf32>
      %70 = vector.shape_cast %67 : vector<8x128xf32> to vector<1x1x8x128xf32>
      tpu.vector_store %arg5[%c0_28, %c1_29, %c0_30, %c0_31], %70 {strides = array<i32>} : memref<1x2x8x128xf32, #tpu.memory_space<vmem>>, vector<1x1x8x128xf32>,
    } else {
    }
    %true = arith.constant true
    %13 = arith.xori %8, %true : i1
    %14 = arith.extui %13 : i1 to i32
    %c0_i32_4 = arith.constant 0 : i32
    %15 = arith.cmpi ne, %14, %c0_i32_4 : i32
    scf.if %15 {
      %c0_i32_5 = arith.constant 0 : i32
      %c256_i32 = arith.constant 256 : i32
      %16 = arith.muli %c0_i32_5, %c256_i32 : i32
      %17 = tpu.assume_multiple %16, 256 : i32
      %18 = arith.index_cast %17 : i32 to index
      %c0_6 = arith.constant 0 : index
      %19 = vector.load %arg3[%18, %c0_6] : memref<256x128xf32, #tpu.memory_space<vmem>>, vector<256x128xf32>
      %20 = arith.index_cast %17 : i32 to index
      %c0_7 = arith.constant 0 : index
      %21 = vector.load %arg4[%20, %c0_7] : memref<256x128xi8, #tpu.memory_space<vmem>>, vector<256x128xi8>
      %22 = arith.sitofp %21 : vector<256x128xi8> to vector<256x128xf32>
      %23 = arith.subf %19, %22 : vector<256x128xf32>
      %24 = arith.mulf %23, %23 : vector<256x128xf32>
      %cst_8 = arith.constant 1.000000e-07 : f32
      %cst_9 = arith.constant 0.99999988 : f32
      %25 = vector.broadcast %cst_8 : f32 to vector<256x128xf32>
      %26 = arith.maximumf %25, %19 : vector<256x128xf32>
      %27 = vector.broadcast %cst_9 : f32 to vector<256x128xf32>
      %28 = arith.minimumf %27, %26 : vector<256x128xf32>
      %29 = math.log %28 : vector<256x128xf32>
      %cst_10 = arith.constant 0.000000e+00 : f32
      %30 = vector.broadcast %cst_10 : f32 to vector<256x128xf32>
      %31 = arith.subf %30, %28 : vector<256x128xf32>
      %32 = math.log1p %31 : vector<256x128xf32>
      %33 = arith.subf %29, %32 : vector<256x128xf32>
      %34 = arith.mulf %22, %33 : vector<256x128xf32>
      %35 = arith.addf %32, %34 : vector<256x128xf32>
      %cst_11 = arith.constant 0.000000e+00 : f32
      %36 = vector.broadcast %cst_11 : f32 to vector<256x128xf32>
      %37 = arith.subf %36, %35 : vector<256x128xf32>
      %38 = vector.shape_cast %24 : vector<256x128xf32> to vector<32x8x128xf32>
      %cst_12 = arith.constant dense<0.000000e+00> : vector<8x128xf32>
      %39 = vector.multi_reduction <add>, %38, %cst_12 [0] : vector<32x8x128xf32> to vector<8x128xf32>
      %40 = arith.addf %9, %39 : vector<8x128xf32>
      %41 = vector.shape_cast %37 : vector<256x128xf32> to vector<32x8x128xf32>
      %cst_13 = arith.constant dense<0.000000e+00> : vector<8x128xf32>
      %42 = vector.multi_reduction <add>, %41, %cst_13 [0] : vector<32x8x128xf32> to vector<8x128xf32>
      %43 = arith.addf %10, %42 : vector<8x128xf32>
      %c1_i32_14 = arith.constant 1 : i32
      %c0_15 = arith.constant 0 : index
      %c0_16 = arith.constant 0 : index
      %c0_17 = arith.constant 0 : index
      %c0_18 = arith.constant 0 : index
      %44 = vector.load %arg5[%c0_15, %c0_16, %c0_17, %c0_18] : memref<1x2x8x128xf32, #tpu.memory_space<vmem>>, vector<1x1x8x128xf32>
      %45 = vector.shape_cast %44 : vector<1x1x8x128xf32> to vector<8x128xf32>
      %46 = arith.addf %45, %40 : vector<8x128xf32>
      %c0_19 = arith.constant 0 : index
      %c0_20 = arith.constant 0 : index
      %c0_21 = arith.constant 0 : index
      %c0_22 = arith.constant 0 : index
      %47 = vector.load %arg5[%c0_19, %c0_20, %c0_21, %c0_22] : memref<1x2x8x128xf32, #tpu.memory_space<vmem>>, vector<1x1x8x128xf32>
      %48 = vector.shape_cast %47 : vector<1x1x8x128xf32> to vector<8x128xf32>
      %49 = vector.shape_cast %46 : vector<8x128xf32> to vector<1x1x8x128xf32>
      tpu.vector_store %arg5[%c0_19, %c0_20, %c0_21, %c0_22], %49 {strides = array<i32>} : memref<1x2x8x128xf32, #tpu.memory_space<vmem>>, vector<1x1x8x128xf32>,
      %c0_23 = arith.constant 0 : index
      %c1 = arith.constant 1 : index
      %c0_24 = arith.constant 0 : index
      %c0_25 = arith.constant 0 : index
      %50 = vector.load %arg5[%c0_23, %c1, %c0_24, %c0_25] : memref<1x2x8x128xf32, #tpu.memory_space<vmem>>, vector<1x1x8x128xf32>
      %51 = vector.shape_cast %50 : vector<1x1x8x128xf32> to vector<8x128xf32>
      %52 = arith.addf %51, %43 : vector<8x128xf32>
      %c0_26 = arith.constant 0 : index
      %c1_27 = arith.constant 1 : index
      %c0_28 = arith.constant 0 : index
      %c0_29 = arith.constant 0 : index
      %53 = vector.load %arg5[%c0_26, %c1_27, %c0_28, %c0_29] : memref<1x2x8x128xf32, #tpu.memory_space<vmem>>, vector<1x1x8x128xf32>
      %54 = vector.shape_cast %53 : vector<1x1x8x128xf32> to vector<8x128xf32>
      %55 = vector.shape_cast %52 : vector<8x128xf32> to vector<1x1x8x128xf32>
      tpu.vector_store %arg5[%c0_26, %c1_27, %c0_28, %c0_29], %55 {strides = array<i32>} : memref<1x2x8x128xf32, #tpu.memory_space<vmem>>, vector<1x1x8x128xf32>,
    } else {
    }
    return
  }
  func.func @transform_0(%arg0: i32, %arg1: i32, %arg2: memref<1xi32, #tpu.memory_space<smem>>) -> (i32, i32) {
    %c1_i32 = arith.constant 1 : i32
    %0 = arith.muli %arg0, %c1_i32 : i32
    %1 = arith.addi %0, %arg1 : i32
    %c0_i32 = arith.constant 0 : i32
    %c0_i32_0 = arith.constant 0 : i32
    return %1, %c0_i32 : i32, i32
  }
  func.func @transform_1(%arg0: i32, %arg1: i32, %arg2: memref<1xi32, #tpu.memory_space<smem>>) -> (i32, i32) {
    %c1_i32 = arith.constant 1 : i32
    %0 = arith.muli %arg0, %c1_i32 : i32
    %1 = arith.addi %0, %arg1 : i32
    %c0_i32 = arith.constant 0 : i32
    %c0_i32_0 = arith.constant 0 : i32
    return %1, %c0_i32 : i32, i32
  }
  func.func @transform_2(%arg0: i32, %arg1: i32, %arg2: memref<1xi32, #tpu.memory_space<smem>>) -> (i32, i32, i32, i32) {
    %c0_i32 = arith.constant 0 : i32
    %c0_i32_0 = arith.constant 0 : i32
    %c0_i32_1 = arith.constant 0 : i32
    %c0_i32_2 = arith.constant 0 : i32
    return %arg0, %c0_i32, %c0_i32_0, %c0_i32_1 : i32, i32, i32, i32
  }
}

</mosaic_0001>

<bundles_post_ra>
// kernel: _criterion_losses.1
= control target key start
LH: loop header
LB: loop body
LE: loop exit
PB: predicated region body
PF: predicated region fallthrough
CT: control target
= control target key end

     0   :  { %v2479_v0 = vmov 0.0   ;;  %s5156_s0 = inlined_call_operand.<no memory space> [shape: s32[1], index: 0, kind: input, shape index: {}]   ;;  %s5157_s1 = inlined_call_operand.vmem [shape: f32[16,128], index: 1, kind: input, shape index: {}]   ;;  %s5158_s2 = inlined_call_operand.vmem [shape: s8[16,128], index: 2, kind: input, shape index: {}]   ;;  %s5159_s3 = inlined_call_operand.vmem [shape: f32[1,2,8,128], index: 3, kind: output, shape index: {}]  }
   0x1   :  { %81 = vst [vmem:[%s5159_s3] sm:$0xff] %v2479_v0  ;;  %82 = vst [vmem:[%s5159_s3 + $0x8] sm:$0xff] %v2479_v0  ;;  %p2052_p0 = scmp.ge.s32.totalorder %s5156_s0, 32768 }
   0x3   :  { %90 = sbr.rel (%p2052_p0) target bundleno = 275 (0x113), region = 17 }
   0xa   :  { %v2512_v1 = vld [vmem:[%s5157_s1] sm:$0xff]  ;;  %v2517_v2 = vld [vmem:[%s5157_s1 + $0x8] sm:$0xff]  ;;  %v2522_v3 = vld [vmem:[%s5157_s1 + $0x10] sm:$0xff] }
   0xb   :  { %v2527_v4 = vld [vmem:[%s5157_s1 + $0x18] sm:$0xff]  ;;  %v2532_v5 = vld [vmem:[%s5157_s1 + $0x20] sm:$0xff]  ;;  %v2537_v6 = vld [vmem:[%s5157_s1 + $0x28] sm:$0xff] }
   0xc   :  { %5260 = vst [vmem:[#allocation4_spill] sm:$0xff] %v2532_v5  ;;  %5261 = vst [vmem:[#allocation5_spill] sm:$0xff] %v2537_v6  ;;  %v2543_v8 = vld [vmem:[%s5157_s1 + $0x30] sm:$0xff]  ;;  %v2548_v9 = vld [vmem:[%s5157_s1 + $0x38] sm:$0xff] }
   0xd   :  { %5262 = vst [vmem:[#allocation6_spill] sm:$0xff] %v2543_v8  ;;  %5263 = vst [vmem:[#allocation7_spill] sm:$0xff] %v2548_v9  ;;  %v2553_v10 = vld [vmem:[%s5157_s1 + $0x40] sm:$0xff]  ;;  %v2559_v12 = vld [vmem:[%s5157_s1 + $0x48] sm:$0xff] }
   0xe   :  { %5264 = vst [vmem:[#allocation8_spill] sm:$0xff] %v2553_v10  ;;  %5265 = vst [vmem:[#allocation9_spill] sm:$0xff] %v2559_v12  ;;  %v2060_v13 = vld [vmem:[%s5158_s2] sm:$0xff]   ;;  %v2188_v16 = vld [vmem:[%s5158_s2 + $0x8] sm:$0xff]  }
   0xf   :  { %v2190_v19 = vld [vmem:[%s5158_s2 + $0x10] sm:$0xff]   ;;  %v2061_v22 = vunpack.c.0.s8 %v2060_v13  ;;  %v2062_v23 = vunpack.c.1.s8 %v2060_v13  ;;  %v2192_v24 = vld [vmem:[%s5158_s2 + $0x18] sm:$0xff]   ;;  %v2065_v27 = vunpack.c.2.s8 %v2060_v13  ;;  %v2066_v28 = vunpack.c.3.s8 %v2060_v13  ;;  %v2194_v31 = vld [vmem:[%s5158_s2 + $0x20] sm:$0xff]  }
  0x10   :  { %v2069_v29 = vunpack.c.0.s8 %v2188_v16  ;;  %v2070_v30 = vunpack.c.1.s8 %v2188_v16  ;;  %v2073_v32 = vunpack.c.2.s8 %v2188_v16  ;;  %v2074_v33 = vunpack.c.3.s8 %v2188_v16  ;;  %v2196_v36 = vld [vmem:[%s5158_s2 + $0x28] sm:$0xff]   ;;  %v2198_v41 = vld [vmem:[%s5158_s2 + $0x30] sm:$0xff]   ;;  %v2200_v46 = vld [vmem:[%s5158_s2 + $0x38] sm:$0xff]  }
  0x11   :  { %v2077_v34 = vunpack.c.0.s8 %v2190_v19  ;;  %v2078_v35 = vunpack.c.1.s8 %v2190_v19  ;;  %v2081_v37 = vunpack.c.2.s8 %v2190_v19  ;;  %v2082_v38 = vunpack.c.3.s8 %v2190_v19  ;;  %v2702_v26 = vld [vmem:[%s5157_s1 + $0x80] sm:$0xff]  ;;  %v2707_v25 = vld [vmem:[%s5157_s1 + $0x88] sm:$0xff]  ;;  %v2720_v15 = vld [vmem:[%s5157_s1 + $0x90] sm:$0xff] }
  0x12   :  { %v2085_v39 = vunpack.c.0.s8 %v2192_v24  ;;  %v2086_v40 = vunpack.c.1.s8 %v2192_v24  ;;  %v2089_v42 = vunpack.c.2.s8 %v2192_v24  ;;  %v2090_v43 = vunpack.c.3.s8 %v2192_v24  ;;  %v2725_v14 = vld [vmem:[%s5157_s1 + $0x98] sm:$0xff]  ;;  %v2730_v11 = vld [vmem:[%s5157_s1 + $0xa0] sm:$0xff] }
  0x13   :  { %v2093_v44 = vunpack.c.0.s8 %v2194_v31  ;;  %v2094_v45 = vunpack.c.1.s8 %v2194_v31  ;;  %v2097_v47 = vunpack.c.2.s8 %v2194_v31  ;;  %v2098_v48 = vunpack.c.3.s8 %v2194_v31 }
  0x14   :  { %v2101_v49 = vunpack.c.0.s8 %v2196_v36  ;;  %v2102_v50 = vunpack.c.1.s8 %v2196_v36  ;;  %v2105_v51 = vunpack.c.2.s8 %v2196_v36  ;;  %v2106_v52 = vunpack.c.3.s8 %v2196_v36 }
  0x15   :  { %v2109_v53 = vunpack.c.0.s8 %v2198_v41  ;;  %v2110_v54 = vunpack.c.1.s8 %v2198_v41  ;;  %v2113_v55 = vunpack.c.2.s8 %v2198_v41  ;;  %v2114_v56 = vunpack.c.3.s8 %v2198_v41 }
  0x16   :  { %v2117_v57 = vunpack.c.0.s8 %v2200_v46  ;;  %v2118_v58 = vunpack.c.1.s8 %v2200_v46  ;;  %v2121_v59 = vunpack.c.2.s8 %v2200_v46  ;;  %v2122_v60 = vunpack.c.3.s8 %v2200_v46 }
  0x17   :  { %v2593_v61 = vcvt.s32.f32 %v2061_v22  ;;  %v2595_v62 = vcvt.s32.f32 %v2062_v23  ;;  %v2597_v63 = vcvt.s32.f32 %v2065_v27  ;;  %v2599_v0 = vcvt.s32.f32 %v2066_v28 }
  0x18   :  { %v2601_v13 = vcvt.s32.f32 %v2069_v29  ;;  %v2603_v16 = vcvt.s32.f32 %v2070_v30  ;;  %v2605_v19 = vcvt.s32.f32 %v2073_v32  ;;  %v2607_v24 = vcvt.s32.f32 %v2074_v33 }
  0x19   :  { %5266 = vst [vmem:[#allocation10_spill] sm:$0xff] %v2593_v61  ;;  %5267 = vst [vmem:[#allocation11_spill] sm:$0xff] %v2595_v62  ;;  %v2609_v31 = vcvt.s32.f32 %v2077_v34  ;;  %v2611_v36 = vcvt.s32.f32 %v2078_v35  ;;  %v2613_v22 = vcvt.s32.f32 %v2081_v37  ;;  %v2615_v23 = vcvt.s32.f32 %v2082_v38 }
  0x1a   :  { %5268 = vst [vmem:[#allocation12_spill] sm:$0xff] %v2597_v63  ;;  %5269 = vst [vmem:[#allocation13_spill] sm:$0xff] %v2599_v0  ;;  %v2617_v27 = vcvt.s32.f32 %v2085_v39  ;;  %v2619_v28 = vcvt.s32.f32 %v2086_v40  ;;  %v2621_v29 = vcvt.s32.f32 %v2089_v42  ;;  %v2623_v30 = vcvt.s32.f32 %v2090_v43 }
  0x1b   :  { %5270 = vst [vmem:[#allocation14_spill] sm:$0xff] %v2601_v13  ;;  %5271 = vst [vmem:[#allocation15_spill] sm:$0xff] %v2603_v16  ;;  %v2625_v32 = vcvt.s32.f32 %v2093_v44  ;;  %v2627_v33 = vcvt.s32.f32 %v2094_v45  ;;  %v2629_v34 = vcvt.s32.f32 %v2097_v47  ;;  %v2631_v35 = vcvt.s32.f32 %v2098_v48  ;;  %v2656_v47 = vld [vmem:[%s5157_s1 + $0x50] sm:$0xff]  ;;  %v2661_v48 = vld [vmem:[%s5157_s1 + $0x58] sm:$0xff] }
  0x1c   :  { %5272 = vst [vmem:[#allocation16_spill] sm:$0xff] %v2605_v19  ;;  %5273 = vst [vmem:[#allocation17_spill] sm:$0xff] %v2607_v24  ;;  %v2633_v37 = vcvt.s32.f32 %v2101_v49  ;;  %v2635_v38 = vcvt.s32.f32 %v2102_v50  ;;  %v2637_v39 = vcvt.s32.f32 %v2105_v51  ;;  %v2639_v40 = vcvt.s32.f32 %v2106_v52 }
  0x1d   :  { %5274 = vst [vmem:[#allocation18_spill] sm:$0xff] %v2609_v31  ;;  %5275 = vst [vmem:[#allocation19_spill] sm:$0xff] %v2611_v36  ;;  %v2641_v41 = vcvt.s32.f32 %v2109_v53  ;;  %v2643_v42 = vcvt.s32.f32 %v2110_v54  ;;  %v2645_v43 = vcvt.s32.f32 %v2113_v55  ;;  %v2647_v44 = vcvt.s32.f32 %v2114_v56  ;;  %v2674_v53 = vld [vmem:[%s5157_s1 + $0x60] sm:$0xff]  ;;  %v2679_v54 = vld [vmem:[%s5157_s1 + $0x68] sm:$0xff] }
  0x1e   :  { %5276 = vst [vmem:[#allocation20_spill] sm:$0xff] %v2613_v22  ;;  %5277 = vst [vmem:[#allocation21_spill] sm:$0xff] %v2615_v23  ;;  %v2649_v45 = vcvt.s32.f32 %v2117_v57  ;;  %v2651_v46 = vcvt.s32.f32 %v2118_v58  ;;  %v2663_v49 = vcvt.s32.f32 %v2121_v59  ;;  %v2665_v50 = vcvt.s32.f32 %v2122_v60  ;;  %v2684_v55 = vld [vmem:[%s5157_s1 + $0x70] sm:$0xff]  ;;  %v2697_v60 = vld [vmem:[%s5157_s1 + $0x78] sm:$0xff] }
  0x1f   :  { %5278 = vst [vmem:[#allocation22_spill] sm:$0xff] %v2617_v27  ;;  %5279 = vst [vmem:[#allocation23_spill] sm:$0xff] %v2619_v28  ;;  %v219_v51 = vsub.f32 %v2512_v1, %v2593_v61  ;;  %v220_v52 = vsub.f32 %v2517_v2, %v2595_v62  ;;  %v221_v56 = vsub.f32 %v2522_v3, %v2597_v63  ;;  %v2771_v63 = vld [vmem:[%s5157_s1 + $0xc8] sm:$0xff]  ;;  %v2789_v61 = vld [vmem:[%s5157_s1 + $0xd8] sm:$0xff] }
  0x20   :  { %5280 = vst [vmem:[#allocation24_spill] sm:$0xff] %v2621_v29  ;;  %5281 = vst [vmem:[#allocation25_spill] sm:$0xff] %v2623_v30  ;;  %v222_v57 = vsub.f32 %v2527_v4, %v2599_v0  ;;  %v223_v58 = vsub.f32 %v2532_v5, %v2601_v13  ;;  %v224_v59 = vsub.f32 %v2537_v6, %v2603_v16  ;;  %v2748_v16 = vld [vmem:[%s5157_s1 + $0xb0] sm:$0xff]  ;;  %v2766_v0 = vld [vmem:[%s5157_s1 + $0xc0] sm:$0xff] }
  0x21   :  { %5282 = vst [vmem:[#allocation26_spill] sm:$0xff] %v2625_v32  ;;  %5283 = vst [vmem:[#allocation27_spill] sm:$0xff] %v2627_v33  ;;  %v225_v21 = vsub.f32 %v2543_v8, %v2605_v19  ;;  %v226_v20 = vsub.f32 %v2548_v9, %v2607_v24  ;;  %v227_v18 = vsub.f32 %v2553_v10, %v2609_v31  ;;  %v2743_v19 = vld [vmem:[%s5157_s1 + $0xa8] sm:$0xff]  ;;  %v2812_v9 = vld [vmem:[%s5157_s1 + $0xf0] sm:$0xff] }
  0x22   :  { %5284 = vst [vmem:[#allocation28_spill] sm:$0xff] %v2629_v34  ;;  %5285 = vst [vmem:[#allocation29_spill] sm:$0xff] %v2631_v35  ;;  %v228_v17 = vsub.f32 %v2559_v12, %v2611_v36  ;;  %v229_v7 = vsub.f32 %v2656_v47, %v2613_v22  ;;  %v230_v36 = vsub.f32 %v2661_v48, %v2615_v23  ;;  %v2753_v23 = vld [vmem:[%s5157_s1 + $0xb8] sm:$0xff]  ;;  %v2794_v12 = vld [vmem:[%s5157_s1 + $0xe0] sm:$0xff] }
  0x23   :  { %5286 = vst [vmem:[#allocation30_spill] sm:$0xff] %v2633_v37  ;;  %5287 = vst [vmem:[#allocation31_spill] sm:$0xff] %v2635_v38  ;;  %v231_v31 = vsub.f32 %v2674_v53, %v2617_v27  ;;  %v232_v24 = vsub.f32 %v2679_v54, %v2619_v28  ;;  %v233_v27 = vsub.f32 %v2684_v55, %v2621_v29  ;;  %v2817_v8 = vld [vmem:[%s5157_s1 + $0xf8] sm:$0xff] }
  0x24   :  { %5288 = vst [vmem:[#allocation32_spill] sm:$0xff] %v2637_v39  ;;  %5289 = vst [vmem:[#allocation33_spill] sm:$0xff] %v2639_v40  ;;  %v234_v28 = vsub.f32 %v2697_v60, %v2623_v30  ;;  %v235_v22 = vsub.f32 %v2702_v26, %v2625_v32  ;;  %v236_v13 = vsub.f32 %v2707_v25, %v2627_v33  ;;  %v2776_v30 = vld [vmem:[%s5157_s1 + $0xd0] sm:$0xff] }
  0x25   :  { %5290 = vst [vmem:[#allocation34_spill] sm:$0xff] %v2641_v41  ;;  %5291 = vst [vmem:[#allocation35_spill] sm:$0xff] %v2643_v42  ;;  %v237_v32 = vsub.f32 %v2720_v15, %v2629_v34  ;;  %v238_v33 = vsub.f32 %v2725_v14, %v2631_v35  ;;  %v239_v29 = vsub.f32 %v2730_v11, %v2633_v37  ;;  %v2799_v35 = vld [vmem:[%s5157_s1 + $0xe8] sm:$0xff] }
  0x26   :  { %5292 = vst [vmem:[#allocation36_spill] sm:$0xff] %v2645_v43  ;;  %5293 = vst [vmem:[#allocation37_spill] sm:$0xff] %v2647_v44  ;;  %v240_v62 = vsub.f32 %v2743_v19, %v2635_v38  ;;  %v241_v37 = vsub.f32 %v2748_v16, %v2637_v39  ;;  %v242_v38 = vsub.f32 %v2753_v23, %v2639_v40 }
  0x27   :  { %5294 = vst [vmem:[#allocation38_spill] sm:$0xff] %v2649_v45  ;;  %5295 = vst [vmem:[#allocation39_spill] sm:$0xff] %v2651_v46  ;;  %v243_v34 = vsub.f32 %v2766_v0, %v2641_v41  ;;  %v244_v10 = vsub.f32 %v2771_v63, %v2643_v42  ;;  %v245_v39 = vsub.f32 %v2776_v30, %v2645_v43 }
  0x28   :  { %5296 = vst [vmem:[#allocation40_spill] sm:$0xff] %v2663_v49  ;;  %5297 = vst [vmem:[#allocation41_spill] sm:$0xff] %v2665_v50  ;;  %v246_v40 = vsub.f32 %v2789_v61, %v2647_v44  ;;  %v247_v41 = vsub.f32 %v2794_v12, %v2649_v45  ;;  %v248_v42 = vsub.f32 %v2799_v35, %v2651_v46 }
  0x29   :  { %5298 = vst [vmem:[#allocation42_spill] sm:$0xff] %v2771_v63  ;;  %5299 = vst [vmem:[#allocation43_spill] sm:$0xff] %v2776_v30  ;;  %v2829_v6 = vsub.f32 %v2812_v9, %v2663_v49  ;;  %v2833_v63 = vsub.f32 %v2817_v8, %v2665_v50  ;;  %v2835_v5 = vmul.f32 %v219_v51, %v219_v51 }
  0x2a   :  { %5300 = vst [vmem:[#allocation44_spill] sm:$0xff] %v2794_v12  ;;  %v2837_v43 = vmul.f32 %v220_v52, %v220_v52  ;;  %v2839_v30 = vmul.f32 %v221_v56, %v221_v56  ;;  %v2841_v44 = vmul.f32 %v222_v57, %v222_v57  ;;  %v2843_v45 = vmul.f32 %v223_v58, %v223_v58 }
  0x2b   :  { %5301 = vst [vmem:[#allocation45_spill] sm:$0xff] %v2829_v6  ;;  %5302 = vst [vmem:[#allocation46_spill] sm:$0xff] %v2833_v63  ;;  %v2845_v12 = vmul.f32 %v224_v59, %v224_v59  ;;  %v2847_v46 = vmul.f32 %v225_v21, %v225_v21  ;;  %v2849_v49 = vmul.f32 %v226_v20, %v226_v20 }
  0x2c   :  { %5303 = vst [vmem:[#allocation47_spill] sm:$0xff] %v2835_v5  ;;  %5304 = vst [vmem:[#allocation48_spill] sm:$0xff] %v2837_v43  ;;  %v2851_v6 = vmul.f32 %v227_v18, %v227_v18  ;;  %v2853_v50 = vmul.f32 %v228_v17, %v228_v17  ;;  %v2855_v51 = vmul.f32 %v229_v7, %v229_v7 }
  0x2d   :  { %5305 = vst [vmem:[#allocation49_spill] sm:$0xff] %v2839_v30  ;;  %5306 = vst [vmem:[#allocation50_spill] sm:$0xff] %v2841_v44  ;;  %v2857_v52 = vmul.f32 %v230_v36, %v230_v36  ;;  %v2859_v56 = vmul.f32 %v231_v31, %v231_v31  ;;  %v2861_v57 = vmul.f32 %v232_v24, %v232_v24 }
  0x2e   :  { %5307 = vst [vmem:[#allocation51_spill] sm:$0xff] %v2843_v45  ;;  %5308 = vst [vmem:[#allocation52_spill] sm:$0xff] %v2845_v12  ;;  %v2863_v58 = vmul.f32 %v233_v27, %v233_v27  ;;  %v2865_v59 = vmul.f32 %v234_v28, %v234_v28  ;;  %v2867_v21 = vmul.f32 %v235_v22, %v235_v22 }
  0x2f   :  { %5309 = vst [vmem:[#allocation53_spill] sm:$0xff] %v2847_v46  ;;  %5310 = vst [vmem:[#allocation54_spill] sm:$0xff] %v2849_v49  ;;  %v2869_v20 = vmul.f32 %v236_v13, %v236_v13  ;;  %v2871_v18 = vmul.f32 %v237_v32, %v237_v32  ;;  %v2873_v17 = vmul.f32 %v238_v33, %v238_v33  ;;  %v293_v32 = vmax.f32 %v2656_v47, 1e-07 }
  0x30   :  { %5311 = vst [vmem:[#allocation55_spill] sm:$0xff] %v2851_v6  ;;  %5312 = vst [vmem:[#allocation56_spill] sm:$0xff] %v2853_v50  ;;  %v2875_v7 = vmul.f32 %v239_v29, %v239_v29  ;;  %v2877_v36 = vmul.f32 %v240_v62, %v240_v62  ;;  %v2879_v31 = vmul.f32 %v241_v37, %v241_v37  ;;  %v294_v33 = vmax.f32 %v2661_v48, 1e-07 }
  0x31   :  { %5313 = vst [vmem:[#allocation57_spill] sm:$0xff] %v2855_v51  ;;  %5314 = vst [vmem:[#allocation58_spill] sm:$0xff] %v2857_v52  ;;  %v2881_v24 = vmul.f32 %v242_v38, %v242_v38  ;;  %v2883_v27 = vmul.f32 %v243_v34, %v243_v34  ;;  %v2885_v28 = vmul.f32 %v244_v10, %v244_v10  ;;  %v295_v62 = vmax.f32 %v2674_v53, 1e-07 }
  0x32   :  { %5315 = vst [vmem:[#allocation59_spill] sm:$0xff] %v2859_v56  ;;  %5316 = vst [vmem:[#allocation60_spill] sm:$0xff] %v2861_v57  ;;  %v2887_v22 = vmul.f32 %v245_v39, %v245_v39  ;;  %v2889_v13 = vmul.f32 %v246_v40, %v246_v40  ;;  %v2893_v29 = vmul.f32 %v247_v41, %v247_v41  ;;  %v296_v37 = vmax.f32 %v2679_v54, 1e-07 }
  0x33   :  { %5317 = vst [vmem:[#allocation61_spill] sm:$0xff] %v2863_v58  ;;  %5318 = vst [vmem:[#allocation62_spill] sm:$0xff] %v2865_v59  ;;  %v297_v38 = vmax.f32 %v2684_v55, 1e-07  ;;  %v2898_v34 = vmul.f32 %v248_v42, %v248_v42  ;;  %v298_v10 = vmax.f32 %v2697_v60, 1e-07 }
  0x34   :  { %5319 = vst [vmem:[#allocation63_spill] sm:$0xff] %v2867_v21  ;;  %5320 = vst [vmem:[#allocation64_spill] sm:$0xff] %v2869_v20  ;;  %v299_v39 = vmax.f32 %v2702_v26, 1e-07  ;;  %v5333_v40 = vmax.f32 %v2512_v1, 1e-07 }
  0x35   :  { %5321 = vst [vmem:[#allocation65_spill] sm:$0xff] %v2871_v18  ;;  %5322 = vst [vmem:[#allocation66_spill] sm:$0xff] %v2873_v17  ;;  %v300_v47 = vmax.f32 %v2707_v25, 1e-07  ;;  %v301_v41 = vmax.f32 %v2720_v15, 1e-07 }
  0x36   :  { %5323 = vst [vmem:[#allocation67_spill] sm:$0xff] %v2875_v7  ;;  %5324 = vst [vmem:[#allocation68_spill] sm:$0xff] %v2877_v36  ;;  %v2904_v63 = vmin.f32 %v5333_v40, 0.9999999  ;;  %v5334_v48 = vmax.f32 %v2517_v2, 1e-07 }
  0x37   :  { %5325 = vst [vmem:[#allocation69_spill] sm:$0xff] %v2879_v31  ;;  %5326 = vst [vmem:[#allocation70_spill] sm:$0xff] %v2881_v24  ;;  %v302_v42 = vmax.f32 %v2725_v14, 1e-07  ;;  %v303_v55 = vmax.f32 %v2730_v11, 1e-07 }
  0x38   :  { %5327 = vst [vmem:[#allocation71_spill] sm:$0xff] %v2883_v27  ;;  %5328 = vst [vmem:[#allocation72_spill] sm:$0xff] %v2885_v28  ;;  %v2910_v53 = vmin.f32 %v5334_v48, 0.9999999  ;;  %v5335_v60 = vmax.f32 %v2522_v3, 1e-07  ;;  %2218 = vlog2.f32 %v2904_v63 }
  0x39   :  { %5329 = vst [vmem:[#allocation73_spill] sm:$0xff] %v2887_v22  ;;  %5330 = vst [vmem:[#allocation74_spill] sm:$0xff] %v2889_v13  ;;  %v304_v1 = vmax.f32 %v2743_v19, 1e-07  ;;  %v305_v25 = vmax.f32 %v2748_v16, 1e-07 }
  0x3a   :  { %5331 = vst [vmem:[#allocation75_spill] sm:$0xff] %v2893_v29  ;;  %5332 = vst [vmem:[#allocation76_spill] sm:$0xff] %v2898_v34  ;;  %v2916_v26 = vmin.f32 %v5335_v60, 0.9999999  ;;  %v5336_v15 = vmax.f32 %v2527_v4, 1e-07  ;;  %2220 = vlog2.f32 %v2910_v53 }
  0x3b   :  { %v306_v40 = vmax.f32 %v2753_v23, 1e-07  ;;  %v307_v14 = vmax.f32 %v2766_v0, 1e-07  ;;  %v5337_v11 = vld [vmem:[#allocation4_spill] sm:$0xff]  ;;  %v5339_v60 = vld [vmem:[#allocation42_spill] sm:$0xff] }
  0x3c   :  { %v318_v2 = vmin.f32 %v5336_v15, 0.9999999  ;;  %v5338_v48 = vmax.f32 %v5337_v11, 1e-07  ;;  %2222 = vlog2.f32 %v2916_v26  ;;  %v308_v54 = vmax.f32 %v5339_v60, 1e-07 }
  0x3d   :  { %v5340_v34 = vld [vmem:[#allocation43_spill] sm:$0xff]  ;;  %v5341_v29 = vld [vmem:[#allocation5_spill] sm:$0xff]  ;;  %v310_v4 = vmax.f32 %v2789_v61, 1e-07  ;;  %v5343_v15 = vld [vmem:[#allocation44_spill] sm:$0xff] }
  0x3e   :  { %v319_v3 = vmin.f32 %v5338_v48, 0.9999999  ;;  %v309_v19 = vmax.f32 %v5340_v34, 1e-07  ;;  %v5342_v16 = vmax.f32 %v5341_v29, 1e-07  ;;  %2224 = vlog2.f32 %v318_v2 }
  0x3f   :  { %v311_v22 = vmax.f32 %v5343_v15, 1e-07  ;;  %v5344_v23 = vld [vmem:[#allocation6_spill] sm:$0xff]  ;;  %v312_v11 = vmax.f32 %v2799_v35, 1e-07  ;;  %v5346_v27 = vld [vmem:[#allocation7_spill] sm:$0xff] }
  0x40   :  { %v320_v13 = vmin.f32 %v5342_v16, 0.9999999  ;;  %v5345_v28 = vmax.f32 %v5344_v23, 1e-07  ;;  %2226 = vlog2.f32 %v319_v3  ;;  %v313_v48 = vmax.f32 %v2812_v9, 1e-07 }
  0x41   :  { %v5347_v60 = vmax.f32 %v5346_v27, 1e-07  ;;  %v314_v29 = vmax.f32 %v2817_v8, 1e-07  ;;  %v5348_v34 = vld [vmem:[#allocation8_spill] sm:$0xff]  ;;  %v5350_v61 = vld [vmem:[#allocation9_spill] sm:$0xff] }
  0x42   :  { %v321_v0 = vmin.f32 %v5345_v28, 0.9999999  ;;  %2228 = vlog2.f32 %v320_v13  ;;  %v5349_v16 = vmax.f32 %v5348_v34, 1e-07  ;;  %v5351_v36 = vmax.f32 %v5350_v61, 1e-07  ;;  %v2219_v34 = vpop.eup %2218 }
  0x43   :  { %v322_v24 = vmin.f32 %v5347_v60, 0.9999999  ;;  %v325_v23 = vmin.f32 %v293_v32, 0.9999999  ;;  %v326_v28 = vmin.f32 %v294_v33, 0.9999999 }
  0x44   :  { %v323_v31 = vmin.f32 %v5349_v16, 0.9999999  ;;  %v324_v15 = vmin.f32 %v5351_v36, 0.9999999  ;;  %2230 = vlog2.f32 %v321_v0  ;;  %v327_v7 = vmin.f32 %v295_v62, 0.9999999  ;;  %v2221_v33 = vpop.eup %2220 }
  0x45   :  { %2232 = vlog2.f32 %v322_v24  ;;  %v328_v35 = vmin.f32 %v296_v37, 0.9999999  ;;  %v329_v17 = vmin.f32 %v297_v38, 0.9999999  ;;  %v2946_v9 = vmin.f32 %v298_v10, 0.9999999 }
  0x46   :  { %2234 = vlog2.f32 %v323_v31  ;;  %v331_v27 = vmin.f32 %v299_v39, 0.9999999  ;;  %v2948_v60 = vmin.f32 %v300_v47, 0.9999999  ;;  %v2950_v8 = vmin.f32 %v301_v41, 0.9999999  ;;  %v2223_v10 = vpop.eup %2222 }
  0x47   :  { %2236 = vlog2.f32 %v324_v15  ;;  %v2952_v16 = vmin.f32 %v302_v42, 0.9999999  ;;  %v2954_v36 = vmin.f32 %v303_v55, 0.9999999  ;;  %v2956_v32 = vmin.f32 %v304_v1, 0.9999999 }
  0x48   :  { %2238 = vlog2.f32 %v325_v23  ;;  %v2958_v62 = vmin.f32 %v305_v25, 0.9999999  ;;  %v2960_v37 = vmin.f32 %v306_v40, 0.9999999  ;;  %v2962_v38 = vmin.f32 %v307_v14, 0.9999999  ;;  %v2225_v42 = vpop.eup %2224 }
  0x49   :  { %2240 = vlog2.f32 %v326_v28  ;;  %v2964_v39 = vmin.f32 %v308_v54, 0.9999999  ;;  %v2966_v47 = vmin.f32 %v309_v19, 0.9999999  ;;  %v2968_v41 = vmin.f32 %v310_v4, 0.9999999 }
  0x4a   :  { %2242 = vlog2.f32 %v327_v7  ;;  %v2970_v55 = vmin.f32 %v311_v22, 0.9999999  ;;  %v2972_v1 = vmin.f32 %v312_v11, 0.9999999  ;;  %v2974_v25 = vmin.f32 %v313_v48, 0.9999999  ;;  %v2227_v40 = vpop.eup %2226 }
  0x4b   :  { %2244 = vlog2.f32 %v328_v35  ;;  %v2976_v14 = vmin.f32 %v314_v29, 0.9999999  ;;  %v2979_v54 = vsub.f32 0.0, %v2904_v63  ;;  %v2982_v19 = vsub.f32 0.0, %v2910_v53 }
  0x4c   :  { %2246 = vlog2.f32 %v329_v17  ;;  %v2229_v4 = vpop.eup %2228  ;;  %v2986_v22 = vsub.f32 0.0, %v2916_v26  ;;  %v2988_v11 = vsub.f32 0.0, %v318_v2  ;;  %v2990_v48 = vsub.f32 0.0, %v319_v3 }
  0x4d   :  { %2248 = vlog2.f32 %v2946_v9  ;;  %v2992_v29 = vmul.f32 0.6931472, %v2219_v34  ;;  %v2994_v18 = vsub.f32 0.0, %v320_v13  ;;  %v2996_v63 = vsub.f32 0.0, %v321_v0 }
  0x4e   :  { %v2231_v61 = vpop.eup %2230  ;;  %2250 = vlog2.f32 %v331_v27  ;;  %v2998_v20 = vmul.f32 0.6931472, %v2221_v33  ;;  %v3001_v21 = vsub.f32 0.0, %v322_v24  ;;  %v3003_v26 = vsub.f32 0.0, %v323_v31 }
  0x4f   :  { %v2233_v53 = vpop.eup %2232  ;;  %2252 = vlog2.f32 %v2948_v60  ;;  %v3005_v3 = vmul.f32 0.6931472, %v2223_v10  ;;  %v3008_v34 = vsub.f32 0.0, %v324_v15  ;;  %v3010_v13 = vsub.f32 0.0, %v325_v23 }
  0x50   :  { %v2235_v2 = vpop.eup %2234  ;;  %2254 = vlog2.f32 %v2950_v8  ;;  %v3012_v59 = vmul.f32 0.6931472, %v2225_v42  ;;  %v3015_v33 = vsub.f32 0.0, %v326_v28  ;;  %v3017_v24 = vsub.f32 0.0, %v327_v7 }
  0x51   :  { %v2237_v0 = vpop.eup %2236  ;;  %2256 = vlog2.f32 %v2952_v16  ;;  %v3019_v58 = vmul.f32 0.6931472, %v2227_v40  ;;  %v3022_v10 = vsub.f32 0.0, %v328_v35  ;;  %v3024_v15 = vsub.f32 0.0, %v329_v17 }
  0x52   :  { %5352 = vst [vmem:[#allocation4_spill] sm:$0xff] %v3012_v59  ;;  %v2239_v31 = vpop.eup %2238  ;;  %2258 = vlog2.f32 %v2954_v36  ;;  %v3026_v57 = vmul.f32 0.6931472, %v2229_v4  ;;  %v3030_v42 = vsub.f32 0.0, %v2946_v9  ;;  %v3032_v28 = vsub.f32 0.0, %v331_v27 }
  0x53   :  { %5353 = vst [vmem:[#allocation42_spill] sm:$0xff] %v3019_v58  ;;  %v2241_v23 = vpop.eup %2240  ;;  %2260 = vlog2.f32 %v2956_v32  ;;  %v3034_v56 = vmul.f32 0.6931472, %v2231_v61  ;;  %v3038_v35 = vsub.f32 0.0, %v2948_v60  ;;  %v3041_v17 = vsub.f32 0.0, %v2950_v8 }
  0x54   :  { %5354 = vst [vmem:[#allocation43_spill] sm:$0xff] %v3026_v57  ;;  %v2243_v7 = vpop.eup %2242  ;;  %2262 = vlog2.f32 %v2958_v62  ;;  %v3043_v4 = vmul.f32 0.6931472, %v2233_v53  ;;  %v3047_v9 = vsub.f32 0.0, %v2952_v16  ;;  %v3050_v27 = vsub.f32 0.0, %v2954_v36 }
  0x55   :  { %5355 = vst [vmem:[#allocation5_spill] sm:$0xff] %v3034_v56  ;;  %v2245_v40 = vpop.eup %2244  ;;  %2264 = vlog2.f32 %v2960_v37  ;;  %v3052_v52 = vmul.f32 0.6931472, %v2235_v2  ;;  %v3056_v60 = vsub.f32 0.0, %v2956_v32  ;;  %v3059_v8 = vsub.f32 0.0, %v2958_v62 }
  0x56   :  { %5356 = vst [vmem:[#allocation44_spill] sm:$0xff] %v3043_v4  ;;  %v2247_v61 = vpop.eup %2246  ;;  %2266 = vlog2.f32 %v2962_v38  ;;  %v3061_v51 = vmul.f32 0.6931472, %v2237_v0  ;;  %v3065_v16 = vsub.f32 0.0, %v2960_v37  ;;  %v3068_v36 = vsub.f32 0.0, %v2962_v38 }
  0x57   :  { %5357 = vst [vmem:[#allocation6_spill] sm:$0xff] %v3052_v52  ;;  %v2249_v53 = vpop.eup %2248  ;;  %2268 = vlog2.f32 %v2964_v39  ;;  %v3070_v50 = vmul.f32 0.6931472, %v2239_v31  ;;  %v3074_v32 = vsub.f32 0.0, %v2964_v39  ;;  %v3077_v62 = vsub.f32 0.0, %v2966_v47 }
  0x58   :  { %5358 = vst [vmem:[#allocation7_spill] sm:$0xff] %v3061_v51  ;;  %v2251_v2 = vpop.eup %2250  ;;  %2270 = vlog2.f32 %v2966_v47  ;;  %v3079_v6 = vmul.f32 0.6931472, %v2241_v23  ;;  %v3083_v37 = vsub.f32 0.0, %v2968_v41  ;;  %v446_v38 = vmul.f32 -0.5, %v2979_v54 }
  0x59   :  { %5359 = vst [vmem:[#allocation8_spill] sm:$0xff] %v3070_v50  ;;  %v2253_v0 = vpop.eup %2252  ;;  %2272 = vlog2.f32 %v2968_v41  ;;  %v3088_v49 = vsub.f32 0.0, %v2970_v55  ;;  %v3091_v39 = vsub.f32 0.0, %v2972_v1  ;;  %v443_v47 = vadd.f32 1.0, %v2979_v54 }
  0x5a   :  { %5360 = vst [vmem:[#allocation9_spill] sm:$0xff] %v3079_v6  ;;  %v2255_v31 = vpop.eup %2254  ;;  %2274 = vlog2.f32 %v2970_v55  ;;  %v3094_v46 = vmul.f32 0.6931472, %v2243_v7  ;;  %v452_v41 = vadd.f32 1.0, %v2982_v19  ;;  %v455_v12 = vmul.f32 -0.5, %v2982_v19 }
  0x5b   :  { %v2257_v23 = vpop.eup %2256  ;;  %2276 = vlog2.f32 %v2972_v1  ;;  %v3101_v55 = vsub.f32 0.0, %v2974_v25  ;;  %v3104_v44 = vsub.f32 0.0, %v2976_v14  ;;  %v461_v30 = vadd.f32 1.0, %v2986_v22 }
  0x5c   :  { %5361 = vst [vmem:[#allocation77_spill] sm:$0xff] %v3094_v46  ;;  %v2259_v45 = vpop.eup %2258  ;;  %2278 = vlog2.f32 %v2974_v25  ;;  %v3107_v7 = vmul.f32 0.6931472, %v2245_v40  ;;  %v447_v1 = vadd.f32 1.0, %v446_v38  ;;  %v470_v5 = vadd.f32 1.0, %v2988_v11 }
  0x5d   :  { %v2261_v43 = vpop.eup %2260  ;;  %2280 = vlog2.f32 %v2976_v14  ;;  %v3111_v6 = vmul.f32 0.6931472, %v2247_v61  ;;  %v464_v25 = vmul.f32 -0.5, %v2986_v22  ;;  %v479_v50 = vadd.f32 1.0, %v2990_v48 }
  0x5e   :  { %5362 = vst [vmem:[#allocation78_spill] sm:$0xff] %v3107_v7  ;;  %v2263_v46 = vpop.eup %2262  ;;  %2282 = vlog2.f32 %v443_v47  ;;  %v3115_v52 = vmul.f32 0.6931472, %v2249_v53  ;;  %v449_v4 = vand.u32 2147483647, %v2979_v54  ;;  %v456_v40 = vadd.f32 1.0, %v455_v12 }
  0x5f   :  { %5363 = vst [vmem:[#allocation79_spill] sm:$0xff] %v3111_v6  ;;  %v2265_v51 = vpop.eup %2264  ;;  %2284 = vlog2.f32 %v452_v41  ;;  %v3118_v14 = vmul.f32 0.6931472, %v2251_v2  ;;  %v3120_v38 = vmul.f32 0.6931472, %v2253_v0  ;;  %v3124_v6 = vmul.f32 %v447_v1, %v2979_v54 }
  0x60   :  { %5364 = vst [vmem:[#allocation80_spill] sm:$0xff] %v3115_v52  ;;  %v2267_v7 = vpop.eup %2266  ;;  %v458_v61 = vand.u32 2147483647, %v2982_v19  ;;  %2286 = vlog2.f32 %v461_v30  ;;  %v473_v53 = vmul.f32 -0.5, %v2988_v11  ;;  %v488_v52 = vadd.f32 1.0, %v2994_v18 }
  0x61   :  { %5365 = vst [vmem:[#allocation81_spill] sm:$0xff] %v3118_v14  ;;  %5366 = vst [vmem:[#allocation82_spill] sm:$0xff] %v3120_v38  ;;  %v2269_v47 = vpop.eup %2268  ;;  %2288 = vlog2.f32 %v470_v5  ;;  %v3128_v41 = vmul.f32 0.6931472, %v2255_v31  ;;  %v3130_v12 = vmul.f32 0.6931472, %v2257_v23  ;;  %v3135_v30 = vmul.f32 %v456_v40, %v2982_v19 }
  0x62   :  { %v2271_v56 = vpop.eup %2270  ;;  %v465_v2 = vadd.f32 1.0, %v464_v25  ;;  %2290 = vlog2.f32 %v479_v50  ;;  %v3132_v38 = vmul.f32 0.6931472, %v2259_v45  ;;  %v467_v54 = vand.u32 2147483647, %v2986_v22 }
  0x63   :  { %5367 = vst [vmem:[#allocation83_spill] sm:$0xff] %v3128_v41  ;;  %5368 = vst [vmem:[#allocation84_spill] sm:$0xff] %v3130_v12  ;;  %v2273_v0 = vpop.eup %2272  ;;  %v482_v5 = vmul.f32 -0.5, %v2990_v48  ;;  %v3139_v14 = vmul.f32 0.6931472, %v2261_v43  ;;  %v491_v23 = vmul.f32 -0.5, %v2994_v18  ;;  %2292 = vlog2.f32 %v488_v52 }
  0x64   :  { %5369 = vst [vmem:[#allocation85_spill] sm:$0xff] %v3132_v38  ;;  %v2275_v1 = vpop.eup %2274  ;;  %v476_v31 = vand.u32 2147483647, %v2988_v11  ;;  %v497_v25 = vadd.f32 1.0, %v2996_v63  ;;  %v3144_v12 = vmul.f32 0.6931472, %v2263_v46  ;;  %v466_v46 = vmul.f32 %v465_v2, %v2986_v22 }
  0x65   :  { %5370 = vst [vmem:[#allocation86_spill] sm:$0xff] %v3139_v14  ;;  %v2277_v50 = vpop.eup %2276  ;;  %vm3146_vm0 = vcmp.lt.f32.partialorder %v449_v4, 0.0004427343  ;;  %v474_v19 = vadd.f32 1.0, %v473_v53  ;;  %v485_v40 = vand.u32 2147483647, %v2990_v48 }
  0x66   :  { %5371 = vst [vmem:[#allocation87_spill] sm:$0xff] %v3144_v12  ;;  %v2279_v38 = vpop.eup %2278  ;;  %v3151_v43 = vmul.f32 0.6931472, %v2265_v51  ;;  %v3153_v14 = vmul.f32 0.6931472, %v2267_v7  ;;  %v500_v4 = vmul.f32 -0.5, %v2996_v63  ;;  %2294 = vlog2.f32 %v497_v25 }
  0x67   :  { %vm3155_vm1 = vcmp.lt.f32.partialorder %v458_v61, 0.0004427343  ;;  %v2281_v12 = vpop.eup %2280  ;;  %v3161_v57 = vmul.f32 0.6931472, %v2269_v47  ;;  %v3163_v53 = vmul.f32 0.6931472, %v2271_v56 }
  0x68   :  { %5374 = vst [vmem:[#allocation88_spill] sm:$0xff] %v3151_v43  ;;  %5375 = vst [vmem:[#allocation89_spill] sm:$0xff] %v3153_v14  ;;  %vm3165_vm2 = vcmp.lt.f32.partialorder %v467_v54, 0.0004427343  ;;  %v483_v51 = vadd.f32 1.0, %v482_v5  ;;  %v506_v7 = vadd.f32 1.0, %v3001_v21  ;;  %v2283_v61 = vpop.eup %2282  ;;  %v475_v5 = vmul.f32 %v474_v19, %v2988_v11 }
  0x69   :  { %5378 = vst [vmem:[#allocation90_spill] sm:$0xff] %v3161_v57  ;;  %5379 = vst [vmem:[#allocation91_spill] sm:$0xff] %v3163_v53  ;;  %v3170_v14 = vmul.f32 0.6931472, %v2273_v0  ;;  %vm3172_vm3 = vcmp.lt.f32.partialorder %v476_v31, 0.0004427343  ;;  %v2285_v56 = vpop.eup %2284 }
  0x6a   :  { %v492_v22 = vadd.f32 1.0, %v491_v23  ;;  %v494_v47 = vand.u32 2147483647, %v2994_v18  ;;  %v3177_v2 = vmul.f32 0.6931472, %v2275_v1  ;;  %v2287_v0 = vpop.eup %2286  ;;  %v501_v31 = vadd.f32 1.0, %v500_v4 }
  0x6b   :  { %5382 = vst [vmem:[#allocation92_spill] sm:$0xff] %v3170_v14  ;;  %v3179_v54 = vmul.f32 0.6931472, %v2277_v50  ;;  %vm3182_vm4 = vcmp.lt.f32.partialorder %v485_v40, 0.0004427343  ;;  %v509_v23 = vmul.f32 -0.5, %v3001_v21  ;;  %v2289_v25 = vpop.eup %2288  ;;  %v484_v1 = vmul.f32 %v483_v51, %v2990_v48 }
  0x6c   :  { %5385 = vst [vmem:[#allocation93_spill] sm:$0xff] %v3177_v2  ;;  %v503_v14 = vand.u32 2147483647, %v2996_v63  ;;  %v515_v57 = vadd.f32 1.0, %v3003_v26  ;;  %v3189_v58 = vmul.f32 0.6931472, %v2279_v38  ;;  %2296 = vlog2.f32 %v506_v7  ;;  %v2291_v50 = vpop.eup %2290 }
  0x6d   :  { %5386 = vst [vmem:[#allocation94_spill] sm:$0xff] %v3179_v54  ;;  %v524_v11 = vadd.f32 1.0, %v3008_v34  ;;  %v445_v19 = vmul.f32 0.6931472, %v2283_v61  ;;  %v493_v40 = vmul.f32 %v492_v22, %v2994_v18  ;;  %vm3194_vm5 = vcmp.lt.f32.partialorder %v494_v47, 0.0004427343  ;;  %v2293_v22 = vpop.eup %2292 }
  0x6e   :  { %5389 = vst [vmem:[#allocation95_spill] sm:$0xff] %v3189_v58  ;;  %v518_v54 = vmul.f32 -0.5, %v3003_v26  ;;  %v3199_v2 = vmul.f32 0.6931472, %v2281_v12  ;;  %v454_v59 = vmul.f32 0.6931472, %v2285_v56  ;;  %v3205_v48 = vstv %s5156_s0 }
  0x6f   :  { %v512_v38 = vand.u32 2147483647, %v3001_v21  ;;  %5393 = vst [vmem:[#allocation97_spill] sm:$0xff] %v3205_v48  ;;  %v463_v51 = vmul.f32 0.6931472, %v2287_v0  ;;  %v502_v7 = vmul.f32 %v501_v31, %v2996_v63  ;;  %v510_v61 = vadd.f32 1.0, %v509_v23 }
  0x70   :  { %5392 = vst [vmem:[#allocation96_spill] sm:$0xff] %v3199_v2  ;;  %vm3208_vm6 = vcmp.lt.f32.partialorder %v503_v14, 0.0004427343  ;;  %2298 = vlog2.f32 %v515_v57  ;;  %v472_v12 = vmul.f32 0.6931472, %v2289_v25  ;;  %v533_v56 = vadd.f32 1.0, %v3010_v13 }
  0x71   :  { %v481_v47 = vmul.f32 0.6931472, %v2291_v50  ;;  %2300 = vlog2.f32 %v524_v11  ;;  %v3216_v2 = vsel %vm3146_vm0, %v3124_v6, %v445_v19  ;;  %v519_v0 = vadd.f32 1.0, %v518_v54  ;;  %v2295_v6 = vpop.eup %2294 }
  0x72   :  { %v521_v63 = vand.u32 2147483647, %v3003_v26  ;;  %v527_v14 = vmul.f32 -0.5, %v3008_v34  ;;  %v3223_v57 = vsel %vm3155_vm1, %v3135_v30, %v454_v59  ;;  %vm3225_vm7 = vcmp.lt.f32.partialorder %v512_v38, 0.0004427343 }
  0x73   :  { %v536_v23 = vmul.f32 -0.5, %v3010_v13  ;;  %v542_v45 = vadd.f32 1.0, %v3015_v33  ;;  %v3233_v54 = vsel %vm3165_vm2, %v466_v46, %v463_v51  ;;  %v490_v25 = vmul.f32 0.6931472, %v2293_v22 }
  0x74   :  { %v511_v11 = vmul.f32 %v510_v61, %v3001_v21  ;;  %v530_v41 = vand.u32 2147483647, %v3008_v34  ;;  %v3239_v59 = vsel %vm3172_vm3, %v475_v5, %v472_v12  ;;  %v3243_v30 = vsel %vm3182_vm4, %v484_v1, %v481_v47 }
  0x75   :  { %2302 = vlog2.f32 %v533_v56  ;;  %v551_v50 = vadd.f32 1.0, %v3017_v24  ;;  %v520_v52 = vmul.f32 %v519_v0, %v3003_v26  ;;  %vm3247_vm8 = vcmp.lt.f32.partialorder %v521_v63, 0.0004427343 }
  0x76   :  { %v528_v21 = vadd.f32 1.0, %v527_v14  ;;  %v545_v19 = vmul.f32 -0.5, %v3015_v33  ;;  %v560_v43 = vadd.f32 1.0, %v3022_v10  ;;  %v2297_v5 = vpop.eup %2296  ;;  %v499_v38 = vmul.f32 0.6931472, %v2295_v6 }
  0x77   :  { %v537_v51 = vadd.f32 1.0, %v536_v23  ;;  %v539_v53 = vand.u32 2147483647, %v3010_v13  ;;  %2304 = vlog2.f32 %v542_v45  ;;  %v3256_v1 = vsel %vm3194_vm5, %v493_v40, %v490_v25 }
  0x78   :  { %vm3258_vm9 = vcmp.lt.f32.partialorder %v530_v41, 0.0004427343  ;;  %v554_v61 = vmul.f32 -0.5, %v3017_v24  ;;  %v569_v22 = vadd.f32 1.0, %v3024_v15  ;;  %v548_v12 = vand.u32 2147483647, %v3015_v33 }
  0x79   :  { %2306 = vlog2.f32 %v551_v50  ;;  %v563_v47 = vmul.f32 -0.5, %v3022_v10  ;;  %v578_v56 = vadd.f32 1.0, %v3030_v42  ;;  %v508_v63 = vmul.f32 0.6931472, %v2297_v5 }
  0x7a   :  { %v2299_v0 = vpop.eup %2298  ;;  %v529_v40 = vmul.f32 %v528_v21, %v3008_v34  ;;  %v546_v4 = vadd.f32 1.0, %v545_v19  ;;  %2308 = vlog2.f32 %v560_v43  ;;  %v3270_v23 = vsel %vm3208_vm6, %v502_v7, %v499_v38 }
  0x7b   :  { %v2301_v14 = vpop.eup %2300  ;;  %v538_v45 = vmul.f32 %v537_v51, %v3010_v13  ;;  %vm3273_vm10 = vcmp.lt.f32.partialorder %v539_v53, 0.0004427343  ;;  %v572_v25 = vmul.f32 -0.5, %v3024_v15  ;;  %v555_v41 = vadd.f32 1.0, %v554_v61 }
  0x7c   :  { %v557_v50 = vand.u32 2147483647, %v3017_v24  ;;  %v566_v34 = vand.u32 2147483647, %v3022_v10  ;;  %2310 = vlog2.f32 %v569_v22  ;;  %v517_v21 = vmul.f32 0.6931472, %v2299_v0 }
  0x7d   :  { %vm3280_vm11 = vcmp.lt.f32.partialorder %v548_v12, 0.0004427343  ;;  %v564_v7 = vadd.f32 1.0, %v563_v47  ;;  %2312 = vlog2.f32 %v578_v56  ;;  %v3286_v13 = vsel %vm3225_vm7, %v511_v11, %v508_v63 }
  0x7e   :  { %v526_v18 = vmul.f32 0.6931472, %v2301_v14  ;;  %v547_v43 = vmul.f32 %v546_v4, %v3015_v33  ;;  %v587_v5 = vadd.f32 1.0, %v3032_v28  ;;  %v573_v51 = vadd.f32 1.0, %v572_v25 }
  0x7f   :  { %v2303_v38 = vpop.eup %2302  ;;  %v575_v53 = vand.u32 2147483647, %v3024_v15  ;;  %v581_v61 = vmul.f32 -0.5, %v3030_v42  ;;  %v596_v22 = vadd.f32 1.0, %v3038_v35  ;;  %v556_v12 = vmul.f32 %v555_v41, %v3017_v24 }
  0x80   :  { %vm3294_vm12 = vcmp.lt.f32.partialorder %v557_v50, 0.0004427343  ;;  %vm3298_vm13 = vcmp.lt.f32.partialorder %v566_v34, 0.0004427343  ;;  %v605_v33 = vadd.f32 1.0, %v3041_v17  ;;  %v3305_v56 = vsel %vm3247_vm8, %v520_v52, %v517_v21 }
  0x81   :  { %v2305_v11 = vpop.eup %2304  ;;  %v565_v0 = vmul.f32 %v564_v7, %v3022_v10  ;;  %v584_v63 = vand.u32 2147483647, %v3030_v42  ;;  %v590_v24 = vmul.f32 -0.5, %v3032_v28  ;;  %v3312_v4 = vsel %vm3258_vm9, %v529_v40, %v526_v18 }
  0x82   :  { %v535_v14 = vmul.f32 0.6931472, %v2303_v38  ;;  %2314 = vlog2.f32 %v587_v5  ;;  %v599_v25 = vmul.f32 -0.5, %v3038_v35  ;;  %v574_v50 = vmul.f32 %v573_v51, %v3024_v15 }
  0x83   :  { %v2307_v41 = vpop.eup %2306  ;;  %vm3316_vm14 = vcmp.lt.f32.partialorder %v575_v53, 0.0004427343  ;;  %v582_v10 = vadd.f32 1.0, %v581_v61  ;;  %2316 = vlog2.f32 %v596_v22  ;;  %v544_v34 = vmul.f32 0.6931472, %v2305_v11 }
  0x84   :  { %v2309_v46 = vpop.eup %2308  ;;  %v593_v21 = vand.u32 2147483647, %v3032_v28  ;;  %2318 = vlog2.f32 %v605_v33  ;;  %v614_v26 = vadd.f32 1.0, %v3047_v9  ;;  %vm3322_vm15 = vcmp.lt.f32.partialorder %v584_v63, 0.0004427343 }
  0x85   :  { %v591_v7 = vadd.f32 1.0, %v590_v24  ;;  %v608_v15 = vmul.f32 -0.5, %v3041_v17  ;;  %v623_v18 = vadd.f32 1.0, %v3050_v27  ;;  %v3330_v38 = vsel %vm3273_vm10, %v538_v45, %v535_v14 }
  0x86   :  { %v2311_v5 = vpop.eup %2310  ;;  %v553_v51 = vmul.f32 0.6931472, %v2307_v41  ;;  %v600_v53 = vadd.f32 1.0, %v599_v25  ;;  %v602_v61 = vand.u32 2147483647, %v3038_v35  ;;  %v583_v11 = vmul.f32 %v582_v10, %v3030_v42 }
  0x87   :  { %v2313_v22 = vpop.eup %2312  ;;  %v562_v33 = vmul.f32 0.6931472, %v2309_v46  ;;  %v611_v63 = vand.u32 2147483647, %v3041_v17  ;;  %v617_v24 = vmul.f32 -0.5, %v3047_v9  ;;  %v3338_v48 = vsel %vm3280_vm11, %v547_v43, %v544_v34 }
  0x88   :  { %5414 = vst [vmem:[#allocation98_spill] sm:$0xff] %v3338_v48  ;;  %2320 = vlog2.f32 %v614_v26  ;;  %v626_v45 = vmul.f32 -0.5, %v3050_v27  ;;  %v632_v6 = vadd.f32 1.0, %v3056_v60  ;;  %v571_v14 = vmul.f32 0.6931472, %v2311_v5 }
  0x89   :  { %v592_v25 = vmul.f32 %v591_v7, %v3032_v28  ;;  %vm3343_vm0 = vcmp.lt.f32.partialorder %v593_v21, 0.0004427343  ;;  %v609_v42 = vadd.f32 1.0, %v608_v15  ;;  %2322 = vlog2.f32 %v623_v18 }
  0x8a   :  { %v3349_v10 = vsel %vm3294_vm12, %v556_v12, %v553_v51  ;;  %v580_v19 = vmul.f32 0.6931472, %v2313_v22  ;;  %v601_v43 = vmul.f32 %v600_v53, %v3038_v35  ;;  %vm3352_vm1 = vcmp.lt.f32.partialorder %v602_v61, 0.0004427343 }
  0x8b   :  { %5417 = vst [vmem:[#allocation99_spill] sm:$0xff] %v3349_v10  ;;  %v3358_v28 = vsel %vm3298_vm13, %v565_v0, %v562_v33  ;;  %vm3360_vm2 = vcmp.lt.f32.partialorder %v611_v63, 0.0004427343  ;;  %v618_v21 = vadd.f32 1.0, %v617_v24  ;;  %v620_v47 = vand.u32 2147483647, %v3047_v9 }
  0x8c   :  { %5420 = vst [vmem:[#allocation100_spill] sm:$0xff] %v3358_v28  ;;  %v2315_v12 = vpop.eup %2314  ;;  %v627_v26 = vadd.f32 1.0, %v626_v45  ;;  %2324 = vlog2.f32 %v632_v6  ;;  %v635_v35 = vmul.f32 -0.5, %v3056_v60  ;;  %v641_v7 = vadd.f32 1.0, %v3059_v8 }
  0x8d   :  { %v2317_v15 = vpop.eup %2316  ;;  %v3369_v31 = vsel %vm3316_vm14, %v574_v50, %v571_v14  ;;  %v610_v0 = vmul.f32 %v609_v42, %v3041_v17  ;;  %v629_v18 = vand.u32 2147483647, %v3050_v27  ;;  %v650_v5 = vadd.f32 1.0, %v3065_v16 }
  0x8e   :  { %5423 = vst [vmem:[#allocation101_spill] sm:$0xff] %v3369_v31  ;;  %v2319_v51 = vpop.eup %2318  ;;  %v3376_v53 = vsel %vm3322_vm15, %v583_v11, %v580_v19  ;;  %v644_v61 = vmul.f32 -0.5, %v3059_v8  ;;  %v653_v22 = vmul.f32 -0.5, %v3065_v16  ;;  %v659_v33 = vadd.f32 1.0, %v3068_v36 }
  0x8f   :  { %5424 = vst [vmem:[#allocation102_spill] sm:$0xff] %v3376_v53  ;;  %v589_v52 = vmul.f32 0.6931472, %v2315_v12  ;;  %v619_v50 = vmul.f32 %v618_v21, %v3047_v9  ;;  %vm3382_vm3 = vcmp.lt.f32.partialorder %v620_v47, 0.0004427343  ;;  %v668_v24 = vadd.f32 1.0, %v3074_v32 }
  0x90   :  { %v638_v63 = vand.u32 2147483647, %v3056_v60  ;;  %v598_v40 = vmul.f32 0.6931472, %v2317_v15  ;;  %v628_v11 = vmul.f32 %v627_v26, %v3050_v27  ;;  %v636_v45 = vadd.f32 1.0, %v635_v35 }
  0x91   :  { %2326 = vlog2.f32 %v641_v7  ;;  %v607_v6 = vmul.f32 0.6931472, %v2319_v51  ;;  %vm3389_vm4 = vcmp.lt.f32.partialorder %v629_v18, 0.0004427343  ;;  %v677_v9 = vadd.f32 1.0, %v3077_v62 }
  0x92   :  { %2328 = vlog2.f32 %v650_v5  ;;  %v2321_v42 = vpop.eup %2320  ;;  %v645_v19 = vadd.f32 1.0, %v644_v61  ;;  %v647_v21 = vand.u32 2147483647, %v3059_v8  ;;  %v654_v47 = vadd.f32 1.0, %v653_v22 }
  0x93   :  { %2330 = vlog2.f32 %v659_v33  ;;  %v2323_v12 = vpop.eup %2322  ;;  %vm3395_vm5 = vcmp.lt.f32.partialorder %v638_v63, 0.0004427343  ;;  %v662_v27 = vmul.f32 -0.5, %v3068_v36  ;;  %v686_v26 = vadd.f32 1.0, %v3083_v37 }
  0x94   :  { %2332 = vlog2.f32 %v668_v24  ;;  %v3403_v35 = vsel %vm3343_vm0, %v592_v25, %v589_v52  ;;  %v3407_v7 = vsel %vm3352_vm1, %v601_v43, %v598_v40  ;;  %v637_v18 = vmul.f32 %v636_v45, %v3056_v60 }
  0x95   :  { %5431 = vst [vmem:[#allocation103_spill] sm:$0xff] %v3403_v35  ;;  %5432 = vst [vmem:[#allocation104_spill] sm:$0xff] %v3407_v7  ;;  %v656_v5 = vand.u32 2147483647, %v3065_v16  ;;  %v3413_v51 = vsel %vm3360_vm2, %v610_v0, %v607_v6  ;;  %v665_v61 = vand.u32 2147483647, %v3068_v36  ;;  %2334 = vlog2.f32 %v677_v9 }
  0x96   :  { %5433 = vst [vmem:[#allocation105_spill] sm:$0xff] %v3413_v51  ;;  %v695_v22 = vadd.f32 1.0, %v3088_v49  ;;  %v2325_v41 = vpop.eup %2324  ;;  %v616_v25 = vmul.f32 0.6931472, %v2321_v42  ;;  %v625_v33 = vmul.f32 0.6931472, %v2323_v12  ;;  %v646_v46 = vmul.f32 %v645_v19, %v3059_v8 }
  0x97   :  { %vm3418_vm6 = vcmp.lt.f32.partialorder %v647_v21, 0.0004427343  ;;  %v655_v60 = vmul.f32 %v654_v47, %v3065_v16  ;;  %v663_v52 = vadd.f32 1.0, %v662_v27  ;;  %v671_v34 = vmul.f32 -0.5, %v3074_v32  ;;  %v5487_v6 = vld [vmem:[#allocation89_spill] sm:$0xff] }
  0x98   :  { %2336 = vlog2.f32 %v686_v26  ;;  %v704_v0 = vadd.f32 1.0, %v3091_v39  ;;  %v674_v63 = vand.u32 2147483647, %v3074_v32  ;;  %v680_v24 = vmul.f32 -0.5, %v3077_v62 }
  0x99   :  { %v683_v40 = vand.u32 2147483647, %v3077_v62  ;;  %v713_v8 = vadd.f32 1.0, %v3101_v55  ;;  %v634_v45 = vmul.f32 0.6931472, %v2325_v41  ;;  %2338 = vlog2.f32 %v695_v22 }
  0x9a   :  { %vm3429_vm7 = vcmp.lt.f32.partialorder %v656_v5, 0.0004427343  ;;  %vm3433_vm8 = vcmp.lt.f32.partialorder %v665_v61, 0.0004427343  ;;  %v3439_v42 = vsel %vm3382_vm3, %v619_v50, %v616_v25  ;;  %v3443_v19 = vsel %vm3389_vm4, %v628_v11, %v625_v33 }
  0x9b   :  { %v2327_v9 = vpop.eup %2326  ;;  %5440 = vst [vmem:[#allocation106_spill] sm:$0xff] %v3439_v42  ;;  %5441 = vst [vmem:[#allocation107_spill] sm:$0xff] %v3443_v19  ;;  %v689_v21 = vmul.f32 -0.5, %v3083_v37  ;;  %v722_v47 = vadd.f32 1.0, %v3104_v44  ;;  %v664_v27 = vmul.f32 %v663_v52, %v3068_v36  ;;  %v672_v26 = vadd.f32 1.0, %v671_v34 }
  0x9c   :  { %v2329_v12 = vpop.eup %2328  ;;  %v698_v5 = vmul.f32 -0.5, %v3088_v49  ;;  %2340 = vlog2.f32 %v704_v0  ;;  %vm3449_vm9 = vcmp.lt.f32.partialorder %v674_v63, 0.0004427343  ;;  %v681_v50 = vadd.f32 1.0, %v680_v24 }
  0x9d   :  { %v2331_v61 = vpop.eup %2330  ;;  %vm3453_vm10 = vcmp.lt.f32.partialorder %v683_v40, 0.0004427343  ;;  %2342 = vlog2.f32 %v713_v8  ;;  %v3459_v22 = vsel %vm3395_vm5, %v637_v18, %v634_v45  ;;  %v643_v36 = vmul.f32 0.6931472, %v2327_v9 }
  0x9e   :  { %v2333_v14 = vpop.eup %2332  ;;  %5446 = vst [vmem:[#allocation108_spill] sm:$0xff] %v3459_v22  ;;  %v692_v41 = vand.u32 2147483647, %v3083_v37  ;;  %v707_v25 = vmul.f32 -0.5, %v3091_v39  ;;  %v652_v33 = vmul.f32 0.6931472, %v2329_v12  ;;  %2344 = vlog2.f32 %v722_v47 }
  0x9f   :  { %v690_v52 = vadd.f32 1.0, %v689_v21  ;;  %v716_v34 = vmul.f32 -0.5, %v3101_v55  ;;  %v2335_v0 = vpop.eup %2334  ;;  %v673_v63 = vmul.f32 %v672_v26, %v3074_v32  ;;  %v699_v24 = vadd.f32 1.0, %v698_v5 }
  0xa0   :  { %v701_v40 = vand.u32 2147483647, %v3088_v49  ;;  %v725_v15 = vmul.f32 -0.5, %v3104_v44  ;;  %v661_v18 = vmul.f32 0.6931472, %v2331_v61  ;;  %v682_v45 = vmul.f32 %v681_v50, %v3077_v62 }
  0xa1   :  { %v670_v8 = vmul.f32 0.6931472, %v2333_v14  ;;  %v710_v9 = vand.u32 2147483647, %v3091_v39  ;;  %v3471_v21 = vsel %vm3418_vm6, %v646_v46, %v643_v36  ;;  %vm3473_vm11 = vcmp.lt.f32.partialorder %v692_v41, 0.0004427343 }
  0xa2   :  { %v2337_v58 = vpop.eup %2336  ;;  %5447 = vst [vmem:[#allocation109_spill] sm:$0xff] %v3471_v21  ;;  %v708_v32 = vadd.f32 1.0, %v707_v25  ;;  %v719_v12 = vand.u32 2147483647, %v3101_v55  ;;  %v3480_v26 = vsel %vm3429_vm7, %v655_v60, %v652_v33  ;;  %v679_v5 = vmul.f32 0.6931472, %v2335_v0 }
  0xa3   :  { %5450 = vst [vmem:[#allocation110_spill] sm:$0xff] %v3480_v26  ;;  %v691_v62 = vmul.f32 %v690_v52, %v3083_v37  ;;  %v717_v61 = vadd.f32 1.0, %v716_v34  ;;  %v2339_v50 = vpop.eup %2338  ;;  %v700_v43 = vmul.f32 %v699_v24, %v3088_v49  ;;  %vm3484_vm12 = vcmp.lt.f32.partialorder %v701_v40, 0.0004427343  ;;  %v5463_v24 = vld [vmem:[#allocation42_spill] sm:$0xff]  ;;  %v5476_v46 = vld [vmem:[#allocation80_spill] sm:$0xff] }
  0xa4   :  { %v726_v14 = vadd.f32 1.0, %v725_v15  ;;  %v728_v36 = vand.u32 2147483647, %v3104_v44  ;;  %v3491_v41 = vsel %vm3433_vm8, %v664_v27, %v661_v18  ;;  %v3495_v60 = vsel %vm3449_vm9, %v673_v63, %v670_v8  ;;  %v5467_v8 = vld [vmem:[#allocation44_spill] sm:$0xff]  ;;  %v5496_v63 = vld [vmem:[#allocation11_spill] sm:$0xff] }
  0xa5   :  { %5453 = vst [vmem:[#allocation111_spill] sm:$0xff] %v3491_v41  ;;  %5454 = vst [vmem:[#allocation112_spill] sm:$0xff] %v3495_v60  ;;  %v688_v37 = vmul.f32 0.6931472, %v2337_v58  ;;  %vm3497_vm13 = vcmp.lt.f32.partialorder %v710_v9, 0.0004427343  ;;  %v709_v25 = vmul.f32 %v708_v32, %v3091_v39  ;;  %v731_v16 = vsub.f32 %v2992_v29, %v3216_v2 }
  0xa6   :  { %v2341_v49 = vpop.eup %2340  ;;  %vm3502_vm14 = vcmp.lt.f32.partialorder %v719_v12, 0.0004427343  ;;  %v732_v27 = vsub.f32 %v2998_v20, %v3223_v57  ;;  %v3512_v58 = vsel %vm3453_vm10, %v682_v45, %v679_v5  ;;  %v697_v52 = vmul.f32 0.6931472, %v2339_v50  ;;  %v5462_v29 = vld [vmem:[#allocation4_spill] sm:$0xff]  ;;  %v5468_v12 = vld [vmem:[#allocation6_spill] sm:$0xff] }
  0xa7   :  { %v2343_v17 = vpop.eup %2342  ;;  %5459 = vst [vmem:[#allocation113_spill] sm:$0xff] %v3512_v58  ;;  %v718_v34 = vmul.f32 %v717_v61, %v3101_v55  ;;  %v733_v39 = vsub.f32 %v3005_v3, %v3233_v54  ;;  %v727_v0 = vmul.f32 %v726_v14, %v3104_v44  ;;  %vm3518_vm15 = vcmp.lt.f32.partialorder %v728_v36, 0.0004427343  ;;  %v5465_v55 = vld [vmem:[#allocation43_spill] sm:$0xff]  ;;  %v5466_v44 = vld [vmem:[#allocation5_spill] sm:$0xff] }
  0xa8   :  { %v734_v20 = vsub.f32 %v5462_v29, %v3239_v59  ;;  %v735_v11 = vsub.f32 %v5463_v24, %v3243_v30  ;;  %v2345_v40 = vpop.eup %2344  ;;  %v3528_v15 = vsel %vm3473_vm11, %v691_v62, %v688_v37  ;;  %v736_v3 = vsub.f32 %v5465_v55, %v3256_v1  ;;  %v5469_v61 = vld [vmem:[#allocation7_spill] sm:$0xff]  ;;  %v5471_v62 = vld [vmem:[#allocation8_spill] sm:$0xff]  ;;  %v5472_v36 = vld [vmem:[#allocation9_spill] sm:$0xff] }
  0xa9   :  { %5464 = vst [vmem:[#allocation4_spill] sm:$0xff] %v3528_v15  ;;  %v737_v18 = vsub.f32 %v5466_v44, %v3270_v23  ;;  %v738_v45 = vsub.f32 %v5467_v8, %v3286_v13  ;;  %v706_v9 = vmul.f32 0.6931472, %v2341_v49  ;;  %v715_v32 = vmul.f32 0.6931472, %v2343_v17  ;;  %v5473_v29 = vld [vmem:[#allocation77_spill] sm:$0xff] }
  0xaa   :  { %v739_v5 = vsub.f32 %v5468_v12, %v3305_v56  ;;  %v740_v50 = vsub.f32 %v5469_v61, %v3312_v4  ;;  %v3542_v47 = vsel %vm3484_vm12, %v700_v43, %v697_v52  ;;  %v741_v14 = vsub.f32 %v5471_v62, %v3330_v38  ;;  %v5474_v24 = vld [vmem:[#allocation78_spill] sm:$0xff]  ;;  %v5475_v44 = vld [vmem:[#allocation79_spill] sm:$0xff]  ;;  %v5477_v52 = vld [vmem:[#allocation81_spill] sm:$0xff] }
  0xab   :  { %5470 = vst [vmem:[#allocation42_spill] sm:$0xff] %v3542_v47  ;;  %v742_v37 = vsub.f32 %v5472_v36, %v3338_v48  ;;  %v743_v49 = vsub.f32 %v5473_v29, %v3349_v10  ;;  %v724_v17 = vmul.f32 0.6931472, %v2345_v40  ;;  %v744_v55 = vsub.f32 %v5474_v24, %v3358_v28  ;;  %v5478_v61 = vld [vmem:[#allocation82_spill] sm:$0xff]  ;;  %v5479_v36 = vld [vmem:[#allocation83_spill] sm:$0xff]  ;;  %v5480_v40 = vld [vmem:[#allocation84_spill] sm:$0xff] }
  0xac   :  { %v745_v8 = vsub.f32 %v5475_v44, %v3369_v31  ;;  %v746_v43 = vsub.f32 %v5476_v46, %v3376_v53  ;;  %v747_v12 = vsub.f32 %v5477_v52, %v3403_v35  ;;  %v748_v62 = vsub.f32 %v5478_v61, %v3407_v7  ;;  %v5483_v46 = vld [vmem:[#allocation85_spill] sm:$0xff]  ;;  %v5484_v35 = vld [vmem:[#allocation86_spill] sm:$0xff]  ;;  %v5485_v7 = vld [vmem:[#allocation87_spill] sm:$0xff] }
  0xad   :  { %v749_v48 = vsub.f32 %v5479_v36, %v3413_v51  ;;  %v750_v29 = vsub.f32 %v5480_v40, %v3439_v42  ;;  %v3566_v24 = vsel %vm3497_vm13, %v709_v25, %v706_v9  ;;  %v3570_v44 = vsel %vm3502_vm14, %v718_v34, %v715_v32  ;;  %v5486_v51 = vld [vmem:[#allocation88_spill] sm:$0xff]  ;;  %v5488_v9 = vld [vmem:[#allocation90_spill] sm:$0xff]  ;;  %v5490_v32 = vld [vmem:[#allocation91_spill] sm:$0xff] }
  0xae   :  { %5481 = vst [vmem:[#allocation43_spill] sm:$0xff] %v3566_v24  ;;  %5482 = vst [vmem:[#allocation5_spill] sm:$0xff] %v3570_v44  ;;  %v751_v52 = vsub.f32 %v5483_v46, %v3443_v19  ;;  %v752_v61 = vsub.f32 %v5484_v35, %v3459_v22  ;;  %v753_v36 = vsub.f32 %v5485_v7, %v3471_v21  ;;  %v5491_v35 = vld [vmem:[#allocation92_spill] sm:$0xff]  ;;  %v5492_v7 = vld [vmem:[#allocation93_spill] sm:$0xff] }
  0xaf   :  { %v754_v40 = vsub.f32 %v5486_v51, %v3480_v26  ;;  %v755_v25 = vsub.f32 %v5487_v6, %v3491_v41  ;;  %v756_v33 = vsub.f32 %v5488_v9, %v3495_v60  ;;  %v3586_v34 = vsel %vm3518_vm15, %v727_v0, %v724_v17  ;;  %v5493_v51 = vld [vmem:[#allocation94_spill] sm:$0xff]  ;;  %v5494_v6 = vld [vmem:[#allocation95_spill] sm:$0xff]  ;;  %v5497_v17 = vld [vmem:[#allocation12_spill] sm:$0xff] }
  0xb0   :  { %5489 = vst [vmem:[#allocation44_spill] sm:$0xff] %v3586_v34  ;;  %v757_v46 = vsub.f32 %v5490_v32, %v3512_v58  ;;  %v758_v22 = vsub.f32 %v5491_v35, %v3528_v15  ;;  %v759_v21 = vsub.f32 %v5492_v7, %v3542_v47  ;;  %v760_v26 = vsub.f32 %v5493_v51, %v3566_v24  ;;  %v5495_v9 = vld [vmem:[#allocation10_spill] sm:$0xff]  ;;  %v5498_v42 = vld [vmem:[#allocation13_spill] sm:$0xff]  ;;  %v5500_v35 = vld [vmem:[#allocation15_spill] sm:$0xff] }
  0xb1   :  { %v761_v41 = vsub.f32 %v5494_v6, %v3570_v44  ;;  %v763_v60 = vmul.f32 %v731_v16, %v5495_v9  ;;  %v764_v0 = vmul.f32 %v732_v27, %v5496_v63  ;;  %v765_v19 = vmul.f32 %v733_v39, %v5497_v17  ;;  %v5499_v58 = vld [vmem:[#allocation14_spill] sm:$0xff]  ;;  %v5501_v7 = vld [vmem:[#allocation96_spill] sm:$0xff]  ;;  %v5503_v24 = vld [vmem:[#allocation17_spill] sm:$0xff] }
  0xb2   :  { %v766_v32 = vmul.f32 %v734_v20, %v5498_v42  ;;  %v767_v53 = vmul.f32 %v735_v11, %v5499_v58  ;;  %v768_v15 = vmul.f32 %v736_v3, %v5500_v35  ;;  %v762_v47 = vsub.f32 %v5501_v7, %v3586_v34  ;;  %v5502_v31 = vld [vmem:[#allocation16_spill] sm:$0xff]  ;;  %v5504_v6 = vld [vmem:[#allocation18_spill] sm:$0xff]  ;;  %v5505_v16 = vld [vmem:[#allocation19_spill] sm:$0xff] }
  0xb3   :  { %v769_v51 = vmul.f32 %v737_v18, %v5502_v31  ;;  %v770_v28 = vmul.f32 %v738_v45, %v5503_v24  ;;  %v771_v44 = vmul.f32 %v739_v5, %v5504_v6  ;;  %v772_v9 = vmul.f32 %v740_v50, %v5505_v16  ;;  %v5506_v27 = vld [vmem:[#allocation20_spill] sm:$0xff]  ;;  %v5507_v39 = vld [vmem:[#allocation21_spill] sm:$0xff]  ;;  %v5508_v42 = vld [vmem:[#allocation22_spill] sm:$0xff] }
  0xb4   :  { %v773_v63 = vmul.f32 %v741_v14, %v5506_v27  ;;  %v774_v17 = vmul.f32 %v742_v37, %v5507_v39  ;;  %v775_v20 = vmul.f32 %v743_v49, %v5508_v42  ;;  %v5509_v58 = vld [vmem:[#allocation23_spill] sm:$0xff]  ;;  %v5510_v3 = vld [vmem:[#allocation24_spill] sm:$0xff]  ;;  %v5511_v10 = vld [vmem:[#allocation25_spill] sm:$0xff] }
  0xb5   :  { %v776_v11 = vmul.f32 %v744_v55, %v5509_v58  ;;  %v777_v35 = vmul.f32 %v745_v8, %v5510_v3  ;;  %v778_v7 = vmul.f32 %v746_v43, %v5511_v10  ;;  %v5512_v34 = vld [vmem:[#allocation26_spill] sm:$0xff]  ;;  %v5513_v18 = vld [vmem:[#allocation27_spill] sm:$0xff]  ;;  %v5514_v24 = vld [vmem:[#allocation28_spill] sm:$0xff] }
  0xb6   :  { %v779_v31 = vmul.f32 %v747_v12, %v5512_v34  ;;  %v780_v45 = vmul.f32 %v748_v62, %v5513_v18  ;;  %v781_v5 = vmul.f32 %v749_v48, %v5514_v24  ;;  %v5515_v6 = vld [vmem:[#allocation29_spill] sm:$0xff]  ;;  %v5516_v16 = vld [vmem:[#allocation30_spill] sm:$0xff]  ;;  %v5517_v27 = vld [vmem:[#allocation31_spill] sm:$0xff] }
  0xb7   :  { %v782_v50 = vmul.f32 %v750_v29, %v5515_v6  ;;  %v783_v14 = vmul.f32 %v751_v52, %v5516_v16  ;;  %v784_v37 = vmul.f32 %v752_v61, %v5517_v27  ;;  %v5518_v39 = vld [vmem:[#allocation32_spill] sm:$0xff]  ;;  %v5519_v42 = vld [vmem:[#allocation33_spill] sm:$0xff]  ;;  %v5520_v58 = vld [vmem:[#allocation34_spill] sm:$0xff] }
  0xb8   :  { %v785_v49 = vmul.f32 %v753_v36, %v5518_v39  ;;  %v786_v55 = vmul.f32 %v754_v40, %v5519_v42  ;;  %v787_v8 = vmul.f32 %v755_v25, %v5520_v58  ;;  %v5521_v3 = vld [vmem:[#allocation35_spill] sm:$0xff]  ;;  %v5522_v43 = vld [vmem:[#allocation36_spill] sm:$0xff]  ;;  %v5523_v34 = vld [vmem:[#allocation37_spill] sm:$0xff]  ;;  %v3637_v36 = vadd.f32 %v763_v60, %v3216_v2 }
  0xb9   :  { %v788_v10 = vmul.f32 %v756_v33, %v5521_v3  ;;  %v789_v12 = vmul.f32 %v757_v46, %v5522_v43  ;;  %v790_v62 = vmul.f32 %v758_v22, %v5523_v34  ;;  %v5524_v18 = vld [vmem:[#allocation38_spill] sm:$0xff]  ;;  %v5525_v24 = vld [vmem:[#allocation39_spill] sm:$0xff]  ;;  %v5526_v6 = vld [vmem:[#allocation40_spill] sm:$0xff]  ;;  %v3640_v40 = vadd.f32 %v764_v0, %v3223_v57 }
  0xba   :  { %v791_v48 = vmul.f32 %v759_v21, %v5524_v18  ;;  %v792_v29 = vmul.f32 %v760_v26, %v5525_v24  ;;  %v3631_v52 = vmul.f32 %v761_v41, %v5526_v6  ;;  %v5527_v61 = vld [vmem:[#allocation41_spill] sm:$0xff]  ;;  %v3643_v25 = vadd.f32 %v765_v19, %v3233_v54  ;;  %v5541_v27 = vld [vmem:[#allocation110_spill] sm:$0xff]  ;;  %v5542_v39 = vld [vmem:[#allocation111_spill] sm:$0xff] }
  0xbb   :  { %v3634_v16 = vmul.f32 %v762_v47, %v5527_v61  ;;  %v3646_v22 = vadd.f32 %v766_v32, %v3239_v59  ;;  %v3649_v21 = vadd.f32 %v767_v53, %v3243_v30  ;;  %v3652_v26 = vadd.f32 %v768_v15, %v3256_v1  ;;  %v5529_v1 = vld [vmem:[#allocation98_spill] sm:$0xff]  ;;  %v5532_v15 = vld [vmem:[#allocation101_spill] sm:$0xff]  ;;  %v5543_v42 = vld [vmem:[#allocation112_spill] sm:$0xff] }
  0xbc   :  { %v3655_v41 = vadd.f32 %v769_v51, %v3270_v23  ;;  %v3658_v2 = vadd.f32 %v770_v28, %v3286_v13  ;;  %v5528_v57 = vlaneseq  ;;  %v3664_v54 = vadd.f32 %v771_v44, %v3305_v56  ;;  %v5530_v23 = vld [vmem:[#allocation99_spill] sm:$0xff]  ;;  %v5531_v13 = vld [vmem:[#allocation100_spill] sm:$0xff]  ;;  %v5533_v56 = vld [vmem:[#allocation102_spill] sm:$0xff] }
  0xbd   :  { %v3667_v59 = vadd.f32 %v772_v9, %v3312_v4  ;;  %v3670_v30 = vadd.f32 %v773_v63, %v3330_v38  ;;  %v3673_v53 = vadd.f32 %v774_v17, %v5529_v1  ;;  %v3676_v19 = vadd.f32 %v775_v20, %v5530_v23  ;;  %v5534_v4 = vld [vmem:[#allocation103_spill] sm:$0xff]  ;;  %v5535_v38 = vld [vmem:[#allocation104_spill] sm:$0xff]  ;;  %v5536_v0 = vld [vmem:[#allocation105_spill] sm:$0xff] }
  0xbe   :  { %v3661_v60 = vshrl.u32 %v5528_v57, 7  ;;  %v3679_v28 = vadd.f32 %v776_v11, %v5531_v13  ;;  %v3682_v47 = vadd.f32 %v777_v35, %v5532_v15  ;;  %v3685_v44 = vadd.f32 %v778_v7, %v5533_v56  ;;  %v5537_v51 = vld [vmem:[#allocation106_spill] sm:$0xff]  ;;  %v5538_v63 = vld [vmem:[#allocation107_spill] sm:$0xff]  ;;  %v5539_v20 = vld [vmem:[#allocation108_spill] sm:$0xff] }
  0xbf   :  { %v3688_v33 = vadd.f32 %v779_v31, %v5534_v4  ;;  %v3691_v46 = vadd.f32 %v780_v45, %v5535_v38  ;;  %v3694_v32 = vadd.f32 %v781_v5, %v5536_v0  ;;  %v3697_v9 = vadd.f32 %v782_v50, %v5537_v51  ;;  %v5540_v35 = vld [vmem:[#allocation109_spill] sm:$0xff]  ;;  %v5545_v3 = vld [vmem:[#allocation4_spill] sm:$0xff]  ;;  %v5546_v43 = vld [vmem:[#allocation42_spill] sm:$0xff] }
  0xc0   :  { %v3700_v17 = vadd.f32 %v783_v14, %v5538_v63  ;;  %v3703_v11 = vadd.f32 %v784_v37, %v5539_v20  ;;  %v3706_v7 = vadd.f32 %v785_v49, %v5540_v35  ;;  %v861_v31 = vadd.s32 8, %v3661_v60  ;;  %v5544_v58 = vld [vmem:[#allocation113_spill] sm:$0xff]  ;;  %v5547_v34 = vld [vmem:[#allocation43_spill] sm:$0xff] }
  0xc1   :  { %v3710_v45 = vadd.f32 %v786_v55, %v5541_v27  ;;  %v3713_v5 = vadd.f32 %v787_v8, %v5542_v39  ;;  %v3716_v50 = vadd.f32 %v788_v10, %v5543_v42  ;;  %v3719_v14 = vadd.f32 %v789_v12, %v5544_v58  ;;  %v5551_v56 = vld [vmem:[#allocation49_spill] sm:$0xff] }
  0xc2   :  { %v3722_v37 = vadd.f32 %v790_v62, %v5545_v3  ;;  %v3725_v49 = vadd.f32 %v791_v48, %v5546_v43  ;;  %v3728_v18 = vadd.f32 %v792_v29, %v5547_v34  ;;  %v862_v55 = vadd.s32 16, %v3661_v60 }
  0xc3   :  { %v827_v8 = vsub.f32 0.0, %v3637_v36  ;;  %v828_v24 = vsub.f32 0.0, %v3640_v40  ;;  %v829_v10 = vsub.f32 0.0, %v3643_v25  ;;  %v830_v12 = vsub.f32 0.0, %v3646_v22 }
  0xc4   :  { %v863_v6 = vadd.s32 24, %v3661_v60  ;;  %v3737_v62 = vand.u32 127, %v5528_v57  ;;  %v927_v48 = vmul.u32 128, %v3661_v60  ;;  %v928_v61 = vmul.u32 128, %v861_v31  ;;  %v5548_v31 = vld [vmem:[#allocation97_spill] sm:$0xff] }
  0xc5   :  { %v831_v29 = vsub.f32 0.0, %v3649_v21  ;;  %v832_v1 = vsub.f32 0.0, %v3652_v26  ;;  %v833_v36 = vsub.f32 0.0, %v3655_v41  ;;  %v834_v40 = vsub.f32 0.0, %v3658_v2 }
  0xc6   :  { %v835_v25 = vsub.f32 0.0, %v3664_v54  ;;  %v836_v23 = vsub.f32 0.0, %v3667_v59  ;;  %v864_v13 = vadd.s32 32, %v3661_v60  ;;  %v929_v15 = vmul.u32 128, %v862_v55 }
  0xc7   :  { %v865_v0 = vadd.s32 40, %v3661_v60  ;;  %v930_v51 = vmul.u32 128, %v863_v6  ;;  %v992_v63 = vadd.s32 %v927_v48, %v3737_v62  ;;  %v993_v20 = vadd.s32 %v928_v61, %v3737_v62 }
  0xc8   :  { %v866_v58 = vadd.s32 48, %v3661_v60  ;;  %v931_v3 = vmul.u32 128, %v864_v13  ;;  %v994_v43 = vadd.s32 %v929_v15, %v3737_v62  ;;  %v867_v48 = vadd.s32 56, %v3661_v60 }
  0xc9   :  { %v932_v61 = vmul.u32 128, %v865_v0  ;;  %v995_v27 = vadd.s32 %v930_v51, %v3737_v62  ;;  %vm1025_vm0 = vcmp.lt.s32.totalorder %v992_v63, %v5548_v31  ;;  %vm1026_vm1 = vcmp.lt.s32.totalorder %v993_v20, %v5548_v31  ;;  %v5549_v0 = vld [vmem:[#allocation47_spill] sm:$0xff]  ;;  %v5550_v63 = vld [vmem:[#allocation48_spill] sm:$0xff] }
  0xca   :  { %v868_v34 = vadd.s32 64, %v3661_v60  ;;  %v869_v55 = vadd.s32 72, %v3661_v60  ;;  %v933_v6 = vmul.u32 128, %v866_v58  ;;  %v996_v39 = vadd.s32 %v931_v3, %v3737_v62 }
  0xcb   :  { %vm1027_vm2 = vcmp.lt.s32.totalorder %v994_v43, %v5548_v31  ;;  %v1057_v51 = vsel %vm1025_vm0, %v5549_v0, 0.0  ;;  %v1058_v35 = vsel %vm1026_vm1, %v5550_v63, 0.0  ;;  %v1089_v20 = vsel %vm1025_vm0, %v827_v8, 0.0 }
  0xcc   :  { %v1090_v38 = vsel %vm1026_vm1, %v828_v24, 0.0  ;;  %v934_v13 = vmul.u32 128, %v867_v48  ;;  %v997_v15 = vadd.s32 %v932_v61, %v3737_v62  ;;  %vm1028_vm3 = vcmp.lt.s32.totalorder %v995_v27, %v5548_v31  ;;  %v5552_v48 = vld [vmem:[#allocation50_spill] sm:$0xff] }
  0xcd   :  { %v870_v4 = vadd.s32 80, %v3661_v60  ;;  %v935_v58 = vmul.u32 128, %v868_v34  ;;  %v1059_v3 = vsel %vm1027_vm2, %v5551_v56, 0.0  ;;  %v1091_v57 = vsel %vm1027_vm2, %v829_v10, 0.0 }
  0xce   :  { %v998_v43 = vadd.s32 %v933_v6, %v3737_v62  ;;  %vm1029_vm4 = vcmp.lt.s32.totalorder %v996_v39, %v5548_v31  ;;  %v1121_v0 = vadd.f32 %v1058_v35, %v1057_v51  ;;  %v1153_v8 = vadd.f32 %v1090_v38, %v1089_v20  ;;  %v5553_v39 = vld [vmem:[#allocation51_spill] sm:$0xff] }
  0xcf   :  { %v871_v24 = vadd.s32 88, %v3661_v60  ;;  %v936_v63 = vmul.u32 128, %v869_v55  ;;  %v1060_v42 = vsel %vm1028_vm3, %v5552_v48, 0.0  ;;  %v1092_v27 = vsel %vm1028_vm3, %v830_v12, 0.0  ;;  %v5556_v48 = vld [vmem:[#allocation54_spill] sm:$0xff] }
  0xd0   :  { %v999_v61 = vadd.s32 %v934_v13, %v3737_v62  ;;  %vm1030_vm5 = vcmp.lt.s32.totalorder %v997_v15, %v5548_v31  ;;  %v1122_v56 = vadd.f32 %v1121_v0, %v1059_v3  ;;  %v1154_v10 = vadd.f32 %v1153_v8, %v1091_v57  ;;  %v5554_v15 = vld [vmem:[#allocation52_spill] sm:$0xff] }
  0xd1   :  { %v872_v34 = vadd.s32 96, %v3661_v60  ;;  %v937_v6 = vmul.u32 128, %v870_v4  ;;  %v1061_v35 = vsel %vm1029_vm4, %v5553_v39, 0.0  ;;  %v1093_v38 = vsel %vm1029_vm4, %v831_v29, 0.0 }
  0xd2   :  { %v1000_v55 = vadd.s32 %v935_v58, %v3737_v62  ;;  %vm1031_vm6 = vcmp.lt.s32.totalorder %v998_v43, %v5548_v31  ;;  %v1123_v22 = vadd.f32 %v1122_v56, %v1060_v42  ;;  %v1155_v12 = vadd.f32 %v1154_v10, %v1092_v27  ;;  %v5555_v43 = vld [vmem:[#allocation53_spill] sm:$0xff] }
  0xd3   :  { %v873_v13 = vadd.s32 104, %v3661_v60  ;;  %v938_v51 = vmul.u32 128, %v871_v24  ;;  %v1062_v20 = vsel %vm1030_vm5, %v5554_v15, 0.0  ;;  %v1094_v57 = vsel %vm1030_vm5, %v832_v1, 0.0 }
  0xd4   :  { %v1001_v4 = vadd.s32 %v936_v63, %v3737_v62  ;;  %vm1032_vm7 = vcmp.lt.s32.totalorder %v999_v61, %v5548_v31  ;;  %v1124_v21 = vadd.f32 %v1123_v22, %v1061_v35  ;;  %v1156_v29 = vadd.f32 %v1155_v12, %v1093_v38  ;;  %v5558_v12 = vld [vmem:[#allocation56_spill] sm:$0xff] }
  0xd5   :  { %v874_v58 = vadd.s32 112, %v3661_v60  ;;  %v939_v3 = vmul.u32 128, %v872_v34  ;;  %v1063_v42 = vsel %vm1031_vm6, %v5555_v43, 0.0  ;;  %v1095_v0 = vsel %vm1031_vm6, %v833_v36, 0.0 }
  0xd6   :  { %v1002_v8 = vadd.s32 %v937_v6, %v3737_v62  ;;  %vm1033_vm8 = vcmp.lt.s32.totalorder %v1000_v55, %v5548_v31  ;;  %v1125_v26 = vadd.f32 %v1124_v21, %v1062_v20  ;;  %v1157_v1 = vadd.f32 %v1156_v29, %v1094_v57  ;;  %v5557_v6 = vld [vmem:[#allocation55_spill] sm:$0xff] }
  0xd7   :  { %v875_v24 = vadd.s32 120, %v3661_v60  ;;  %v940_v63 = vmul.u32 128, %v873_v13  ;;  %v1064_v27 = vsel %vm1032_vm7, %v5556_v48, 0.0  ;;  %v1096_v61 = vsel %vm1032_vm7, %v834_v40, 0.0 }
  0xd8   :  { %v1003_v56 = vadd.s32 %v938_v51, %v3737_v62  ;;  %vm1034_vm9 = vcmp.lt.s32.totalorder %v1001_v4, %v5548_v31  ;;  %v1126_v41 = vadd.f32 %v1125_v26, %v1063_v42  ;;  %v1158_v36 = vadd.f32 %v1157_v1, %v1095_v0  ;;  %v5559_v4 = vld [vmem:[#allocation57_spill] sm:$0xff]  ;;  %v5561_v0 = vld [vmem:[#allocation58_spill] sm:$0xff] }
  0xd9   :  { %v876_v10 = vadd.s32 128, %v3661_v60  ;;  %v941_v34 = vmul.u32 128, %v874_v58  ;;  %v1065_v39 = vsel %vm1033_vm8, %v5557_v6, 0.0  ;;  %v1097_v35 = vsel %vm1033_vm8, %v835_v25, 0.0 }
  0xda   :  { %v1004_v38 = vadd.s32 %v939_v3, %v3737_v62  ;;  %vm1035_vm10 = vcmp.lt.s32.totalorder %v1002_v8, %v5548_v31  ;;  %v1127_v2 = vadd.f32 %v1126_v41, %v1064_v27  ;;  %v1159_v40 = vadd.f32 %v1158_v36, %v1096_v61  ;;  %v5563_v61 = vld [vmem:[#allocation59_spill] sm:$0xff] }
  0xdb   :  { %v877_v55 = vadd.s32 136, %v3661_v60  ;;  %v942_v22 = vmul.u32 128, %v875_v24  ;;  %v1066_v13 = vsel %vm1034_vm9, %v5558_v12, 0.0  ;;  %v1098_v51 = vsel %vm1034_vm9, %v836_v23, 0.0 }
  0xdc   :  { %v1005_v15 = vadd.s32 %v940_v63, %v3737_v62  ;;  %vm1036_vm11 = vcmp.lt.s32.totalorder %v1003_v56, %v5548_v31  ;;  %v1128_v54 = vadd.f32 %v1127_v2, %v1065_v39  ;;  %v1160_v25 = vadd.f32 %v1159_v40, %v1097_v35  ;;  %v5565_v35 = vld [vmem:[#allocation60_spill] sm:$0xff] }
  0xdd   :  { %v878_v20 = vadd.s32 144, %v3661_v60  ;;  %v943_v57 = vmul.u32 128, %v876_v10  ;;  %v1067_v21 = vsel %vm1035_vm10, %v5559_v4, 0.0  ;;  %v5560_v29 = vsub.f32 0.0, %v3670_v30 }
  0xde   :  { %v1006_v3 = vadd.s32 %v941_v34, %v3737_v62  ;;  %vm1037_vm12 = vcmp.lt.s32.totalorder %v1004_v38, %v5548_v31  ;;  %v1129_v59 = vadd.f32 %v1128_v54, %v1066_v13  ;;  %v1161_v23 = vadd.f32 %v1160_v25, %v1098_v51  ;;  %v5567_v51 = vld [vmem:[#allocation61_spill] sm:$0xff] }
  0xdf   :  { %v1099_v58 = vsel %vm1035_vm10, %v5560_v29, 0.0  ;;  %v879_v43 = vadd.s32 152, %v3661_v60  ;;  %v944_v42 = vmul.u32 128, %v877_v55  ;;  %v1068_v8 = vsel %vm1036_vm11, %v5561_v0, 0.0  ;;  %v5569_v29 = vld [vmem:[#allocation62_spill] sm:$0xff] }
  0xe0   :  { %v5562_v26 = vsub.f32 0.0, %v3673_v53  ;;  %v1007_v24 = vadd.s32 %v942_v22, %v3737_v62  ;;  %vm1038_vm13 = vcmp.lt.s32.totalorder %v1005_v15, %v5548_v31  ;;  %v1130_v30 = vadd.f32 %v1129_v59, %v1067_v21 }
  0xe1   :  { %v1162_v63 = vadd.f32 %v1161_v23, %v1099_v58  ;;  %v880_v48 = vadd.s32 160, %v3661_v60  ;;  %v945_v27 = vmul.u32 128, %v878_v20  ;;  %v1069_v56 = vsel %vm1037_vm12, %v5563_v61, 0.0  ;;  %v5573_v61 = vld [vmem:[#allocation64_spill] sm:$0xff] }
  0xe2   :  { %v1100_v1 = vsel %vm1036_vm11, %v5562_v26, 0.0  ;;  %v5564_v41 = vsub.f32 0.0, %v3676_v19  ;;  %v1008_v10 = vadd.s32 %v943_v57, %v3737_v62  ;;  %vm1039_vm14 = vcmp.lt.s32.totalorder %v1006_v3, %v5548_v31 }
  0xe3   :  { %v1131_v53 = vadd.f32 %v1130_v30, %v1068_v8  ;;  %v1163_v34 = vadd.f32 %v1162_v63, %v1100_v1  ;;  %v881_v6 = vadd.s32 168, %v3661_v60  ;;  %v946_v39 = vmul.u32 128, %v879_v43  ;;  %v5571_v8 = vld [vmem:[#allocation63_spill] sm:$0xff] }
  0xe4   :  { %v1101_v36 = vsel %vm1037_vm12, %v5564_v41, 0.0  ;;  %v1070_v38 = vsel %vm1038_vm13, %v5565_v35, 0.0  ;;  %v5566_v2 = vsub.f32 0.0, %v3679_v28  ;;  %v1009_v55 = vadd.s32 %v944_v42, %v3737_v62 }
  0xe5   :  { %vm1040_vm15 = vcmp.lt.s32.totalorder %v1007_v24, %v5548_v31  ;;  %v1132_v19 = vadd.f32 %v1131_v53, %v1069_v56  ;;  %v1164_v22 = vadd.f32 %v1163_v34, %v1101_v36  ;;  %v882_v12 = vadd.s32 176, %v3661_v60 }
  0xe6   :  { %v1102_v40 = vsel %vm1038_vm13, %v5566_v2, 0.0  ;;  %v947_v13 = vmul.u32 128, %v880_v48  ;;  %v1071_v15 = vsel %vm1039_vm14, %v5567_v51, 0.0  ;;  %v5568_v54 = vsub.f32 0.0, %v3682_v47 }
  0xe7   :  { %v1010_v20 = vadd.s32 %v945_v27, %v3737_v62  ;;  %vm1041_vm0 = vcmp.lt.s32.totalorder %v1008_v10, %v5548_v31  ;;  %v1133_v28 = vadd.f32 %v1132_v19, %v1070_v38  ;;  %v1165_v57 = vadd.f32 %v1164_v22, %v1102_v40 }
  0xe8   :  { %v1103_v25 = vsel %vm1039_vm14, %v5568_v54, 0.0  ;;  %v883_v4 = vadd.s32 184, %v3661_v60  ;;  %v948_v21 = vmul.u32 128, %v881_v6  ;;  %v1072_v58 = vsel %vm1040_vm15, %v5569_v29, 0.0 }
  0xe9   :  { %v5570_v3 = vsub.f32 0.0, %v3685_v44  ;;  %v1011_v23 = vadd.s32 %v946_v39, %v3737_v62  ;;  %vm1042_vm1 = vcmp.lt.s32.totalorder %v1009_v55, %v5548_v31  ;;  %v1134_v47 = vadd.f32 %v1133_v28, %v1071_v15  ;;  %v5575_v39 = vld [vmem:[#allocation65_spill] sm:$0xff] }
  0xea   :  { %v1166_v43 = vadd.f32 %v1165_v57, %v1103_v25  ;;  %v884_v42 = vadd.s32 192, %v3661_v60  ;;  %v949_v0 = vmul.u32 128, %v882_v12  ;;  %v1073_v26 = vsel %vm1041_vm0, %v5571_v8, 0.0  ;;  %v5577_v12 = vld [vmem:[#allocation66_spill] sm:$0xff]  ;;  %v5579_v57 = vld [vmem:[#allocation67_spill] sm:$0xff] }
  0xeb   :  { %v1104_v59 = vsel %vm1040_vm15, %v5570_v3, 0.0  ;;  %v5572_v1 = vsub.f32 0.0, %v3688_v33  ;;  %v1012_v30 = vadd.s32 %v947_v13, %v3737_v62  ;;  %vm1043_vm2 = vcmp.lt.s32.totalorder %v1010_v20, %v5548_v31 }
  0xec   :  { %v1135_v44 = vadd.f32 %v1134_v47, %v1072_v58  ;;  %v1167_v63 = vadd.f32 %v1166_v43, %v1104_v59  ;;  %v885_v48 = vadd.s32 200, %v3661_v60  ;;  %v950_v27 = vmul.u32 128, %v883_v4  ;;  %v5581_v47 = vld [vmem:[#allocation68_spill] sm:$0xff] }
  0xed   :  { %v1105_v24 = vsel %vm1041_vm0, %v5572_v1, 0.0  ;;  %v1074_v56 = vsel %vm1042_vm1, %v5573_v61, 0.0  ;;  %v5574_v41 = vsub.f32 0.0, %v3691_v46  ;;  %v1013_v10 = vadd.s32 %v948_v21, %v3737_v62 }
  0xee   :  { %vm1044_vm3 = vcmp.lt.s32.totalorder %v1011_v23, %v5548_v31  ;;  %v1136_v33 = vadd.f32 %v1135_v44, %v1073_v26  ;;  %v1168_v53 = vadd.f32 %v1167_v63, %v1105_v24  ;;  %v886_v34 = vadd.s32 208, %v3661_v60 }
  0xef   :  { %v1106_v36 = vsel %vm1042_vm1, %v5574_v41, 0.0  ;;  %v951_v6 = vmul.u32 128, %v884_v42  ;;  %v1075_v35 = vsel %vm1043_vm2, %v5575_v39, 0.0  ;;  %v5576_v38 = vsub.f32 0.0, %v3694_v32 }
  0xf0   :  { %v1014_v40 = vadd.s32 %v949_v0, %v3737_v62  ;;  %vm1045_vm4 = vcmp.lt.s32.totalorder %v1012_v30, %v5548_v31  ;;  %v1137_v46 = vadd.f32 %v1136_v33, %v1074_v56  ;;  %v1169_v55 = vadd.f32 %v1168_v53, %v1106_v36  ;;  %v5583_v30 = vld [vmem:[#allocation69_spill] sm:$0xff]  ;;  %v5585_v36 = vld [vmem:[#allocation70_spill] sm:$0xff] }
  0xf1   :  { %v1107_v2 = vsel %vm1043_vm2, %v5576_v38, 0.0  ;;  %v887_v19 = vadd.s32 216, %v3661_v60  ;;  %v952_v22 = vmul.u32 128, %v885_v48  ;;  %v1076_v13 = vsel %vm1044_vm3, %v5577_v12, 0.0  ;;  %v5587_v38 = vld [vmem:[#allocation71_spill] sm:$0xff]  ;;  %v5589_v12 = vld [vmem:[#allocation72_spill] sm:$0xff] }
  0xf2   :  { %v5578_v51 = vsub.f32 0.0, %v3697_v9  ;;  %v1015_v54 = vadd.s32 %v950_v27, %v3737_v62  ;;  %vm1046_vm5 = vcmp.lt.s32.totalorder %v1013_v10, %v5548_v31  ;;  %v1138_v32 = vadd.f32 %v1137_v46, %v1075_v35 }
  0xf3   :  { %v1170_v25 = vadd.f32 %v1169_v55, %v1107_v2  ;;  %v888_v20 = vadd.s32 224, %v3661_v60  ;;  %v953_v28 = vmul.u32 128, %v886_v34  ;;  %v1077_v4 = vsel %vm1045_vm4, %v5579_v57, 0.0 }
  0xf4   :  { %v1108_v15 = vsel %vm1044_vm3, %v5578_v51, 0.0  ;;  %v5580_v21 = vsub.f32 0.0, %v3700_v17  ;;  %v1016_v58 = vadd.s32 %v951_v6, %v3737_v62  ;;  %vm1047_vm6 = vcmp.lt.s32.totalorder %v1014_v40, %v5548_v31 }
  0xf5   :  { %v1139_v9 = vadd.f32 %v1138_v32, %v1076_v13  ;;  %v1171_v3 = vadd.f32 %v1170_v25, %v1108_v15  ;;  %v889_v59 = vadd.s32 232, %v3661_v60  ;;  %v954_v23 = vmul.u32 128, %v887_v19  ;;  %v5591_v32 = vld [vmem:[#allocation5_spill] sm:$0xff] }
  0xf6   :  { %v1109_v29 = vsel %vm1045_vm4, %v5580_v21, 0.0  ;;  %v1078_v43 = vsel %vm1046_vm5, %v5581_v47, 0.0  ;;  %v5582_v42 = vsub.f32 0.0, %v3703_v11  ;;  %v1017_v8 = vadd.s32 %v952_v22, %v3737_v62 }
  0xf7   :  { %vm1048_vm7 = vcmp.lt.s32.totalorder %v1015_v54, %v5548_v31  ;;  %v1140_v17 = vadd.f32 %v1139_v9, %v1077_v4  ;;  %v1172_v26 = vadd.f32 %v1171_v3, %v1109_v29  ;;  %v890_v1 = vadd.s32 240, %v3661_v60  ;;  %v5593_v29 = vld [vmem:[#allocation44_spill] sm:$0xff]  ;;  %v5594_v3 = vld [vmem:[#allocation74_spill] sm:$0xff] }
  0xf8   :  { %v1110_v0 = vsel %vm1046_vm5, %v5582_v42, 0.0  ;;  %v955_v24 = vmul.u32 128, %v888_v20  ;;  %v1079_v44 = vsel %vm1047_vm6, %v5583_v30, 0.0  ;;  %v5584_v63 = vsub.f32 0.0, %v3706_v7 }
  0xf9   :  { %v1018_v27 = vadd.s32 %v953_v28, %v3737_v62  ;;  %vm1049_vm8 = vcmp.lt.s32.totalorder %v1016_v58, %v5548_v31  ;;  %v1141_v11 = vadd.f32 %v1140_v17, %v1078_v43  ;;  %v1173_v61 = vadd.f32 %v1172_v26, %v1110_v0  ;;  %v5592_v28 = vld [vmem:[#allocation73_spill] sm:$0xff] }
  0xfa   :  { %v1111_v48 = vsel %vm1047_vm6, %v5584_v63, 0.0  ;;  %v891_v56 = vadd.s32 248, %v3661_v60  ;;  %v956_v41 = vmul.u32 128, %v889_v59  ;;  %v1080_v10 = vsel %vm1048_vm7, %v5585_v36, 0.0  ;;  %v5595_v43 = vld [vmem:[#allocation45_spill] sm:$0xff] }
  0xfb   :  { %v5586_v33 = vsub.f32 0.0, %v3710_v45  ;;  %v1019_v34 = vadd.s32 %v954_v23, %v3737_v62  ;;  %vm1050_vm9 = vcmp.lt.s32.totalorder %v1017_v8, %v5548_v31  ;;  %v1142_v7 = vadd.f32 %v1141_v11, %v1079_v44  ;;  %v5596_v8 = vld [vmem:[#allocation75_spill] sm:$0xff] }
  0xfc   :  { %v1174_v6 = vadd.f32 %v1173_v61, %v1111_v48  ;;  %v853_v39 = vsub.f32 0.0, %v3719_v14  ;;  %v957_v35 = vmul.u32 128, %v890_v1  ;;  %v1081_v2 = vsel %vm1049_vm8, %v5587_v38, 0.0  ;;  %v5597_v1 = vld [vmem:[#allocation46_spill] sm:$0xff] }
  0xfd   :  { %v1112_v53 = vsel %vm1048_vm7, %v5586_v33, 0.0  ;;  %v5588_v40 = vsub.f32 0.0, %v3713_v5  ;;  %v1020_v46 = vadd.s32 %v955_v24, %v3737_v62  ;;  %vm1051_vm10 = vcmp.lt.s32.totalorder %v1018_v27, %v5548_v31 }
  0xfe   :  { %v1143_v45 = vadd.f32 %v1142_v7, %v1080_v10  ;;  %v1175_v55 = vadd.f32 %v1174_v6, %v1112_v53  ;;  %v854_v19 = vsub.f32 0.0, %v3722_v37  ;;  %v958_v22 = vmul.u32 128, %v891_v56  ;;  %v2053_v7 = vld [vmem:[%s5159_s3 + $0x8] sm:$0xff] }
  0xff   :  { %v1113_v60 = vsel %vm1049_vm8, %v5588_v40, 0.0  ;;  %v1082_v13 = vsel %vm1050_vm9, %v5589_v12, 0.0  ;;  %v5590_v51 = vsub.f32 0.0, %v3716_v50  ;;  %v1021_v15 = vadd.s32 %v956_v41, %v3737_v62 }
 0x100   :  { %vm1052_vm11 = vcmp.lt.s32.totalorder %v1019_v34, %v5548_v31  ;;  %v1144_v5 = vadd.f32 %v1143_v45, %v1081_v2  ;;  %v1176_v54 = vadd.f32 %v1175_v55, %v1113_v60  ;;  %v825_v25 = vadd.f32 %v3631_v52, %v5591_v32  ;;  %v1185_v34 = vld [vmem:[%s5159_s3] sm:$0xff] }
 0x101   :  { %v1114_v14 = vsel %vm1050_vm9, %v5590_v51, 0.0  ;;  %v855_v20 = vsub.f32 0.0, %v3725_v49  ;;  %v1083_v57 = vsel %vm1051_vm10, %v5592_v28, 0.0  ;;  %v1115_v37 = vsel %vm1051_vm10, %v853_v39, 0.0 }
 0x102   :  { %v1022_v4 = vadd.s32 %v957_v35, %v3737_v62  ;;  %vm1053_vm12 = vcmp.lt.s32.totalorder %v1020_v46, %v5548_v31  ;;  %v1145_v50 = vadd.f32 %v1144_v5, %v1082_v13  ;;  %v1177_v21 = vadd.f32 %v1176_v54, %v1114_v14 }
 0x103   :  { %v826_v58 = vadd.f32 %v3634_v16, %v5593_v29  ;;  %v856_v9 = vsub.f32 0.0, %v3728_v18  ;;  %v1084_v59 = vsel %vm1052_vm11, %v5594_v3, 0.0  ;;  %v1116_v23 = vsel %vm1052_vm11, %v854_v19, 0.0 }
 0x104   :  { %v1023_v52 = vadd.s32 %v958_v22, %v3737_v62  ;;  %vm1054_vm13 = vcmp.lt.s32.totalorder %v1021_v15, %v5548_v31  ;;  %v1146_v49 = vadd.f32 %v1145_v50, %v1083_v57  ;;  %v1178_v47 = vadd.f32 %v1177_v21, %v1115_v37  ;;  %v5598_v62 = vld [vmem:[#allocation76_spill] sm:$0xff] }
 0x105   :  { %v281_v42 = vmul.f32 %v5595_v43, %v5595_v43  ;;  %v857_v0 = vsub.f32 0.0, %v825_v25  ;;  %v1085_v17 = vsel %vm1053_vm12, %v5596_v8, 0.0  ;;  %v1117_v26 = vsel %vm1053_vm12, %v855_v20, 0.0 }
 0x106   :  { %vm1055_vm14 = vcmp.lt.s32.totalorder %v1022_v4, %v5548_v31  ;;  %v1147_v16 = vadd.f32 %v1146_v49, %v1084_v59  ;;  %v1179_v18 = vadd.f32 %v1178_v47, %v1116_v23  ;;  %v282_v24 = vmul.f32 %v5597_v1, %v5597_v1 }
 0x107   :  { %v858_v30 = vsub.f32 0.0, %v826_v58  ;;  %v1086_v44 = vsel %vm1054_vm13, %v5598_v62, 0.0  ;;  %v1118_v63 = vsel %vm1054_vm13, %v856_v9, 0.0  ;;  %vm1056_vm15 = vcmp.lt.s32.totalorder %v1023_v52, %v5548_v31 }
 0x108   :  { %v1148_v48 = vadd.f32 %v1147_v16, %v1085_v17  ;;  %v1180_v27 = vadd.f32 %v1179_v18, %v1117_v26  ;;  %v1087_v11 = vsel %vm1055_vm14, %v281_v42, 0.0  ;;  %v1119_v61 = vsel %vm1055_vm14, %v857_v0, 0.0 }
 0x109   :  { %v1088_v36 = vsel %vm1056_vm15, %v282_v24, 0.0  ;;  %v1120_v10 = vsel %vm1056_vm15, %v858_v30, 0.0 }
 0x10a   :  { %v1149_v56 = vadd.f32 %v1148_v48, %v1086_v44  ;;  %v1181_v41 = vadd.f32 %v1180_v27, %v1118_v63 }
 0x10c   :  { %v1150_v33 = vadd.f32 %v1149_v56, %v1087_v11  ;;  %v1182_v53 = vadd.f32 %v1181_v41, %v1119_v61 }
 0x10e   :  { %v1151_v6 = vadd.f32 %v1150_v33, %v1088_v36  ;;  %v1183_v31 = vadd.f32 %v1182_v53, %v1120_v10 }
 0x110   :  { %v1186_v39 = vadd.f32 %v1185_v34, %v1151_v6  ;;  %v1190_v35 = vadd.f32 %v2053_v7, %v1183_v31 }
 0x112   :  { %1187 = vst [vmem:[%s5159_s3] sm:$0xff] %v1186_v39  ;;  %2054 = vst [vmem:[%s5159_s3 + $0x8] sm:$0xff] %v1190_v35 }
 0x113 PF:  { %p2056_p1 = scmp.lt.s32.totalorder %s5156_s0, 32768 }
 0x115   :  { %1195 = sbr.rel (%p2056_p1) target bundleno = 498 (0x1f2), region = 21 }
 0x11c   :  { %v3960_v38 = vld [vmem:[%s5157_s1] sm:$0xff]  ;;  %v3965_v2 = vld [vmem:[%s5157_s1 + $0x8] sm:$0xff]  ;;  %v3970_v40 = vld [vmem:[%s5157_s1 + $0x10] sm:$0xff] }
 0x11d   :  { %v3975_v60 = vld [vmem:[%s5157_s1 + $0x18] sm:$0xff]  ;;  %v3980_v46 = vld [vmem:[%s5157_s1 + $0x20] sm:$0xff]  ;;  %v3985_v45 = vld [vmem:[%s5157_s1 + $0x28] sm:$0xff] }
 0x11e   :  { %v3990_v55 = vld [vmem:[%s5157_s1 + $0x30] sm:$0xff]  ;;  %v3995_v19 = vld [vmem:[%s5157_s1 + $0x38] sm:$0xff]  ;;  %v4002_v13 = vld [vmem:[%s5157_s1 + $0x40] sm:$0xff] }
 0x11f   :  { %v4007_v51 = vld [vmem:[%s5157_s1 + $0x48] sm:$0xff]  ;;  %v2124_v5 = vld [vmem:[%s5158_s2] sm:$0xff]   ;;  %v2205_v57 = vld [vmem:[%s5158_s2 + $0x10] sm:$0xff]  }
 0x120   :  { %v2203_v25 = vld [vmem:[%s5158_s2 + $0x8] sm:$0xff]   ;;  %v2125_v50 = vunpack.c.0.s8 %v2124_v5  ;;  %v2126_v21 = vunpack.c.1.s8 %v2124_v5  ;;  %v2129_v29 = vunpack.c.2.s8 %v2124_v5  ;;  %v2130_v58 = vunpack.c.3.s8 %v2124_v5  ;;  %v2207_v9 = vld [vmem:[%s5158_s2 + $0x18] sm:$0xff]   ;;  %v2209_v49 = vld [vmem:[%s5158_s2 + $0x20] sm:$0xff]  }
 0x121   :  { %v2133_v3 = vunpack.c.0.s8 %v2203_v25  ;;  %v2134_v59 = vunpack.c.1.s8 %v2203_v25  ;;  %v2137_v23 = vunpack.c.2.s8 %v2203_v25  ;;  %v2138_v52 = vunpack.c.3.s8 %v2203_v25  ;;  %v2211_v8 = vld [vmem:[%s5158_s2 + $0x28] sm:$0xff]   ;;  %v2213_v1 = vld [vmem:[%s5158_s2 + $0x30] sm:$0xff]   ;;  %v2215_v63 = vld [vmem:[%s5158_s2 + $0x38] sm:$0xff]  }
 0x122   :  { %v2141_v47 = vunpack.c.0.s8 %v2205_v57  ;;  %v2142_v43 = vunpack.c.1.s8 %v2205_v57  ;;  %v2145_v42 = vunpack.c.2.s8 %v2205_v57  ;;  %v2146_v0 = vunpack.c.3.s8 %v2205_v57  ;;  %v4149_v37 = vld [vmem:[%s5157_s1 + $0x78] sm:$0xff]  ;;  %v4154_v28 = vld [vmem:[%s5157_s1 + $0x80] sm:$0xff]  ;;  %v4159_v20 = vld [vmem:[%s5157_s1 + $0x88] sm:$0xff] }
 0x123   :  { %v2149_v17 = vunpack.c.0.s8 %v2207_v9  ;;  %v2150_v26 = vunpack.c.1.s8 %v2207_v9  ;;  %v2153_v16 = vunpack.c.2.s8 %v2207_v9  ;;  %v2154_v18 = vunpack.c.3.s8 %v2207_v9  ;;  %v4172_v12 = vld [vmem:[%s5157_s1 + $0x90] sm:$0xff]  ;;  %v4177_v22 = vld [vmem:[%s5157_s1 + $0x98] sm:$0xff] }
 0x124   :  { %v2157_v24 = vunpack.c.0.s8 %v2209_v49  ;;  %v2158_v30 = vunpack.c.1.s8 %v2209_v49  ;;  %v2161_v62 = vunpack.c.2.s8 %v2209_v49  ;;  %v2162_v44 = vunpack.c.3.s8 %v2209_v49 }
 0x125   :  { %v2165_v48 = vunpack.c.0.s8 %v2211_v8  ;;  %v2166_v27 = vunpack.c.1.s8 %v2211_v8  ;;  %v2169_v11 = vunpack.c.2.s8 %v2211_v8  ;;  %v2170_v61 = vunpack.c.3.s8 %v2211_v8 }
 0x126   :  { %v2173_v56 = vunpack.c.0.s8 %v2213_v1  ;;  %v2174_v41 = vunpack.c.1.s8 %v2213_v1  ;;  %v2177_v36 = vunpack.c.2.s8 %v2213_v1  ;;  %v2178_v10 = vunpack.c.3.s8 %v2213_v1 }
 0x127   :  { %v2181_v33 = vunpack.c.0.s8 %v2215_v63  ;;  %v2182_v53 = vunpack.c.1.s8 %v2215_v63  ;;  %v2185_v34 = vunpack.c.2.s8 %v2215_v63  ;;  %v2186_v7 = vunpack.c.3.s8 %v2215_v63 }
 0x128   :  { %v4041_v6 = vcvt.s32.f32 %v2125_v50  ;;  %v4043_v31 = vcvt.s32.f32 %v2126_v21  ;;  %v4045_v39 = vcvt.s32.f32 %v2129_v29  ;;  %v4047_v35 = vcvt.s32.f32 %v2130_v58 }
 0x129   :  { %v4049_v5 = vcvt.s32.f32 %v2133_v3  ;;  %v4051_v25 = vcvt.s32.f32 %v2134_v59  ;;  %v4053_v57 = vcvt.s32.f32 %v2137_v23  ;;  %v4055_v9 = vcvt.s32.f32 %v2138_v52 }
 0x12a   :  { %5599 = vst [vmem:[#allocation114_spill] sm:$0xff] %v4043_v31  ;;  %5600 = vst [vmem:[#allocation115_spill] sm:$0xff] %v4045_v39  ;;  %v4057_v49 = vcvt.s32.f32 %v2141_v47  ;;  %v4059_v8 = vcvt.s32.f32 %v2142_v43  ;;  %v4061_v50 = vcvt.s32.f32 %v2145_v42  ;;  %v4063_v21 = vcvt.s32.f32 %v2146_v0 }
 0x12b   :  { %5601 = vst [vmem:[#allocation116_spill] sm:$0xff] %v4047_v35  ;;  %5602 = vst [vmem:[#allocation117_spill] sm:$0xff] %v4049_v5  ;;  %v4065_v29 = vcvt.s32.f32 %v2149_v17  ;;  %v4067_v58 = vcvt.s32.f32 %v2150_v26  ;;  %v4069_v3 = vcvt.s32.f32 %v2153_v16  ;;  %v4071_v59 = vcvt.s32.f32 %v2154_v18 }
 0x12c   :  { %5603 = vst [vmem:[#allocation118_spill] sm:$0xff] %v4051_v25  ;;  %5604 = vst [vmem:[#allocation119_spill] sm:$0xff] %v4053_v57  ;;  %v4073_v23 = vcvt.s32.f32 %v2157_v24  ;;  %v4075_v52 = vcvt.s32.f32 %v2158_v30  ;;  %v4077_v47 = vcvt.s32.f32 %v2161_v62  ;;  %v4079_v43 = vcvt.s32.f32 %v2162_v44 }
 0x12d   :  { %5605 = vst [vmem:[#allocation120_spill] sm:$0xff] %v4055_v9  ;;  %5606 = vst [vmem:[#allocation121_spill] sm:$0xff] %v4057_v49  ;;  %v4081_v42 = vcvt.s32.f32 %v2165_v48  ;;  %v4083_v0 = vcvt.s32.f32 %v2166_v27  ;;  %v4085_v17 = vcvt.s32.f32 %v2169_v11  ;;  %v4087_v26 = vcvt.s32.f32 %v2170_v61  ;;  %v4108_v48 = vld [vmem:[%s5157_s1 + $0x50] sm:$0xff]  ;;  %v4113_v27 = vld [vmem:[%s5157_s1 + $0x58] sm:$0xff] }
 0x12e   :  { %5607 = vst [vmem:[#allocation122_spill] sm:$0xff] %v4059_v8  ;;  %5608 = vst [vmem:[#allocation123_spill] sm:$0xff] %v4061_v50  ;;  %v4089_v16 = vcvt.s32.f32 %v2173_v56  ;;  %v4091_v18 = vcvt.s32.f32 %v2174_v41  ;;  %v4093_v1 = vcvt.s32.f32 %v2177_v36  ;;  %v4095_v24 = vcvt.s32.f32 %v2178_v10  ;;  %v4126_v36 = vld [vmem:[%s5157_s1 + $0x60] sm:$0xff]  ;;  %v4131_v10 = vld [vmem:[%s5157_s1 + $0x68] sm:$0xff] }
 0x12f   :  { %5609 = vst [vmem:[#allocation124_spill] sm:$0xff] %v4063_v21  ;;  %5610 = vst [vmem:[#allocation125_spill] sm:$0xff] %v4065_v29  ;;  %v4097_v30 = vcvt.s32.f32 %v2181_v33  ;;  %v4099_v62 = vcvt.s32.f32 %v2182_v53  ;;  %v4101_v44 = vcvt.s32.f32 %v2185_v34  ;;  %v4103_v63 = vcvt.s32.f32 %v2186_v7  ;;  %v4136_v33 = vld [vmem:[%s5157_s1 + $0x70] sm:$0xff] }
 0x130   :  { %5611 = vst [vmem:[#allocation126_spill] sm:$0xff] %v4067_v58  ;;  %5612 = vst [vmem:[#allocation127_spill] sm:$0xff] %v4069_v3  ;;  %v1324_v11 = vsub.f32 %v3960_v38, %v4041_v6  ;;  %v1325_v61 = vsub.f32 %v3965_v2, %v4043_v31  ;;  %v1326_v56 = vsub.f32 %v3970_v40, %v4045_v39 }
 0x131   :  { %5613 = vst [vmem:[#allocation128_spill] sm:$0xff] %v4071_v59  ;;  %5614 = vst [vmem:[#allocation129_spill] sm:$0xff] %v4073_v23  ;;  %v1327_v41 = vsub.f32 %v3975_v60, %v4047_v35  ;;  %v1328_v53 = vsub.f32 %v3980_v46, %v4049_v5  ;;  %v1329_v34 = vsub.f32 %v3985_v45, %v4051_v25 }
 0x132   :  { %5615 = vst [vmem:[#allocation130_spill] sm:$0xff] %v4075_v52  ;;  %5616 = vst [vmem:[#allocation131_spill] sm:$0xff] %v4077_v47  ;;  %v1330_v7 = vsub.f32 %v3990_v55, %v4053_v57  ;;  %v1331_v4 = vsub.f32 %v3995_v19, %v4055_v9  ;;  %v1332_v32 = vsub.f32 %v4002_v13, %v4057_v49  ;;  %v4218_v49 = vld [vmem:[%s5157_s1 + $0xc0] sm:$0xff]  ;;  %v4223_v9 = vld [vmem:[%s5157_s1 + $0xc8] sm:$0xff] }
 0x133   :  { %5617 = vst [vmem:[#allocation132_spill] sm:$0xff] %v4079_v43  ;;  %5618 = vst [vmem:[#allocation133_spill] sm:$0xff] %v4081_v42  ;;  %v1333_v54 = vsub.f32 %v4007_v51, %v4059_v8  ;;  %v1334_v15 = vsub.f32 %v4108_v48, %v4061_v50  ;;  %v1335_v14 = vsub.f32 %v4113_v27, %v4063_v21  ;;  %v4195_v21 = vld [vmem:[%s5157_s1 + $0xa8] sm:$0xff]  ;;  %v4200_v50 = vld [vmem:[%s5157_s1 + $0xb0] sm:$0xff] }
 0x134   :  { %5619 = vst [vmem:[#allocation134_spill] sm:$0xff] %v4083_v0  ;;  %5620 = vst [vmem:[#allocation135_spill] sm:$0xff] %v4085_v17  ;;  %v1343_v8 = vsub.f32 %v4177_v22, %v4079_v43  ;;  %v1345_v43 = vsub.f32 %v4195_v21, %v4083_v0  ;;  %v1348_v25 = vsub.f32 %v4218_v49, %v4089_v16 }
 0x135   :  { %5621 = vst [vmem:[#allocation136_spill] sm:$0xff] %v4087_v26  ;;  %5622 = vst [vmem:[#allocation137_spill] sm:$0xff] %v4089_v16  ;;  %v4242_v5 = vsub.f32 %v4223_v9, %v4091_v18  ;;  %v4250_v0 = vmul.f32 %v1325_v61, %v1325_v61  ;;  %v4252_v39 = vmul.f32 %v1326_v56, %v1326_v56 }
 0x136   :  { %5623 = vst [vmem:[#allocation138_spill] sm:$0xff] %v4091_v18  ;;  %5624 = vst [vmem:[#allocation139_spill] sm:$0xff] %v4093_v1  ;;  %v4258_v31 = vmul.f32 %v1329_v34, %v1329_v34  ;;  %v4260_v16 = vmul.f32 %v1330_v7, %v1330_v7  ;;  %v4262_v18 = vmul.f32 %v1331_v4, %v1331_v4 }
 0x137   :  { %5625 = vst [vmem:[#allocation140_spill] sm:$0xff] %v4095_v24  ;;  %5626 = vst [vmem:[#allocation141_spill] sm:$0xff] %v4097_v30  ;;  %v1338_v30 = vsub.f32 %v4136_v33, %v4069_v3  ;;  %v1339_v24 = vsub.f32 %v4149_v37, %v4071_v59  ;;  %v1340_v3 = vsub.f32 %v4154_v28, %v4073_v23 }
 0x138   :  { %5627 = vst [vmem:[#allocation142_spill] sm:$0xff] %v4099_v62  ;;  %5628 = vst [vmem:[#allocation143_spill] sm:$0xff] %v4101_v44  ;;  %v1336_v44 = vsub.f32 %v4126_v36, %v4065_v29  ;;  %v1337_v62 = vsub.f32 %v4131_v10, %v4067_v58  ;;  %v4205_v58 = vld [vmem:[%s5157_s1 + $0xb8] sm:$0xff]  ;;  %v1341_v59 = vsub.f32 %v4159_v20, %v4075_v52  ;;  %v4228_v52 = vld [vmem:[%s5157_s1 + $0xd0] sm:$0xff] }
 0x139   :  { %5629 = vst [vmem:[#allocation144_spill] sm:$0xff] %v4103_v63  ;;  %v4182_v63 = vld [vmem:[%s5157_s1 + $0xa0] sm:$0xff]  ;;  %v1342_v29 = vsub.f32 %v4172_v12, %v4077_v47  ;;  %v1346_v23 = vsub.f32 %v4200_v50, %v4085_v17  ;;  %v1347_v57 = vsub.f32 %v4205_v58, %v4087_v26  ;;  %5630 = vst [vmem:[#allocation145_spill] sm:$0xff] %v4242_v5 }
 0x13a   :  { %v1344_v47 = vsub.f32 %v4182_v63, %v4081_v42  ;;  %v4246_v35 = vsub.f32 %v4228_v52, %v4093_v1  ;;  %v4248_v42 = vmul.f32 %v1324_v11, %v1324_v11  ;;  %5632 = vst [vmem:[#allocation147_spill] sm:$0xff] %v4252_v39  ;;  %v4254_v17 = vmul.f32 %v1327_v41, %v1327_v41 }
 0x13b   :  { %v4256_v26 = vmul.f32 %v1328_v53, %v1328_v53  ;;  %5635 = vst [vmem:[#allocation150_spill] sm:$0xff] %v4258_v31  ;;  %5636 = vst [vmem:[#allocation151_spill] sm:$0xff] %v4260_v16  ;;  %v4264_v5 = vmul.f32 %v1332_v32, %v1332_v32  ;;  %v4266_v1 = vmul.f32 %v1333_v54, %v1333_v54 }
 0x13c   :  { %5631 = vst [vmem:[#allocation146_spill] sm:$0xff] %v4246_v35  ;;  %5633 = vst [vmem:[#allocation148_spill] sm:$0xff] %v4254_v17  ;;  %v4268_v11 = vmul.f32 %v1334_v15, %v1334_v15  ;;  %v4270_v61 = vmul.f32 %v1335_v14, %v1335_v14  ;;  %v4272_v56 = vmul.f32 %v1336_v44, %v1336_v44  ;;  %v1398_v15 = vmax.f32 %v4108_v48, 1e-07  ;;  %v4312_v48 = vld [vmem:[%s5157_s1 + $0xe8] sm:$0xff] }
 0x13d   :  { %5634 = vst [vmem:[#allocation149_spill] sm:$0xff] %v4256_v26  ;;  %5637 = vst [vmem:[#allocation152_spill] sm:$0xff] %v4262_v18  ;;  %v4274_v41 = vmul.f32 %v1337_v62, %v1337_v62  ;;  %v4276_v53 = vmul.f32 %v1338_v30, %v1338_v30  ;;  %v4278_v34 = vmul.f32 %v1339_v24, %v1339_v24  ;;  %v1399_v44 = vmax.f32 %v4113_v27, 1e-07  ;;  %v4307_v24 = vld [vmem:[%s5157_s1 + $0xe0] sm:$0xff] }
 0x13e   :  { %5638 = vst [vmem:[#allocation153_spill] sm:$0xff] %v4264_v5  ;;  %5639 = vst [vmem:[#allocation154_spill] sm:$0xff] %v4266_v1  ;;  %v4280_v7 = vmul.f32 %v1340_v3, %v1340_v3  ;;  %v4282_v4 = vmul.f32 %v1341_v59, %v1341_v59  ;;  %v4284_v32 = vmul.f32 %v1342_v29, %v1342_v29  ;;  %v1400_v62 = vmax.f32 %v4126_v36, 1e-07  ;;  %v4297_v3 = vld [vmem:[%s5157_s1 + $0xd8] sm:$0xff] }
 0x13f   :  { %5640 = vst [vmem:[#allocation155_spill] sm:$0xff] %v4268_v11  ;;  %5641 = vst [vmem:[#allocation156_spill] sm:$0xff] %v4270_v61  ;;  %v4286_v54 = vmul.f32 %v1343_v8, %v1343_v8  ;;  %v4289_v14 = vmul.f32 %v1344_v47, %v1344_v47  ;;  %v1401_v30 = vmax.f32 %v4131_v10, 1e-07  ;;  %v4299_v59 = vmul.f32 %v1345_v43, %v1345_v43  ;;  %v1227_v10 = vld [vmem:[%s5157_s1 + $0xf8] sm:$0xff] }
 0x140   :  { %5642 = vst [vmem:[#allocation157_spill] sm:$0xff] %v4272_v56  ;;  %5643 = vst [vmem:[#allocation158_spill] sm:$0xff] %v4274_v41  ;;  %v1402_v8 = vmax.f32 %v4136_v33, 1e-07  ;;  %v1403_v29 = vmax.f32 %v4149_v37, 1e-07  ;;  %v4314_v27 = vmul.f32 %v1346_v23, %v1346_v23  ;;  %v4325_v33 = vmul.f32 %v1347_v57, %v1347_v57 }
 0x141   :  { %5644 = vst [vmem:[#allocation159_spill] sm:$0xff] %v4276_v53  ;;  %5645 = vst [vmem:[#allocation160_spill] sm:$0xff] %v4278_v34  ;;  %v1404_v47 = vmax.f32 %v4154_v28, 1e-07  ;;  %v1405_v43 = vmax.f32 %v4159_v20, 1e-07 }
 0x142   :  { %5646 = vst [vmem:[#allocation161_spill] sm:$0xff] %v4280_v7  ;;  %5647 = vst [vmem:[#allocation162_spill] sm:$0xff] %v4282_v4  ;;  %v1406_v36 = vmax.f32 %v4172_v12, 1e-07  ;;  %v1407_v37 = vmax.f32 %v4177_v22, 1e-07  ;;  %v4331_v12 = vmul.f32 %v1348_v25, %v1348_v25 }
 0x143   :  { %5648 = vst [vmem:[#allocation163_spill] sm:$0xff] %v4284_v32  ;;  %5649 = vst [vmem:[#allocation164_spill] sm:$0xff] %v4286_v54  ;;  %v1226_v28 = vld [vmem:[%s5157_s1 + $0xf0] sm:$0xff]  ;;  %v1408_v35 = vmax.f32 %v4182_v63, 1e-07 }
 0x144   :  { %5650 = vst [vmem:[#allocation165_spill] sm:$0xff] %v4289_v14  ;;  %5651 = vst [vmem:[#allocation166_spill] sm:$0xff] %v4299_v59  ;;  %v1409_v23 = vmax.f32 %v4195_v21, 1e-07  ;;  %v5654_v20 = vmax.f32 %v3960_v38, 1e-07 }
 0x145   :  { %5652 = vst [vmem:[#allocation167_spill] sm:$0xff] %v4314_v27  ;;  %5653 = vst [vmem:[#allocation168_spill] sm:$0xff] %v4325_v33  ;;  %v1410_v22 = vmax.f32 %v4200_v50, 1e-07  ;;  %v1411_v59 = vmax.f32 %v4205_v58, 1e-07 }
 0x146   :  { %v1420_v27 = vmin.f32 %v5654_v20, 0.9999999  ;;  %5655 = vst [vmem:[#allocation169_spill] sm:$0xff] %v4331_v12  ;;  %v5656_v14 = vmax.f32 %v3965_v2, 1e-07 }
 0x147   :  { %v1412_v32 = vmax.f32 %v4218_v49, 1e-07  ;;  %v1413_v57 = vmax.f32 %v4223_v9, 1e-07  ;;  %v5657_v63 = vmax.f32 %v3970_v40, 1e-07 }
 0x148   :  { %v1421_v54 = vmin.f32 %v5656_v14, 0.9999999  ;;  %2346 = vlog2.f32 %v1420_v27  ;;  %v1414_v38 = vmax.f32 %v4228_v52, 1e-07  ;;  %v1415_v25 = vmax.f32 %v4297_v3, 1e-07 }
 0x149   :  { %v1422_v33 = vmin.f32 %v5657_v63, 0.9999999  ;;  %v5658_v21 = vmax.f32 %v3975_v60, 1e-07  ;;  %v1416_v58 = vmax.f32 %v4307_v24, 1e-07 }
 0x14a   :  { %2348 = vlog2.f32 %v1421_v54  ;;  %v1417_v2 = vmax.f32 %v4312_v48, 1e-07  ;;  %v5659_v49 = vmax.f32 %v3980_v46, 1e-07  ;;  %v1418_v9 = vmax.f32 %v1226_v28, 1e-07 }
 0x14b   :  { %v1423_v50 = vmin.f32 %v5658_v21, 0.9999999  ;;  %2350 = vlog2.f32 %v1422_v33  ;;  %v1419_v40 = vmax.f32 %v1227_v10, 1e-07  ;;  %v5660_v20 = vmax.f32 %v3985_v45, 1e-07 }
 0x14c   :  { %v1424_v14 = vmin.f32 %v5659_v49, 0.9999999  ;;  %v5661_v52 = vmax.f32 %v3990_v55, 1e-07  ;;  %v5662_v60 = vmax.f32 %v3995_v19, 1e-07 }
 0x14d   :  { %v1425_v63 = vmin.f32 %v5660_v20, 0.9999999  ;;  %2352 = vlog2.f32 %v1423_v50  ;;  %v5663_v24 = vmax.f32 %v4002_v13, 1e-07  ;;  %v5664_v46 = vmax.f32 %v4007_v51, 1e-07 }
 0x14e   :  { %v1426_v3 = vmin.f32 %v5661_v52, 0.9999999  ;;  %v1427_v21 = vmin.f32 %v5662_v60, 0.9999999  ;;  %2354 = vlog2.f32 %v1424_v14  ;;  %v1430_v49 = vmin.f32 %v1398_v15, 0.9999999 }
 0x14f   :  { %v1428_v12 = vmin.f32 %v5663_v24, 0.9999999  ;;  %v1429_v48 = vmin.f32 %v5664_v46, 0.9999999  ;;  %v1431_v28 = vmin.f32 %v1399_v44, 0.9999999  ;;  %2356 = vlog2.f32 %v1425_v63 }
 0x150   :  { %v1432_v10 = vmin.f32 %v1400_v62, 0.9999999  ;;  %v1433_v45 = vmin.f32 %v1401_v30, 0.9999999  ;;  %v1434_v20 = vmin.f32 %v1402_v8, 0.9999999  ;;  %2358 = vlog2.f32 %v1426_v3 }
 0x151   :  { %v1435_v4 = vmin.f32 %v1403_v29, 0.9999999  ;;  %v4359_v55 = vmin.f32 %v1404_v47, 0.9999999  ;;  %v4361_v52 = vmin.f32 %v1405_v43, 0.9999999  ;;  %2360 = vlog2.f32 %v1427_v21 }
 0x152   :  { %v4363_v19 = vmin.f32 %v1406_v36, 0.9999999  ;;  %v4365_v13 = vmin.f32 %v1407_v37, 0.9999999  ;;  %v4367_v60 = vmin.f32 %v1408_v35, 0.9999999  ;;  %2362 = vlog2.f32 %v1428_v12  ;;  %v2347_v62 = vpop.eup %2346 }
 0x153   :  { %v4369_v51 = vmin.f32 %v1409_v23, 0.9999999  ;;  %v4371_v15 = vmin.f32 %v1410_v22, 0.9999999  ;;  %v4373_v44 = vmin.f32 %v1411_v59, 0.9999999  ;;  %2364 = vlog2.f32 %v1429_v48 }
 0x154   :  { %v4375_v30 = vmin.f32 %v1412_v32, 0.9999999  ;;  %v4377_v8 = vmin.f32 %v1413_v57, 0.9999999  ;;  %v4379_v29 = vmin.f32 %v1414_v38, 0.9999999  ;;  %2366 = vlog2.f32 %v1430_v49  ;;  %v2349_v47 = vpop.eup %2348 }
 0x155   :  { %v4381_v43 = vmin.f32 %v1415_v25, 0.9999999  ;;  %v4383_v35 = vmin.f32 %v1416_v58, 0.9999999  ;;  %v4385_v36 = vmin.f32 %v1417_v2, 0.9999999  ;;  %2368 = vlog2.f32 %v1431_v28  ;;  %v2351_v37 = vpop.eup %2350 }
 0x156   :  { %v4387_v59 = vmin.f32 %v1418_v9, 0.9999999  ;;  %v4389_v23 = vmin.f32 %v1419_v40, 0.9999999  ;;  %2370 = vlog2.f32 %v1432_v10  ;;  %v4391_v32 = vsub.f32 0.0, %v1420_v27 }
 0x157   :  { %v2353_v22 = vpop.eup %2352  ;;  %2372 = vlog2.f32 %v1433_v45  ;;  %v4393_v57 = vsub.f32 0.0, %v1421_v54  ;;  %v4395_v38 = vsub.f32 0.0, %v1422_v33  ;;  %v4397_v25 = vsub.f32 0.0, %v1423_v50 }
 0x158   :  { %v2355_v58 = vpop.eup %2354  ;;  %v4399_v2 = vmul.f32 0.6931472, %v2347_v62  ;;  %2374 = vlog2.f32 %v1434_v20  ;;  %v4401_v24 = vsub.f32 0.0, %v1424_v14  ;;  %v4403_v9 = vsub.f32 0.0, %v1425_v63 }
 0x159   :  { %v2357_v40 = vpop.eup %2356  ;;  %v4405_v46 = vmul.f32 0.6931472, %v2349_v47  ;;  %2376 = vlog2.f32 %v1435_v4  ;;  %v4407_v27 = vsub.f32 0.0, %v1426_v3  ;;  %v4409_v54 = vsub.f32 0.0, %v1427_v21 }
 0x15a   :  { %v2359_v33 = vpop.eup %2358  ;;  %v4411_v7 = vmul.f32 0.6931472, %v2351_v37  ;;  %2378 = vlog2.f32 %v4359_v55  ;;  %v4414_v50 = vsub.f32 0.0, %v1428_v12  ;;  %v4416_v62 = vsub.f32 0.0, %v1429_v48 }
 0x15b   :  { %v2361_v14 = vpop.eup %2360  ;;  %v4418_v63 = vmul.f32 0.6931472, %v2353_v22  ;;  %2380 = vlog2.f32 %v4361_v52  ;;  %v4421_v47 = vsub.f32 0.0, %v1430_v49  ;;  %v4423_v3 = vsub.f32 0.0, %v1431_v28 }
 0x15c   :  { %v2363_v21 = vpop.eup %2362  ;;  %v4425_v34 = vmul.f32 0.6931472, %v2355_v58  ;;  %2382 = vlog2.f32 %v4363_v19  ;;  %v4428_v37 = vsub.f32 0.0, %v1432_v10  ;;  %v4430_v12 = vsub.f32 0.0, %v1433_v45 }
 0x15d   :  { %v2365_v48 = vpop.eup %2364  ;;  %v4432_v53 = vmul.f32 0.6931472, %v2357_v40  ;;  %2384 = vlog2.f32 %v4365_v13  ;;  %v4435_v22 = vsub.f32 0.0, %v1434_v20  ;;  %v4437_v49 = vsub.f32 0.0, %v1435_v4 }
 0x15e   :  { %v2367_v28 = vpop.eup %2366  ;;  %v4439_v41 = vmul.f32 0.6931472, %v2359_v33  ;;  %2386 = vlog2.f32 %v4367_v60  ;;  %v4443_v58 = vsub.f32 0.0, %v4359_v55  ;;  %v4446_v10 = vsub.f32 0.0, %v4361_v52 }
 0x15f   :  { %5665 = vst [vmem:[#allocation170_spill] sm:$0xff] %v4432_v53  ;;  %v2369_v45 = vpop.eup %2368  ;;  %v4448_v40 = vmul.f32 0.6931472, %v2361_v14  ;;  %2388 = vlog2.f32 %v4369_v51  ;;  %v4452_v20 = vsub.f32 0.0, %v4363_v19  ;;  %v4455_v4 = vsub.f32 0.0, %v4365_v13 }
 0x160   :  { %5666 = vst [vmem:[#allocation171_spill] sm:$0xff] %v4439_v41  ;;  %v2371_v33 = vpop.eup %2370  ;;  %v4457_v56 = vmul.f32 0.6931472, %v2363_v21  ;;  %2390 = vlog2.f32 %v4371_v15  ;;  %v4461_v55 = vsub.f32 0.0, %v4367_v60  ;;  %v4464_v52 = vsub.f32 0.0, %v4369_v51 }
 0x161   :  { %5667 = vst [vmem:[#allocation172_spill] sm:$0xff] %v4448_v40  ;;  %v2373_v14 = vpop.eup %2372  ;;  %v4466_v61 = vmul.f32 0.6931472, %v2365_v48  ;;  %2392 = vlog2.f32 %v4373_v44  ;;  %v4470_v19 = vsub.f32 0.0, %v4371_v15  ;;  %v4473_v13 = vsub.f32 0.0, %v4373_v44 }
 0x162   :  { %5668 = vst [vmem:[#allocation173_spill] sm:$0xff] %v4457_v56  ;;  %v2375_v21 = vpop.eup %2374  ;;  %v4475_v11 = vmul.f32 0.6931472, %v2367_v28  ;;  %2394 = vlog2.f32 %v4375_v30  ;;  %v4479_v60 = vsub.f32 0.0, %v4375_v30  ;;  %v4482_v51 = vsub.f32 0.0, %v4377_v8 }
 0x163   :  { %5669 = vst [vmem:[#allocation174_spill] sm:$0xff] %v4466_v61  ;;  %v2377_v48 = vpop.eup %2376  ;;  %2396 = vlog2.f32 %v4377_v8  ;;  %v4486_v15 = vsub.f32 0.0, %v4379_v29  ;;  %v4489_v44 = vsub.f32 0.0, %v4381_v43  ;;  %v1551_v28 = vmul.f32 -0.5, %v4391_v32 }
 0x164   :  { %5670 = vst [vmem:[#allocation175_spill] sm:$0xff] %v4475_v11  ;;  %v2379_v1 = vpop.eup %2378  ;;  %v4492_v5 = vmul.f32 0.6931472, %v2369_v45  ;;  %2398 = vlog2.f32 %v4379_v29  ;;  %v4496_v30 = vsub.f32 0.0, %v4383_v35  ;;  %v4499_v18 = vsub.f32 0.0, %v4385_v36 }
 0x165   :  { %5671 = vst [vmem:[#allocation176_spill] sm:$0xff] %v4489_v44  ;;  %v2381_v8 = vpop.eup %2380  ;;  %v4501_v16 = vmul.f32 0.6931472, %v2371_v33  ;;  %2400 = vlog2.f32 %v4381_v43  ;;  %v1548_v31 = vadd.f32 1.0, %v4391_v32  ;;  %v1560_v26 = vmul.f32 -0.5, %v4393_v57 }
 0x166   :  { %5672 = vst [vmem:[#allocation177_spill] sm:$0xff] %v4492_v5  ;;  %5673 = vst [vmem:[#allocation178_spill] sm:$0xff] %v4496_v30  ;;  %v2383_v17 = vpop.eup %2382  ;;  %2402 = vlog2.f32 %v4383_v35  ;;  %v4508_v29 = vsub.f32 0.0, %v4387_v59  ;;  %v4511_v45 = vsub.f32 0.0, %v4389_v23  ;;  %v1557_v5 = vadd.f32 1.0, %v4393_v57 }
 0x167   :  { %5674 = vst [vmem:[#allocation179_spill] sm:$0xff] %v4499_v18  ;;  %5675 = vst [vmem:[#allocation180_spill] sm:$0xff] %v4501_v16  ;;  %v2385_v11 = vpop.eup %2384  ;;  %v4514_v33 = vmul.f32 0.6931472, %v2373_v14  ;;  %2404 = vlog2.f32 %v4385_v36  ;;  %v1552_v43 = vadd.f32 1.0, %v1551_v28  ;;  %v1566_v16 = vadd.f32 1.0, %v4395_v38 }
 0x168   :  { %5676 = vst [vmem:[#allocation181_spill] sm:$0xff] %v4508_v29  ;;  %5677 = vst [vmem:[#allocation182_spill] sm:$0xff] %v4511_v45  ;;  %v2387_v18 = vpop.eup %2386  ;;  %v4518_v39 = vmul.f32 0.6931472, %v2375_v21  ;;  %2406 = vlog2.f32 %v4387_v59  ;;  %v1554_v35 = vand.u32 2147483647, %v4391_v32 }
 0x169   :  { %5678 = vst [vmem:[#allocation183_spill] sm:$0xff] %v4514_v33  ;;  %v1575_v29 = vadd.f32 1.0, %v4397_v25  ;;  %v2389_v45 = vpop.eup %2388  ;;  %v4523_v61 = vmul.f32 0.6931472, %v2377_v48  ;;  %2408 = vlog2.f32 %v1548_v31  ;;  %v1561_v14 = vadd.f32 1.0, %v1560_v26 }
 0x16a   :  { %5679 = vst [vmem:[#allocation184_spill] sm:$0xff] %v4518_v39  ;;  %v1584_v33 = vadd.f32 1.0, %v4401_v24  ;;  %v2391_v36 = vpop.eup %2390  ;;  %v4526_v28 = vmul.f32 0.6931472, %v2379_v1  ;;  %2410 = vlog2.f32 %v1557_v5  ;;  %v1563_v21 = vand.u32 2147483647, %v4393_v57 }
 0x16b   :  { %5680 = vst [vmem:[#allocation185_spill] sm:$0xff] %v4523_v61  ;;  %v1569_v39 = vmul.f32 -0.5, %v4395_v38  ;;  %v2393_v59 = vpop.eup %2392  ;;  %v4530_v56 = vmul.f32 0.6931472, %v2381_v8  ;;  %v4533_v40 = vmul.f32 %v1552_v43, %v4391_v32  ;;  %2412 = vlog2.f32 %v1566_v16 }
 0x16c   :  { %5681 = vst [vmem:[#allocation186_spill] sm:$0xff] %v4526_v28  ;;  %v1593_v31 = vadd.f32 1.0, %v4403_v9  ;;  %v2395_v26 = vpop.eup %2394  ;;  %v4536_v48 = vmul.f32 0.6931472, %v2383_v17  ;;  %2414 = vlog2.f32 %v1575_v29  ;;  %v1578_v1 = vmul.f32 -0.5, %v4397_v25 }
 0x16d   :  { %5682 = vst [vmem:[#allocation187_spill] sm:$0xff] %v4530_v56  ;;  %v1602_v5 = vadd.f32 1.0, %v4407_v27  ;;  %v2397_v28 = vpop.eup %2396  ;;  %v4540_v61 = vmul.f32 0.6931472, %v2385_v11  ;;  %v4542_v41 = vmul.f32 0.6931472, %v2387_v18  ;;  %v4545_v8 = vmul.f32 %v1561_v14, %v4393_v57 }
 0x16e   :  { %5683 = vst [vmem:[#allocation188_spill] sm:$0xff] %v4536_v48  ;;  %2416 = vlog2.f32 %v1584_v33  ;;  %v2399_v16 = vpop.eup %2398  ;;  %v4547_v32 = vmul.f32 0.6931472, %v2389_v45  ;;  %v1570_v43 = vadd.f32 1.0, %v1569_v39  ;;  %v1572_v17 = vand.u32 2147483647, %v4395_v38 }
 0x16f   :  { %5684 = vst [vmem:[#allocation189_spill] sm:$0xff] %v4540_v61  ;;  %5685 = vst [vmem:[#allocation190_spill] sm:$0xff] %v4542_v41  ;;  %v1587_v29 = vmul.f32 -0.5, %v4401_v24  ;;  %v2401_v48 = vpop.eup %2400  ;;  %v4551_v56 = vmul.f32 0.6931472, %v2391_v36  ;;  %2418 = vlog2.f32 %v1593_v31  ;;  %v1596_v57 = vmul.f32 -0.5, %v4403_v9 }
 0x170   :  { %5686 = vst [vmem:[#allocation191_spill] sm:$0xff] %v4547_v32  ;;  %vm4553_vm0 = vcmp.lt.f32.partialorder %v1554_v35, 0.0004427343  ;;  %v1581_v18 = vand.u32 2147483647, %v4397_v25  ;;  %v2403_v33 = vpop.eup %2402  ;;  %v1579_v14 = vadd.f32 1.0, %v1578_v1  ;;  %2420 = vlog2.f32 %v1602_v5 }
 0x171   :  { %5687 = vst [vmem:[#allocation192_spill] sm:$0xff] %v4551_v56  ;;  %v4559_v45 = vmul.f32 0.6931472, %v2393_v59  ;;  %vm4561_vm1 = vcmp.lt.f32.partialorder %v1563_v21, 0.0004427343  ;;  %v2405_v35 = vpop.eup %2404  ;;  %2422 = vlog2.f32 %v4389_v23  ;;  %v1605_v31 = vmul.f32 -0.5, %v4407_v27 }
 0x172   :  { %v1590_v36 = vand.u32 2147483647, %v4401_v24  ;;  %v4566_v56 = vmul.f32 0.6931472, %v2395_v26  ;;  %v4568_v32 = vmul.f32 0.6931472, %v2397_v28  ;;  %v4572_v41 = vpop.eup %2406  ;;  %v1571_v26 = vmul.f32 %v1570_v43, %v4395_v38 }
 0x173   :  { %5690 = vst [vmem:[#allocation193_spill] sm:$0xff] %v4559_v45  ;;  %5695 = vst [vmem:[#allocation196_spill] sm:$0xff] %v4572_v41  ;;  %v4574_v59 = vmul.f32 0.6931472, %v2399_v16  ;;  %v1588_v21 = vadd.f32 1.0, %v1587_v29  ;;  %v1611_v1 = vadd.f32 1.0, %v4409_v54  ;;  %v2409_v61 = vpop.eup %2408 }
 0x174   :  { %5693 = vst [vmem:[#allocation194_spill] sm:$0xff] %v4566_v56  ;;  %5694 = vst [vmem:[#allocation195_spill] sm:$0xff] %v4568_v32  ;;  %v1599_v45 = vand.u32 2147483647, %v4403_v9  ;;  %v4578_v5 = vmul.f32 0.6931472, %v2401_v48  ;;  %v2411_v41 = vpop.eup %2410  ;;  %v1580_v32 = vmul.f32 %v1579_v14, %v4397_v25 }
 0x175   :  { %5696 = vst [vmem:[#allocation197_spill] sm:$0xff] %v4574_v59  ;;  %vm4581_vm2 = vcmp.lt.f32.partialorder %v1572_v17, 0.0004427343  ;;  %vm4585_vm3 = vcmp.lt.f32.partialorder %v1581_v18, 0.0004427343  ;;  %v1597_v16 = vadd.f32 1.0, %v1596_v57  ;;  %v2413_v43 = vpop.eup %2412  ;;  %2424 = vlog2.f32 %v1611_v1 }
 0x176   :  { %5697 = vst [vmem:[#allocation198_spill] sm:$0xff] %v4578_v5  ;;  %v1608_v29 = vand.u32 2147483647, %v4407_v27  ;;  %v4590_v59 = vmul.f32 0.6931472, %v2403_v33  ;;  %v1620_v38 = vadd.f32 1.0, %v4414_v50  ;;  %v2415_v56 = vpop.eup %2414  ;;  %v1589_v33 = vmul.f32 %v1588_v21, %v4401_v24 }
 0x177   :  { %vm4593_vm4 = vcmp.lt.f32.partialorder %v1590_v36, 0.0004427343  ;;  %v4598_v17 = vmul.f32 0.6931472, %v2405_v35  ;;  %v1606_v18 = vadd.f32 1.0, %v1605_v31  ;;  %v1614_v5 = vmul.f32 -0.5, %v4409_v54 }
 0x178   :  { %5702 = vst [vmem:[#allocation199_spill] sm:$0xff] %v4590_v59  ;;  %v1629_v57 = vadd.f32 1.0, %v4416_v62  ;;  %v1550_v30 = vmul.f32 0.6931472, %v2409_v61  ;;  %vm4603_vm5 = vcmp.lt.f32.partialorder %v1599_v45, 0.0004427343  ;;  %v2417_v14 = vpop.eup %2416  ;;  %v1598_v59 = vmul.f32 %v1597_v16, %v4403_v9 }
 0x179   :  { %5705 = vst [vmem:[#allocation200_spill] sm:$0xff] %v4598_v17  ;;  %v1559_v36 = vmul.f32 0.6931472, %v2411_v41  ;;  %vm4608_vm6 = vcmp.lt.f32.partialorder %v1608_v29, 0.0004427343  ;;  %v1623_v31 = vmul.f32 -0.5, %v4414_v50  ;;  %2426 = vlog2.f32 %v1620_v38  ;;  %v2419_v45 = vpop.eup %2418 }
 0x17a   :  { %v1617_v17 = vand.u32 2147483647, %v4409_v54  ;;  %v1638_v61 = vadd.f32 1.0, %v4421_v47  ;;  %v4617_v24 = vadd.f32 %v4250_v0, %v4248_v42  ;;  %v1607_v41 = vmul.f32 %v1606_v18, %v4407_v27  ;;  %v2421_v1 = vpop.eup %2420 }
 0x17b   :  { %v1615_v21 = vadd.f32 1.0, %v1614_v5  ;;  %2428 = vlog2.f32 %v1629_v57  ;;  %v1632_v9 = vmul.f32 -0.5, %v4416_v62  ;;  %v4624_v16 = vsel %vm4553_vm0, %v4533_v40, %v1550_v30  ;;  %v4626_v44 = vpop.eup %2422 }
 0x17c   :  { %v1568_v29 = vmul.f32 0.6931472, %v2413_v43  ;;  %v1577_v38 = vmul.f32 0.6931472, %v2415_v56  ;;  %v1586_v53 = vmul.f32 0.6931472, %v2417_v14  ;;  %v4631_v42 = vsel %vm4561_vm1, %v4545_v8, %v1559_v36 }
 0x17d   :  { %v1624_v0 = vadd.f32 1.0, %v1623_v31  ;;  %v1626_v27 = vand.u32 2147483647, %v4414_v50  ;;  %v1641_v5 = vmul.f32 -0.5, %v4421_v47  ;;  %v1595_v18 = vmul.f32 0.6931472, %v2419_v45 }
 0x17e   :  { %vm4635_vm7 = vcmp.lt.f32.partialorder %v1617_v17, 0.0004427343  ;;  %v1635_v56 = vand.u32 2147483647, %v4416_v62  ;;  %2430 = vlog2.f32 %v1638_v61  ;;  %v1647_v40 = vadd.f32 1.0, %v4423_v3 }
 0x17f   :  { %v1604_v30 = vmul.f32 0.6931472, %v2421_v1  ;;  %v1616_v39 = vmul.f32 %v1615_v21, %v4409_v54  ;;  %v1633_v8 = vadd.f32 1.0, %v1632_v9  ;;  %v1656_v43 = vadd.f32 1.0, %v4428_v37  ;;  %v2425_v23 = vpop.eup %2424 }
 0x180   :  { %v4645_v57 = vsel %vm4581_vm2, %v1571_v26, %v1568_v29  ;;  %v4649_v17 = vsel %vm4585_vm3, %v1580_v32, %v1577_v38  ;;  %v4653_v14 = vsel %vm4593_vm4, %v1589_v33, %v1586_v53  ;;  %v1644_v36 = vand.u32 2147483647, %v4421_v47 }
 0x181   :  { %v1625_v31 = vmul.f32 %v1624_v0, %v4414_v50  ;;  %vm4657_vm8 = vcmp.lt.f32.partialorder %v1626_v27, 0.0004427343  ;;  %v1642_v61 = vadd.f32 1.0, %v1641_v5  ;;  %v1650_v26 = vmul.f32 -0.5, %v4423_v3 }
 0x182   :  { %v1659_v28 = vmul.f32 -0.5, %v4428_v37  ;;  %v4665_v32 = vsel %vm4603_vm5, %v1598_v59, %v1595_v18  ;;  %vm4667_vm9 = vcmp.lt.f32.partialorder %v1635_v56, 0.0004427343  ;;  %2432 = vlog2.f32 %v1647_v40 }
 0x183   :  { %v1665_v50 = vadd.f32 1.0, %v4430_v12  ;;  %v4674_v48 = vsel %vm4608_vm6, %v1607_v41, %v1604_v30  ;;  %v1634_v33 = vmul.f32 %v1633_v8, %v4416_v62  ;;  %2434 = vlog2.f32 %v1656_v43  ;;  %v2427_v21 = vpop.eup %2426 }
 0x184   :  { %v1674_v45 = vadd.f32 1.0, %v4435_v22  ;;  %vm4678_vm10 = vcmp.lt.f32.partialorder %v1644_v36, 0.0004427343  ;;  %v1653_v25 = vand.u32 2147483647, %v4423_v3  ;;  %v1668_v9 = vmul.f32 -0.5, %v4430_v12 }
 0x185   :  { %v1683_v1 = vadd.f32 1.0, %v4437_v49  ;;  %v2429_v29 = vpop.eup %2428  ;;  %v1613_v35 = vmul.f32 0.6931472, %v2425_v23  ;;  %v1643_v41 = vmul.f32 %v1642_v61, %v4421_v47  ;;  %v1651_v38 = vadd.f32 1.0, %v1650_v26 }
 0x186   :  { %v1660_v62 = vadd.f32 1.0, %v1659_v28  ;;  %v1662_v0 = vand.u32 2147483647, %v4428_v37  ;;  %2436 = vlog2.f32 %v1665_v50  ;;  %v1677_v27 = vmul.f32 -0.5, %v4435_v22 }
 0x187   :  { %v1692_v5 = vadd.f32 1.0, %v4443_v58  ;;  %v1622_v18 = vmul.f32 0.6931472, %v2427_v21  ;;  %v1671_v56 = vand.u32 2147483647, %v4430_v12  ;;  %2438 = vlog2.f32 %v1674_v45 }
 0x188   :  { %v1701_v40 = vadd.f32 1.0, %v4446_v10  ;;  %v2431_v30 = vpop.eup %2430  ;;  %v1631_v8 = vmul.f32 0.6931472, %v2429_v29  ;;  %v1669_v43 = vadd.f32 1.0, %v1668_v9  ;;  %2440 = vlog2.f32 %v1683_v1 }
 0x189   :  { %v1686_v47 = vmul.f32 -0.5, %v4437_v49  ;;  %v4694_v36 = vsel %vm4635_vm7, %v1616_v39, %v1613_v35  ;;  %v1652_v61 = vmul.f32 %v1651_v38, %v4423_v3  ;;  %vm4697_vm11 = vcmp.lt.f32.partialorder %v1653_v25, 0.0004427343 }
 0x18a   :  { %v1661_v28 = vmul.f32 %v1660_v62, %v4428_v37  ;;  %v1678_v23 = vadd.f32 1.0, %v1677_v27  ;;  %v1680_v50 = vand.u32 2147483647, %v4435_v22  ;;  %2442 = vlog2.f32 %v1692_v5 }
 0x18b   :  { %v1710_v45 = vadd.f32 1.0, %v4452_v20  ;;  %v1640_v21 = vmul.f32 0.6931472, %v2431_v30  ;;  %vm4704_vm12 = vcmp.lt.f32.partialorder %v1662_v0, 0.0004427343  ;;  %v1695_v11 = vmul.f32 -0.5, %v4443_v58 }
 0x18c   :  { %2444 = vlog2.f32 %v1701_v40  ;;  %v2433_v3 = vpop.eup %2432  ;;  %v4711_v39 = vsel %vm4657_vm8, %v1625_v31, %v1622_v18  ;;  %v4715_v37 = vsel %vm4667_vm9, %v1634_v33, %v1631_v8  ;;  %v1670_v25 = vmul.f32 %v1669_v43, %v4430_v12 }
 0x18d   :  { %vm4718_vm13 = vcmp.lt.f32.partialorder %v1671_v56, 0.0004427343  ;;  %v1687_v29 = vadd.f32 1.0, %v1686_v47  ;;  %v2435_v35 = vpop.eup %2434  ;;  %v1689_v38 = vand.u32 2147483647, %v4437_v49  ;;  %v1704_v54 = vmul.f32 -0.5, %v4446_v10 }
 0x18e   :  { %v1698_v62 = vand.u32 2147483647, %v4443_v58  ;;  %v1719_v31 = vadd.f32 1.0, %v4455_v4  ;;  %v1679_v53 = vmul.f32 %v1678_v23, %v4435_v22  ;;  %vm4727_vm14 = vcmp.lt.f32.partialorder %v1680_v50, 0.0004427343 }
 0x18f   :  { %2446 = vlog2.f32 %v1710_v45  ;;  %v1728_v12 = vadd.f32 1.0, %v4461_v55  ;;  %v4734_v0 = vsel %vm4678_vm10, %v1643_v41, %v1640_v21  ;;  %v1649_v27 = vmul.f32 0.6931472, %v2433_v3 }
 0x190   :  { %v1696_v5 = vadd.f32 1.0, %v1695_v11  ;;  %v1707_v18 = vand.u32 2147483647, %v4446_v10  ;;  %v2437_v56 = vpop.eup %2436  ;;  %v1658_v40 = vmul.f32 0.6931472, %v2435_v35  ;;  %v1688_v30 = vmul.f32 %v1687_v29, %v4437_v49 }
 0x191   :  { %v1713_v22 = vmul.f32 -0.5, %v4452_v20  ;;  %v1716_v8 = vand.u32 2147483647, %v4452_v20  ;;  %v2439_v43 = vpop.eup %2438  ;;  %vm4740_vm15 = vcmp.lt.f32.partialorder %v1689_v38, 0.0004427343  ;;  %v1705_v41 = vadd.f32 1.0, %v1704_v54 }
 0x192   :  { %vm4744_vm0 = vcmp.lt.f32.partialorder %v1698_v62, 0.0004427343  ;;  %2448 = vlog2.f32 %v1719_v31  ;;  %v2441_v23 = vpop.eup %2440  ;;  %v1722_v50 = vmul.f32 -0.5, %v4455_v4  ;;  %v1731_v49 = vmul.f32 -0.5, %v4461_v55 }
 0x193   :  { %2450 = vlog2.f32 %v1728_v12  ;;  %v1737_v45 = vadd.f32 1.0, %v4464_v52  ;;  %v4753_v21 = vsel %vm4697_vm11, %v1652_v61, %v1649_v27  ;;  %v1667_v11 = vmul.f32 0.6931472, %v2437_v56 }
 0x194   :  { %v1697_v3 = vmul.f32 %v1696_v5, %v4443_v58  ;;  %vm4756_vm1 = vcmp.lt.f32.partialorder %v1707_v18, 0.0004427343  ;;  %v2443_v35 = vpop.eup %2442  ;;  %v4762_v38 = vsel %vm4704_vm12, %v1661_v28, %v1658_v40  ;;  %v1714_v62 = vadd.f32 1.0, %v1713_v22 }
 0x195   :  { %vm4764_vm2 = vcmp.lt.f32.partialorder %v1716_v8, 0.0004427343  ;;  %v1725_v61 = vand.u32 2147483647, %v4455_v4  ;;  %v1676_v31 = vmul.f32 0.6931472, %v2439_v43  ;;  %v1706_v58 = vmul.f32 %v1705_v41, %v4446_v10 }
 0x196   :  { %v2445_v26 = vpop.eup %2444  ;;  %v1685_v12 = vmul.f32 0.6931472, %v2441_v23  ;;  %v1740_v27 = vmul.f32 -0.5, %v4464_v52  ;;  %v1723_v5 = vadd.f32 1.0, %v1722_v50  ;;  %v1732_v18 = vadd.f32 1.0, %v1731_v49 }
 0x197   :  { %v1734_v9 = vand.u32 2147483647, %v4461_v55  ;;  %2452 = vlog2.f32 %v1737_v45  ;;  %v4774_v28 = vsel %vm4718_vm13, %v1670_v25, %v1667_v11  ;;  %v1694_v56 = vmul.f32 0.6931472, %v2443_v35 }
 0x198   :  { %v1746_v40 = vadd.f32 1.0, %v4470_v19  ;;  %v1749_v22 = vmul.f32 -0.5, %v4470_v19  ;;  %v1703_v43 = vmul.f32 0.6931472, %v2445_v26  ;;  %v1715_v10 = vmul.f32 %v1714_v62, %v4452_v20 }
 0x199   :  { %v2447_v8 = vpop.eup %2446  ;;  %vm4779_vm3 = vcmp.lt.f32.partialorder %v1725_v61, 0.0004427343  ;;  %v1743_v23 = vand.u32 2147483647, %v4464_v52  ;;  %v4786_v1 = vsel %vm4727_vm14, %v1679_v53, %v1676_v31  ;;  %v1741_v25 = vadd.f32 1.0, %v1740_v27 }
 0x19a   :  { %v1755_v50 = vadd.f32 1.0, %v4473_v13  ;;  %v1758_v49 = vmul.f32 -0.5, %v4473_v13  ;;  %v4792_v45 = vsel %vm4740_vm15, %v1688_v30, %v1685_v12  ;;  %v1724_v20 = vmul.f32 %v1723_v5, %v4455_v4 }
 0x19b   :  { %v1733_v11 = vmul.f32 %v1732_v18, %v4461_v55  ;;  %vm4796_vm4 = vcmp.lt.f32.partialorder %v1734_v9, 0.0004427343  ;;  %v4802_v53 = vsel %vm4744_vm0, %v1697_v3, %v1694_v56  ;;  %v1712_v62 = vmul.f32 0.6931472, %v2447_v8 }
 0x19c   :  { %v2449_v33 = vpop.eup %2448  ;;  %2454 = vlog2.f32 %v1746_v40  ;;  %v1750_v61 = vadd.f32 1.0, %v1749_v22  ;;  %v4806_v30 = vsel %vm4756_vm1, %v1706_v58, %v1703_v43  ;;  %vm4808_vm5 = vcmp.lt.f32.partialorder %v1743_v23, 0.0004427343 }
 0x19d   :  { %v2451_v26 = vpop.eup %2450  ;;  %v1752_v55 = vand.u32 2147483647, %v4470_v19  ;;  %v1764_v47 = vadd.f32 1.0, %v4479_v60  ;;  %v1767_v59 = vmul.f32 -0.5, %v4479_v60  ;;  %v1742_v3 = vmul.f32 %v1741_v25, %v4464_v52  ;;  %v5742_v25 = vld [vmem:[#allocation114_spill] sm:$0xff] }
 0x19e   :  { %2456 = vlog2.f32 %v1755_v50  ;;  %v1759_v31 = vadd.f32 1.0, %v1758_v49  ;;  %v1773_v12 = vadd.f32 1.0, %v4482_v51  ;;  %v1721_v27 = vmul.f32 0.6931472, %v2449_v33 }
 0x19f   :  { %v1761_v29 = vand.u32 2147483647, %v4473_v13  ;;  %v1836_v58 = vsub.f32 %v4399_v2, %v4624_v16  ;;  %v1837_v5 = vsub.f32 %v4405_v46, %v4631_v42  ;;  %v4824_v18 = vsel %vm4764_vm2, %v1715_v10, %v1712_v62 }
 0x1a0   :  { %v1730_v9 = vmul.f32 0.6931472, %v2451_v26  ;;  %v1751_v52 = vmul.f32 %v1750_v61, %v4470_v19  ;;  %v1776_v56 = vmul.f32 -0.5, %v4482_v51  ;;  %2458 = vlog2.f32 %v1764_v47  ;;  %v5765_v61 = vld [vmem:[#allocation177_spill] sm:$0xff] }
 0x1a1   :  { %v2453_v40 = vpop.eup %2452  ;;  %v1768_v22 = vadd.f32 1.0, %v1767_v59  ;;  %v1770_v8 = vand.u32 2147483647, %v4479_v60  ;;  %v1838_v2 = vsub.f32 %v4411_v7, %v4645_v57  ;;  %vm4831_vm6 = vcmp.lt.f32.partialorder %v1752_v55, 0.0004427343  ;;  %v5746_v55 = vld [vmem:[#allocation176_spill] sm:$0xff] }
 0x1a2   :  { %v4836_v46 = vmul.f32 %v1759_v31, %v4473_v13  ;;  %2460 = vlog2.f32 %v1773_v12  ;;  %v1782_v19 = vadd.f32 1.0, %v4486_v15  ;;  %v1785_v54 = vmul.f32 -0.5, %v4486_v15  ;;  %v5747_v31 = vld [vmem:[#allocation170_spill] sm:$0xff] }
 0x1a3   :  { %v4842_v10 = vsel %vm4779_vm3, %v1724_v20, %v1721_v27  ;;  %v1839_v23 = vsub.f32 %v4418_v63, %v4649_v17  ;;  %v1868_v7 = vmul.f32 %v1836_v58, %v4041_v6  ;;  %v1869_v50 = vmul.f32 %v1837_v5, %v5742_v25  ;;  %v5745_v20 = vld [vmem:[#allocation115_spill] sm:$0xff]  ;;  %v5748_v27 = vld [vmem:[#allocation116_spill] sm:$0xff] }
 0x1a4   :  { %v4850_v13 = vsel %vm4796_vm4, %v1733_v11, %v1730_v9  ;;  %v1739_v49 = vmul.f32 0.6931472, %v2453_v40  ;;  %v1777_v33 = vadd.f32 1.0, %v1776_v56  ;;  %v1779_v62 = vand.u32 2147483647, %v4482_v51  ;;  %v5749_v40 = vld [vmem:[#allocation178_spill] sm:$0xff] }
 0x1a5   :  { %vm4853_vm7 = vcmp.lt.f32.partialorder %v1761_v29, 0.0004427343  ;;  %v4858_v41 = vmul.f32 %v1768_v22, %v4479_v60  ;;  %v1788_v63 = vand.u32 2147483647, %v4486_v15  ;;  %v1840_v6 = vsub.f32 %v4425_v34, %v4653_v14 }
 0x1a6   :  { %v1870_v35 = vmul.f32 %v1838_v2, %v5745_v20  ;;  %v2455_v11 = vpop.eup %2454  ;;  %2462 = vlog2.f32 %v1782_v19  ;;  %v1786_v26 = vadd.f32 1.0, %v1785_v54  ;;  %v1791_v47 = vadd.f32 1.0, %v5746_v55  ;;  %v5750_v19 = vld [vmem:[#allocation171_spill] sm:$0xff] }
 0x1a7   :  { %v1794_v59 = vmul.f32 -0.5, %v5746_v55  ;;  %v1841_v12 = vsub.f32 %v5747_v31, %v4665_v32  ;;  %v1871_v60 = vmul.f32 %v1839_v23, %v5748_v27  ;;  %v1900_v29 = vadd.f32 %v1868_v7, %v4624_v16  ;;  %v5751_v23 = vld [vmem:[#allocation117_spill] sm:$0xff] }
 0x1a8   :  { %v1901_v58 = vadd.f32 %v1869_v50, %v4631_v42  ;;  %v2457_v5 = vpop.eup %2456  ;;  %v4873_v34 = vsel %vm4808_vm5, %v1742_v3, %v1739_v49  ;;  %v4876_v9 = vmul.f32 %v1777_v33, %v4482_v51  ;;  %v1797_v56 = vand.u32 2147483647, %v5746_v55  ;;  %v5752_v3 = vld [vmem:[#allocation172_spill] sm:$0xff]  ;;  %v5753_v49 = vld [vmem:[#allocation118_spill] sm:$0xff] }
 0x1a9   :  { %v1800_v22 = vadd.f32 1.0, %v5749_v40  ;;  %v1748_v2 = vmul.f32 0.6931472, %v2455_v11  ;;  %v1842_v54 = vsub.f32 %v5750_v19, %v4674_v48  ;;  %v1872_v16 = vmul.f32 %v1840_v6, %v5751_v23  ;;  %v5754_v6 = vld [vmem:[#allocation173_spill] sm:$0xff] }
 0x1aa   :  { %v1902_v42 = vadd.f32 %v1870_v35, %v4645_v57  ;;  %v4885_v7 = vmul.f32 %v1786_v26, %v4486_v15  ;;  %2464 = vlog2.f32 %v1791_v47  ;;  %v1795_v4 = vadd.f32 1.0, %v1794_v59  ;;  %v2459_v50 = vpop.eup %2458  ;;  %v5755_v47 = vld [vmem:[#allocation119_spill] sm:$0xff] }
 0x1ab   :  { %v1843_v25 = vsub.f32 %v5752_v3, %v4694_v36  ;;  %v1873_v33 = vmul.f32 %v1841_v12, %v5753_v49  ;;  %v1903_v20 = vadd.f32 %v1871_v60, %v4649_v17  ;;  %v1932_v11 = vsub.f32 0.0, %v1900_v29  ;;  %v5756_v29 = vld [vmem:[#allocation174_spill] sm:$0xff]  ;;  %v5779_v60 = vld [vmem:[#allocation152_spill] sm:$0xff] }
 0x1ac   :  { %v1933_v31 = vsub.f32 0.0, %v1901_v58  ;;  %v2461_v27 = vpop.eup %2460  ;;  %v1757_v19 = vmul.f32 0.6931472, %v2457_v5  ;;  %2466 = vlog2.f32 %v1800_v22  ;;  %v1803_v57 = vmul.f32 -0.5, %v5749_v40  ;;  %v5757_v5 = vld [vmem:[#allocation120_spill] sm:$0xff] }
 0x1ad   :  { %v1844_v35 = vsub.f32 %v5754_v6, %v4711_v39  ;;  %v4896_v26 = vsel %vm4831_vm6, %v1751_v52, %v1748_v2  ;;  %v1874_v59 = vmul.f32 %v1842_v54, %v5755_v47  ;;  %v1904_v12 = vadd.f32 %v1872_v16, %v4653_v14  ;;  %v5760_v2 = vld [vmem:[#allocation147_spill] sm:$0xff]  ;;  %v5763_v6 = vld [vmem:[#allocation121_spill] sm:$0xff] }
 0x1ae   :  { %v1934_v23 = vsub.f32 0.0, %v1902_v42  ;;  %v4901_v17 = vmul.f32 %v1795_v4, %v5746_v55  ;;  %v1845_v58 = vsub.f32 %v5756_v29, %v4715_v37  ;;  %v1875_v22 = vmul.f32 %v1843_v25, %v5757_v5  ;;  %v5761_v4 = vld [vmem:[#allocation179_spill] sm:$0xff] }
 0x1af   :  { %vm4907_vm8 = vcmp.lt.f32.partialorder %v1770_v8, 0.0004427343  ;;  %v1905_v52 = vadd.f32 %v1873_v33, %v4665_v32  ;;  %v1935_v43 = vsub.f32 0.0, %v1903_v20  ;;  %v1965_v14 = vadd.f32 %v4617_v24, %v5760_v2  ;;  %v5762_v8 = vld [vmem:[#allocation175_spill] sm:$0xff]  ;;  %v5764_v20 = vld [vmem:[#allocation148_spill] sm:$0xff] }
 0x1b0   :  { %v1996_v54 = vadd.f32 %v1933_v31, %v1932_v11  ;;  %v4914_v16 = vpop.eup %2462  ;;  %v4919_v42 = vsel %vm4853_vm7, %v4836_v46, %v1757_v19  ;;  %v1809_v25 = vadd.f32 1.0, %v5761_v4  ;;  %v1846_v49 = vsub.f32 %v5762_v8, %v4734_v0  ;;  %v5766_v19 = vld [vmem:[#allocation122_spill] sm:$0xff]  ;;  %v5770_v8 = vld [vmem:[#allocation180_spill] sm:$0xff] }
 0x1b1   :  { %v1876_v47 = vmul.f32 %v1844_v35, %v5763_v6  ;;  %v1906_v32 = vadd.f32 %v1874_v59, %v4674_v48  ;;  %v1936_v33 = vsub.f32 0.0, %v1904_v12  ;;  %v1966_v24 = vadd.f32 %v1965_v14, %v5764_v20  ;;  %v5769_v59 = vld [vmem:[#allocation149_spill] sm:$0xff]  ;;  %v5771_v6 = vld [vmem:[#allocation123_spill] sm:$0xff] }
 0x1b2   :  { %v1997_v11 = vadd.f32 %v1996_v54, %v1934_v23  ;;  %v1804_v31 = vadd.f32 1.0, %v1803_v57  ;;  %v1812_v29 = vmul.f32 -0.5, %v5761_v4  ;;  %v1847_v46 = vsub.f32 %v5765_v61, %v4753_v21  ;;  %v5772_v61 = vld [vmem:[#allocation150_spill] sm:$0xff] }
 0x1b3   :  { %v1877_v5 = vmul.f32 %v1845_v58, %v5766_v19  ;;  %vm4933_vm9 = vcmp.lt.f32.partialorder %v1779_v62, 0.0004427343  ;;  %v1907_v48 = vadd.f32 %v1875_v22, %v4694_v36  ;;  %v1937_v35 = vsub.f32 0.0, %v1905_v52  ;;  %v5773_v52 = vld [vmem:[#allocation181_spill] sm:$0xff] }
 0x1b4   :  { %v1967_v12 = vadd.f32 %v1966_v24, %v5769_v59  ;;  %v1998_v23 = vadd.f32 %v1997_v11, %v1935_v43  ;;  %v4939_v57 = vpop.eup %2464  ;;  %v1766_v14 = vmul.f32 0.6931472, %v2459_v50  ;;  %v1848_v58 = vsub.f32 %v5770_v8, %v4762_v38  ;;  %v5774_v50 = vld [vmem:[#allocation183_spill] sm:$0xff]  ;;  %v5775_v11 = vld [vmem:[#allocation124_spill] sm:$0xff] }
 0x1b5   :  { %v1878_v51 = vmul.f32 %v1846_v49, %v5771_v6  ;;  %v1908_v62 = vadd.f32 %v1876_v47, %v4711_v39  ;;  %v1938_v20 = vsub.f32 0.0, %v1906_v32  ;;  %2468 = vlog2.f32 %v1809_v25  ;;  %v5776_v49 = vld [vmem:[#allocation151_spill] sm:$0xff] }
 0x1b6   :  { %v1968_v19 = vadd.f32 %v1967_v12, %v5772_v61  ;;  %v1999_v36 = vadd.f32 %v1998_v23, %v1936_v33  ;;  %v4947_v22 = vpop.eup %2466  ;;  %v1818_v43 = vadd.f32 1.0, %v5773_v52  ;;  %v1849_v24 = vsub.f32 %v5774_v50, %v4774_v28  ;;  %v5777_v33 = vld [vmem:[#allocation184_spill] sm:$0xff]  ;;  %v5778_v12 = vld [vmem:[#allocation125_spill] sm:$0xff] }
 0x1b7   :  { %v1879_v59 = vmul.f32 %v1847_v46, %v5775_v11  ;;  %v1909_v8 = vadd.f32 %v1877_v5, %v4715_v37  ;;  %v1939_v54 = vsub.f32 0.0, %v1907_v48  ;;  %v1775_v47 = vmul.f32 0.6931472, %v2461_v27  ;;  %v5781_v48 = vld [vmem:[#allocation126_spill] sm:$0xff] }
 0x1b8   :  { %v1969_v6 = vadd.f32 %v1968_v19, %v5776_v49  ;;  %v2000_v39 = vadd.f32 %v1999_v36, %v1937_v35  ;;  %v4956_v32 = vmul.f32 %v1804_v31, %v5749_v40  ;;  %v1850_v25 = vsub.f32 %v5777_v33, %v4786_v1  ;;  %v5780_v31 = vld [vmem:[#allocation185_spill] sm:$0xff]  ;;  %v5788_v49 = vld [vmem:[#allocation187_spill] sm:$0xff] }
 0x1b9   :  { %v1880_v23 = vmul.f32 %v1848_v58, %v5778_v12  ;;  %v1910_v61 = vadd.f32 %v1878_v51, %v4734_v0  ;;  %v1940_v50 = vsub.f32 0.0, %v1908_v62  ;;  %v4966_v37 = vsel %vm4907_vm8, %v4858_v41, %v1766_v14  ;;  %v5782_v36 = vld [vmem:[#allocation153_spill] sm:$0xff]  ;;  %v5783_v62 = vld [vmem:[#allocation186_spill] sm:$0xff]  ;;  %v5784_v41 = vld [vmem:[#allocation127_spill] sm:$0xff] }
 0x1ba   :  { %v1970_v46 = vadd.f32 %v1969_v6, %v5779_v60  ;;  %v2001_v11 = vadd.f32 %v2000_v39, %v1938_v20  ;;  %v1813_v27 = vadd.f32 1.0, %v1812_v29  ;;  %v1851_v5 = vsub.f32 %v5780_v31, %v4792_v45 }
 0x1bb   :  { %v1881_v35 = vmul.f32 %v1849_v24, %v5781_v48  ;;  %v1911_v19 = vadd.f32 %v1879_v59, %v4753_v21  ;;  %v1941_v58 = vsub.f32 0.0, %v1909_v8  ;;  %2470 = vlog2.f32 %v1818_v43  ;;  %v5787_v24 = vld [vmem:[#allocation154_spill] sm:$0xff] }
 0x1bc   :  { %v1971_v0 = vadd.f32 %v1970_v46, %v5782_v36  ;;  %v2002_v51 = vadd.f32 %v2001_v11, %v1939_v54  ;;  %v1821_v60 = vmul.f32 -0.5, %v5773_v52  ;;  %v1852_v3 = vsub.f32 %v5783_v62, %v4802_v53  ;;  %v5793_v46 = vld [vmem:[#allocation129_spill] sm:$0xff] }
 0x1bd   :  { %v1882_v14 = vmul.f32 %v1850_v25, %v5784_v41  ;;  %vm4979_vm10 = vcmp.lt.f32.partialorder %v1788_v63, 0.0004427343  ;;  %v1912_v21 = vadd.f32 %v1880_v23, %v4762_v38  ;;  %v1942_v20 = vsub.f32 0.0, %v1910_v61  ;;  %v5789_v63 = vld [vmem:[#allocation128_spill] sm:$0xff]  ;;  %v5790_v38 = vld [vmem:[#allocation155_spill] sm:$0xff]  ;;  %v5799_v41 = vld [vmem:[#allocation157_spill] sm:$0xff] }
 0x1be   :  { %v1972_v59 = vadd.f32 %v1971_v0, %v5787_v24  ;;  %v2003_v54 = vadd.f32 %v2002_v51, %v1940_v50  ;;  %v4988_v43 = vsel %vm4933_vm9, %v4876_v9, %v1775_v47  ;;  %v1824_v8 = vand.u32 2147483647, %v5773_v52  ;;  %v5791_v9 = vld [vmem:[#allocation182_spill] sm:$0xff]  ;;  %v5792_v47 = vld [vmem:[#allocation188_spill] sm:$0xff] }
 0x1bf   :  { %v1853_v15 = vsub.f32 %v5788_v49, %v4806_v30  ;;  %v1883_v6 = vmul.f32 %v1851_v5, %v5789_v63  ;;  %v1913_v39 = vadd.f32 %v1881_v35, %v4774_v28  ;;  %v1943_v33 = vsub.f32 0.0, %v1911_v19  ;;  %v4996_v23 = vpop.eup %2468  ;;  %v5794_v28 = vld [vmem:[#allocation156_spill] sm:$0xff]  ;;  %v5796_v0 = vld [vmem:[#allocation130_spill] sm:$0xff] }
 0x1c0   :  { %v1973_v25 = vadd.f32 %v1972_v59, %v5790_v38  ;;  %v2004_v12 = vadd.f32 %v2003_v54, %v1941_v58  ;;  %v4999_v61 = vmul.f32 %v1813_v27, %v5761_v4  ;;  %v1827_v2 = vadd.f32 1.0, %v5791_v9  ;;  %v5795_v27 = vld [vmem:[#allocation189_spill] sm:$0xff]  ;;  %v5801_v59 = vld [vmem:[#allocation131_spill] sm:$0xff] }
 0x1c1   :  { %v1854_v50 = vsub.f32 %v5792_v47, %v4824_v18  ;;  %v1884_v11 = vmul.f32 %v1852_v3, %v5793_v46  ;;  %v1914_v31 = vadd.f32 %v1882_v14, %v4786_v1  ;;  %v1944_v5 = vsub.f32 0.0, %v1912_v21  ;;  %v5806_v38 = vld [vmem:[#allocation191_spill] sm:$0xff] }
 0x1c2   :  { %v1974_v48 = vadd.f32 %v1973_v25, %v5794_v28  ;;  %v2005_v35 = vadd.f32 %v2004_v12, %v1942_v20  ;;  %v1784_v19 = vmul.f32 0.6931472, %v4914_v16  ;;  %v1830_v58 = vmul.f32 -0.5, %v5791_v9  ;;  %v5800_v20 = vld [vmem:[#allocation190_spill] sm:$0xff]  ;;  %v5807_v12 = vld [vmem:[#allocation132_spill] sm:$0xff]  ;;  %v5811_v46 = vld [vmem:[#allocation159_spill] sm:$0xff] }
 0x1c3   :  { %v1855_v36 = vsub.f32 %v5795_v27, %v4842_v10  ;;  %v1885_v51 = vmul.f32 %v1853_v15, %v5796_v0  ;;  %vm5014_vm11 = vcmp.lt.f32.partialorder %v1797_v56, 0.0004427343  ;;  %v1915_v1 = vadd.f32 %v1883_v6, %v4792_v45  ;;  %v5805_v15 = vld [vmem:[#allocation158_spill] sm:$0xff]  ;;  %v5816_v0 = vld [vmem:[#allocation160_spill] sm:$0xff]  ;;  %v5836_v47 = vld [vmem:[#allocation139_spill] sm:$0xff] }
 0x1c4   :  { %v1945_v3 = vsub.f32 0.0, %v1913_v39  ;;  %v1975_v14 = vadd.f32 %v1974_v48, %v5799_v41  ;;  %v2006_v21 = vadd.f32 %v2005_v35, %v1943_v33  ;;  %v1822_v16 = vadd.f32 1.0, %v1821_v60  ;;  %v5812_v48 = vld [vmem:[#allocation192_spill] sm:$0xff]  ;;  %v5813_v35 = vld [vmem:[#allocation133_spill] sm:$0xff] }
 0x1c5   :  { %2472 = vlog2.f32 %v1827_v2  ;;  %v1856_v24 = vsub.f32 %v5800_v20, %v4850_v13  ;;  %v1886_v54 = vmul.f32 %v1854_v50, %v5801_v59  ;;  %v5802_v49 = vand.u32 2147483647, %v5749_v40  ;;  %v2471_v39 = vpop.eup %2470  ;;  %v5823_v59 = vld [vmem:[#allocation135_spill] sm:$0xff] }
 0x1c6   :  { %v1916_v56 = vadd.f32 %v1884_v11, %v4802_v53  ;;  %v1946_v45 = vsub.f32 0.0, %v1914_v31  ;;  %v1976_v63 = vadd.f32 %v1975_v14, %v5805_v15  ;;  %v2007_v6 = vadd.f32 %v2006_v21, %v1944_v5  ;;  %v5819_v21 = vld [vmem:[#allocation161_spill] sm:$0xff] }
 0x1c7   :  { %vm5025_vm12 = vcmp.lt.f32.partialorder %v5802_v49, 0.0004427343  ;;  %v1831_v60 = vadd.f32 1.0, %v1830_v58  ;;  %v1833_v33 = vand.u32 2147483647, %v5791_v9  ;;  %v1857_v25 = vsub.f32 %v5806_v38, %v4873_v34  ;;  %v5826_v38 = vld [vmem:[#allocation136_spill] sm:$0xff] }
 0x1c8   :  { %v1887_v2 = vmul.f32 %v1855_v36, %v5807_v12  ;;  %v5808_v40 = vand.u32 2147483647, %v5761_v4  ;;  %v1917_v53 = vadd.f32 %v1885_v51, %v4806_v30  ;;  %v1947_v50 = vsub.f32 0.0, %v1915_v1 }
 0x1c9   :  { %v1977_v11 = vadd.f32 %v1976_v63, %v5811_v46  ;;  %v2008_v31 = vadd.f32 %v2007_v6, %v1945_v3  ;;  %v5046_v5 = vsel %vm4979_vm10, %v4885_v7, %v1784_v19  ;;  %v1823_v28 = vmul.f32 %v1822_v16, %v5773_v52  ;;  %v5817_v52 = vld [vmem:[#allocation193_spill] sm:$0xff]  ;;  %v5818_v3 = vld [vmem:[#allocation134_spill] sm:$0xff] }
 0x1ca   :  { %vm5037_vm13 = vcmp.lt.f32.partialorder %v5808_v40, 0.0004427343  ;;  %v1858_v4 = vsub.f32 %v5812_v48, %v4896_v26  ;;  %v1888_v58 = vmul.f32 %v1856_v24, %v5813_v35  ;;  %vm5052_vm14 = vcmp.lt.f32.partialorder %v1824_v8, 0.0004427343 }
 0x1cb   :  { %v1918_v30 = vadd.f32 %v1886_v54, %v4824_v18  ;;  %v1948_v36 = vsub.f32 0.0, %v1916_v56  ;;  %v1978_v51 = vadd.f32 %v1977_v11, %v5816_v0  ;;  %v2009_v1 = vadd.f32 %v2008_v31, %v1946_v45  ;;  %v5824_v45 = vld [vmem:[#allocation162_spill] sm:$0xff] }
 0x1cc   :  { %v1793_v7 = vmul.f32 0.6931472, %v4939_v57  ;;  %v1832_v29 = vmul.f32 %v1831_v60, %v5791_v9  ;;  %v1859_v19 = vsub.f32 %v5817_v52, %v4919_v42  ;;  %v1889_v41 = vmul.f32 %v1857_v25, %v5818_v3  ;;  %v5822_v57 = vld [vmem:[#allocation194_spill] sm:$0xff]  ;;  %v5825_v60 = vld [vmem:[#allocation195_spill] sm:$0xff] }
 0x1cd   :  { %v1919_v8 = vadd.f32 %v1887_v2, %v4842_v10  ;;  %v1949_v14 = vsub.f32 0.0, %v1917_v53  ;;  %v1979_v16 = vadd.f32 %v1978_v51, %v5819_v21  ;;  %v2010_v20 = vadd.f32 %v2009_v1, %v1947_v50  ;;  %v5833_v1 = vld [vmem:[#allocation165_spill] sm:$0xff] }
 0x1ce   :  { %v1802_v18 = vmul.f32 0.6931472, %v4947_v22  ;;  %vm5066_vm15 = vcmp.lt.f32.partialorder %v1833_v33, 0.0004427343  ;;  %v1860_v9 = vsub.f32 %v5822_v57, %v4966_v37  ;;  %v1890_v54 = vmul.f32 %v1858_v4, %v5823_v59  ;;  %v5830_v4 = vld [vmem:[#allocation164_spill] sm:$0xff] }
 0x1cf   :  { %v1920_v49 = vadd.f32 %v1888_v58, %v4850_v13  ;;  %v1950_v56 = vsub.f32 0.0, %v1918_v30  ;;  %v1980_v10 = vadd.f32 %v1979_v16, %v5824_v45  ;;  %v2011_v15 = vadd.f32 %v2010_v20, %v1948_v36  ;;  %v2473_v63 = vpop.eup %2472  ;;  %v5827_v13 = vld [vmem:[#allocation163_spill] sm:$0xff]  ;;  %v5831_v36 = vld [vmem:[#allocation198_spill] sm:$0xff] }
 0x1d0   :  { %v1799_v22 = vsel %vm5014_vm11, %v4901_v17, %v1793_v7  ;;  %v1811_v6 = vmul.f32 0.6931472, %v4996_v23  ;;  %v1861_v33 = vsub.f32 %v5825_v60, %v4988_v43  ;;  %v1891_v25 = vmul.f32 %v1859_v19, %v5826_v38  ;;  %v5828_v17 = vld [vmem:[#allocation197_spill] sm:$0xff]  ;;  %v5837_v16 = vld [vmem:[#allocation166_spill] sm:$0xff] }
 0x1d1   :  { %v1921_v12 = vadd.f32 %v1889_v41, %v4873_v34  ;;  %v1951_v2 = vsub.f32 0.0, %v1919_v8  ;;  %v1981_v40 = vadd.f32 %v1980_v10, %v5827_v13  ;;  %v2012_v53 = vadd.f32 %v2011_v15, %v1949_v14  ;;  %v5829_v23 = vld [vmem:[#allocation137_spill] sm:$0xff]  ;;  %v5835_v41 = vld [vmem:[#allocation199_spill] sm:$0xff]  ;;  %v5844_v13 = vld [vmem:[#allocation146_spill] sm:$0xff] }
 0x1d2   :  { %v1808_v50 = vsel %vm5025_vm12, %v4956_v32, %v1802_v18  ;;  %v1820_v46 = vmul.f32 0.6931472, %v2471_v39  ;;  %v1862_v62 = vsub.f32 %v5828_v17, %v5046_v5  ;;  %v1892_v11 = vmul.f32 %v1860_v9, %v5829_v23  ;;  %v5832_v32 = vld [vmem:[#allocation138_spill] sm:$0xff]  ;;  %v5838_v9 = vld [vmem:[#allocation200_spill] sm:$0xff] }
 0x1d3   :  { %v1922_v31 = vadd.f32 %v1890_v54, %v4896_v26  ;;  %v1952_v48 = vsub.f32 0.0, %v1920_v49  ;;  %v1982_v35 = vadd.f32 %v1981_v40, %v5830_v4  ;;  %v2013_v34 = vadd.f32 %v2012_v53, %v1950_v56  ;;  %v5834_v26 = vld [vmem:[#allocation196_spill] sm:$0xff]  ;;  %v5840_v56 = vld [vmem:[#allocation167_spill] sm:$0xff] }
 0x1d4   :  { %v1817_v58 = vsel %vm5037_vm13, %v4999_v61, %v1811_v6  ;;  %v1829_v30 = vmul.f32 0.6931472, %v2473_v63  ;;  %v1863_v55 = vsub.f32 %v5831_v36, %v1799_v22  ;;  %v1893_v39 = vmul.f32 %v1861_v33, %v5832_v32  ;;  %v5839_v54 = vld [vmem:[#allocation140_spill] sm:$0xff]  ;;  %v5842_v63 = vld [vmem:[#allocation141_spill] sm:$0xff] }
 0x1d5   :  { %v1923_v0 = vadd.f32 %v1891_v25, %v4919_v42  ;;  %v1953_v51 = vsub.f32 0.0, %v1921_v12  ;;  %v1983_v7 = vadd.f32 %v1982_v35, %v5833_v1  ;;  %v2014_v52 = vadd.f32 %v2013_v34, %v1951_v2  ;;  %v2475_v12 = vld [vmem:[%s5157_s1 + $0xe0] sm:$0xff]  ;;  %v5847_v34 = vld [vmem:[#allocation143_spill] sm:$0xff]  ;;  %v5848_v1 = vld [vmem:[#allocation144_spill] sm:$0xff] }
 0x1d6   :  { %v1513_v19 = vmul.f32 0.6931472, %v5834_v26  ;;  %v1826_v3 = vsel %vm5052_vm14, %v1823_v28, %v1820_v46  ;;  %v1864_v8 = vsub.f32 %v5835_v41, %v1808_v50  ;;  %v1894_v61 = vmul.f32 %v1862_v62, %v5836_v47  ;;  %v5845_v46 = vld [vmem:[#allocation142_spill] sm:$0xff] }
 0x1d7   :  { %v1924_v14 = vadd.f32 %v1892_v11, %v4966_v37  ;;  %v1954_v21 = vsub.f32 0.0, %v1922_v31  ;;  %v1984_v20 = vadd.f32 %v1983_v7, %v5837_v16  ;;  %v2015_v18 = vadd.f32 %v2014_v52, %v1952_v48  ;;  %v2474_v37 = vld [vmem:[%s5157_s1 + $0xd8] sm:$0xff]  ;;  %v2476_v48 = vld [vmem:[%s5157_s1 + $0xe8] sm:$0xff] }
 0x1d8   :  { %v1515_v42 = vmul.f32 0.6931472, %v4626_v44  ;;  %v1835_v57 = vsel %vm5066_vm15, %v1832_v29, %v1829_v30  ;;  %v1865_v59 = vsub.f32 %v5838_v9, %v1817_v58  ;;  %v1895_v27 = vmul.f32 %v1863_v55, %v5839_v54  ;;  %v5841_v44 = vld [vmem:[#allocation145_spill] sm:$0xff] }
 0x1d9   :  { %v1925_v28 = vadd.f32 %v1893_v39, %v4988_v43  ;;  %v1955_v49 = vsub.f32 0.0, %v1923_v0  ;;  %v1985_v45 = vadd.f32 %v1984_v20, %v5840_v56  ;;  %v2016_v10 = vadd.f32 %v2015_v18, %v1953_v51  ;;  %v5843_v43 = vld [vmem:[#allocation168_spill] sm:$0xff]  ;;  %v5846_v11 = vld [vmem:[#allocation169_spill] sm:$0xff] }
 0x1da   :  { %v1351_v15 = vsub.f32 %v2474_v37, %v5839_v54  ;;  %v1381_v24 = vmul.f32 %v5841_v44, %v5841_v44  ;;  %v1866_v29 = vsub.f32 %v1513_v19, %v1826_v3  ;;  %v1896_v6 = vmul.f32 %v1864_v8, %v5842_v63 }
 0x1db   :  { %v1926_v60 = vadd.f32 %v1894_v61, %v5046_v5  ;;  %v1956_v33 = vsub.f32 0.0, %v1924_v14  ;;  %v1986_v38 = vadd.f32 %v1985_v45, %v5843_v43  ;;  %v2017_v25 = vadd.f32 %v2016_v10, %v1954_v21  ;;  %v2028_v10 = vld [vmem:[%s5159_s3] sm:$0xff] }
 0x1dc   :  { %v1352_v2 = vsub.f32 %v2475_v12, %v5842_v63  ;;  %v1382_v40 = vmul.f32 %v5844_v13, %v5844_v13  ;;  %v1867_v53 = vsub.f32 %v1515_v42, %v1835_v57  ;;  %v1897_v17 = vmul.f32 %v1865_v59, %v5845_v46 }
 0x1dd   :  { %v1927_v62 = vadd.f32 %v1895_v27, %v1799_v22  ;;  %v1957_v23 = vsub.f32 0.0, %v1925_v28  ;;  %v1987_v5 = vadd.f32 %v1986_v38, %v5846_v11  ;;  %v2018_v31 = vadd.f32 %v2017_v25, %v1955_v49  ;;  %v2477_v22 = vld [vmem:[%s5157_s1 + $0xf0] sm:$0xff] }
 0x1de   :  { %v1353_v4 = vsub.f32 %v2476_v48, %v5845_v46  ;;  %v1383_v35 = vmul.f32 %v1351_v15, %v1351_v15  ;;  %v1898_v30 = vmul.f32 %v1866_v29, %v5847_v34  ;;  %v1928_v36 = vadd.f32 %v1896_v6, %v1808_v50  ;;  %v2478_v50 = vld [vmem:[%s5157_s1 + $0xf8] sm:$0xff] }
 0x1df   :  { %v1958_v55 = vsub.f32 0.0, %v1926_v60  ;;  %v1988_v32 = vadd.f32 %v1987_v5, %v1381_v24  ;;  %v2019_v39 = vadd.f32 %v2018_v31, %v1956_v33  ;;  %v1354_v0 = vsub.f32 %v2477_v22, %v5847_v34 }
 0x1e0   :  { %v1384_v51 = vmul.f32 %v1352_v2, %v1352_v2  ;;  %v1899_v7 = vmul.f32 %v1867_v53, %v5848_v1  ;;  %v1929_v52 = vadd.f32 %v1897_v17, %v1817_v58  ;;  %v1959_v26 = vsub.f32 0.0, %v1927_v62 }
 0x1e1   :  { %v1989_v19 = vadd.f32 %v1988_v32, %v1382_v40  ;;  %v2020_v41 = vadd.f32 %v2019_v39, %v1957_v23  ;;  %v1355_v8 = vsub.f32 %v2478_v50, %v5848_v1  ;;  %v1385_v47 = vmul.f32 %v1353_v4, %v1353_v4 }
 0x1e2   :  { %v1930_v61 = vadd.f32 %v1898_v30, %v1826_v3  ;;  %v1960_v14 = vsub.f32 0.0, %v1928_v36  ;;  %v1386_v20 = vmul.f32 %v1354_v0, %v1354_v0  ;;  %v1931_v18 = vadd.f32 %v1899_v7, %v1835_v57  ;;  %v2057_v57 = vld [vmem:[%s5159_s3 + $0x8] sm:$0xff] }
 0x1e3   :  { %v1990_v21 = vadd.f32 %v1989_v19, %v1383_v35  ;;  %v2021_v16 = vadd.f32 %v2020_v41, %v1958_v55  ;;  %v1961_v42 = vsub.f32 0.0, %v1929_v52  ;;  %v1387_v58 = vmul.f32 %v1355_v8, %v1355_v8 }
 0x1e4   :  { %v1962_v54 = vsub.f32 0.0, %v1930_v61  ;;  %v1963_v49 = vsub.f32 0.0, %v1931_v18 }
 0x1e5   :  { %v1991_v9 = vadd.f32 %v1990_v21, %v1384_v51  ;;  %v2022_v59 = vadd.f32 %v2021_v16, %v1959_v26 }
 0x1e7   :  { %v1992_v27 = vadd.f32 %v1991_v9, %v1385_v47  ;;  %v2023_v28 = vadd.f32 %v2022_v59, %v1960_v14 }
 0x1e9   :  { %v1993_v56 = vadd.f32 %v1992_v27, %v1386_v20  ;;  %v2024_v45 = vadd.f32 %v2023_v28, %v1961_v42 }
 0x1eb   :  { %v1994_v3 = vadd.f32 %v1993_v56, %v1387_v58  ;;  %v2025_v37 = vadd.f32 %v2024_v45, %v1962_v54 }
 0x1ed   :  { %v2026_v15 = vadd.f32 %v2025_v37, %v1963_v49  ;;  %v2029_v44 = vadd.f32 %v2028_v10, %v1994_v3 }
 0x1ef   :  { %2030 = vst [vmem:[%s5159_s3] sm:$0xff] %v2029_v44  ;;  %v2033_v24 = vadd.f32 %v2057_v57, %v2026_v15 }
 0x1f1   :  { %2058 = vst [vmem:[%s5159_s3 + $0x8] sm:$0xff] %v2033_v24 }
 0x1f2 PF:  {}

</bundles_post_ra>
